<compile_context>
chip_gen: v7x
topology: tpu7x:2x2x1
jax: 0.10.0
libtpu: 0.0.40
codegen_flags: <defaults>
</compile_context>

<pallas_src>
import jax
import jax.numpy as jnp
from jax import lax
from jax.experimental import pallas as pl
from jax.experimental.pallas import tpu as pltpu

H = 100            # hidden_size hardcoded in the PyTorch module
HP = 128           # hidden padded to one lane tile
NUM_LAYERS = 4     # num_layers=4, bidirectional=True
G3 = 3 * HP        # one direction's packed gate width (r,z,n)
G6 = 6 * HP        # both directions' packed gate width


# ---------------------------------------------------------------------------
# Fused Pallas kernel: one grid step per GRU layer; attention head at the last
# ---------------------------------------------------------------------------
def han_kernel(x_ref, wih_ref, whh_ref, bih_ref, bhhn_ref, attw_ref, attb_ref,
               u_ref, out_f, out_b, gi_buf):
    """
    x_ref    : (T, Bp, HP)          bf16 time-major embedded input (layer-0 only)
    wih_ref  : (1, 2, HP, G6)       this layer's input->hidden weights, bf16.
                                    axis1: {top-half rows, bot-half rows} of the input;
                                    lanes [0:G3) fwd gates r,z,n, [G3:G6) bwd gates.
    whh_ref  : (1, 2, HP, G3)       hidden->hidden weights, bf16 (axis1 = direction)
    bih_ref  : (1, 1, G6)           f32, b_ih with b_hh(r,z) folded in
    bhhn_ref : (1, 2, 1, HP)        f32, n-gate b_hh per direction
    attw_ref : (HP, HP) bf16, attb_ref : (1, HP) f32
    u_ref    : (T, Bp, HP)          f32 output, written only at the last layer
    out_f/b  : (T, Bp, HP) f32      persistent per-direction hidden-state scratch
    gi_buf   : (T, Bp, G6) f32      hoisted input projections (both directions)
    """
    T, Bp, _ = x_ref.shape
    layer = pl.program_id(0)
    last = pl.num_programs(0) - 1

    # ---- hoisted input projection: both directions fused into one 768-wide matmul ----
    @pl.when(layer == 0)
    def _():
        x2d = x_ref[...].reshape(T * Bp, HP)                       # embed in lanes [0:E)
        gi_buf[...] = (
            jnp.dot(x2d, wih_ref[0, 0], preferred_element_type=jnp.float32)
            + bih_ref[0]).reshape(T, Bp, G6)

    @pl.when(layer > 0)
    def _():
        f2d = out_f[...].reshape(T * Bp, HP).astype(jnp.bfloat16)  # prev layer fwd h
        b2d = out_b[...].reshape(T * Bp, HP).astype(jnp.bfloat16)  # prev layer bwd h
        gi_buf[...] = (
            jnp.dot(f2d, wih_ref[0, 0], preferred_element_type=jnp.float32)
            + jnp.dot(b2d, wih_ref[0, 1], preferred_element_type=jnp.float32)
            + bih_ref[0]).reshape(T, Bp, G6)

    # ---- serial recurrence: both directions interleaved, statically unrolled (T=8) ----
    # Weight values loaded once per layer and held in vregs across the unrolled loop.
    # TODO(synk): further win = pltpu.matmul_push_rhs residency of whh across the loop.
    whh_f = whh_ref[0, 0]
    whh_b = whh_ref[0, 1]
    bhn_f = bhhn_ref[0, 0]
    bhn_b = bhhn_ref[0, 1]

    def cell(gi, gh, bhn, h_prev):
        r = jax.nn.sigmoid(gi[:, 0:HP] + gh[:, 0:HP])
        z = jax.nn.sigmoid(gi[:, HP:2 * HP] + gh[:, HP:2 * HP])
        n = jnp.tanh(gi[:, 2 * HP:G3] + r * (gh[:, 2 * HP:G3] + bhn))
        return (1.0 - z) * n + z * h_prev

    h_f = jnp.zeros((Bp, HP), jnp.float32)                         # h0 = 0 (PyTorch default)
    h_b = jnp.zeros((Bp, HP), jnp.float32)
    for s in range(T):
        tb = T - 1 - s
        gh_f = jnp.dot(h_f.astype(jnp.bfloat16), whh_f,
                       preferred_element_type=jnp.float32)
        gh_b = jnp.dot(h_b.astype(jnp.bfloat16), whh_b,
                       preferred_element_type=jnp.float32)
        h_f = cell(gi_buf[s, :, 0:G3], gh_f, bhn_f, h_f)
        h_b = cell(gi_buf[tb, :, G3:G6], gh_b, bhn_b, h_b)
        out_f[s] = h_f
        out_b[tb] = h_b

    # ---- attention head: out_left + out_right -> Linear(H,H) + Tanh, last layer only ----
    @pl.when(layer == last)
    def _():
        out_add = (out_f[...] + out_b[...]).reshape(T * Bp, HP).astype(jnp.bfloat16)
        u = jnp.tanh(
            jnp.dot(out_add, attw_ref[...], preferred_element_type=jnp.float32)
            + attb_ref[...])
        u_ref[...] = u.reshape(T, Bp, HP)


# ---------------------------------------------------------------------------
# One-time weight packing (transpose / pad / fold / stack) into kernel layout
# ---------------------------------------------------------------------------
def prepare_params(raw):
    E = raw["embedding"].shape[1]
    wih = jnp.zeros((NUM_LAYERS, 2, HP, G6), jnp.float32)
    whh = jnp.zeros((NUM_LAYERS, 2, HP, G3), jnp.float32)
    bih = jnp.zeros((NUM_LAYERS, 1, G6), jnp.float32)
    bhn = jnp.zeros((NUM_LAYERS, 2, 1, HP), jnp.float32)

    for l in range(NUM_LAYERS):
        for d in range(2):                                   # 0 = fwd, 1 = bwd
            w_ih, w_hh, b_ih, b_hh = raw["gru"][l][d]
            for g in range(3):                               # gate order r, z, n
                col0 = d * G3 + g * HP
                wg_ih = w_ih[g * H:(g + 1) * H, :].T         # (D_in, H)
                if l == 0:
                    # layer 0 input = embedding, padded to 128 lanes -> top half only
                    wih = wih.at[l, 0, :E, col0:col0 + H].set(wg_ih)
                else:
                    # layer >=1 input = [fwd h | bwd h]; split across top/bot slabs
                    wih = wih.at[l, 0, :H, col0:col0 + H].set(wg_ih[:H, :])
                    wih = wih.at[l, 1, :H, col0:col0 + H].set(wg_ih[H:2 * H, :])
                whh = whh.at[l, d, :H, g * HP:g * HP + H].set(
                    w_hh[g * H:(g + 1) * H, :].T)
                bias = b_ih[g * H:(g + 1) * H]
                if g < 2:                                    # fold b_hh for r,z gates
                    bias = bias + b_hh[g * H:(g + 1) * H]
                bih = bih.at[l, 0, col0:col0 + H].set(bias)
            bhn = bhn.at[l, d, 0, :H].set(b_hh[2 * H:3 * H])

    att_w, att_b = raw["att"]
    return {
        "embedding": raw["embedding"].astype(jnp.float32),
        "wih": wih.astype(jnp.bfloat16),                     # (L, 2, HP, G6)
        "whh": whh.astype(jnp.bfloat16),                     # (L, 2, HP, G3)
        "bih": bih,                                          # (L, 1, G6) f32
        "bhh_n": bhn,                                        # (L, 2, 1, HP) f32
        "att_w": jnp.zeros((HP, HP), jnp.float32)
                   .at[:H, :H].set(att_w.T).astype(jnp.bfloat16),
        "att_b": jnp.zeros((1, HP), jnp.float32).at[0, :H].set(att_b),
    }


# ---------------------------------------------------------------------------
# Forward wrapper (single pallas_call, grid over layers)
# ---------------------------------------------------------------------------
@jax.jit
def han_forward(packed, token_ids):
    B, T = token_ids.shape
    E = packed["embedding"].shape[1]
    Bp = max(8, ((B + 7) // 8) * 8)                          # sublane-dense batch

    embed = jnp.take(packed["embedding"], token_ids, axis=0)  # (B, T, E) gather (JAX glue)
    x = jnp.zeros((T, Bp, HP), jnp.bfloat16)
    x = x.at[:, :B, :E].set(jnp.transpose(embed, (1, 0, 2)).astype(jnp.bfloat16))

    grid_spec = pltpu.PrefetchScalarGridSpec(
        num_scalar_prefetch=0,
        grid=(NUM_LAYERS,),
        in_specs=[
            pl.BlockSpec((T, Bp, HP), lambda l: (0, 0, 0)),          # x (resident)
            pl.BlockSpec((1, 2, HP, G6), lambda l: (l, 0, 0, 0)),    # wih (per-layer)
            pl.BlockSpec((1, 2, HP, G3), lambda l: (l, 0, 0, 0)),    # whh (per-layer)
            pl.BlockSpec((1, 1, G6), lambda l: (l, 0, 0)),           # bih (per-layer)
            pl.BlockSpec((1, 2, 1, HP), lambda l: (l, 0, 0, 0)),     # bhh_n (per-layer)
            pl.BlockSpec((HP, HP), lambda l: (0, 0)),                # att_w (resident)
            pl.BlockSpec((1, HP), lambda l: (0, 0)),                 # att_b (resident)
        ],
        out_specs=pl.BlockSpec((T, Bp, HP), lambda l: (0, 0, 0)),
        scratch_shapes=[
            pltpu.VMEM((T, Bp, HP), jnp.float32),   # out_f (persists across layers)
            pltpu.VMEM((T, Bp, HP), jnp.float32),   # out_b
            pltpu.VMEM((T, Bp, G6), jnp.float32),   # hoisted gi (both directions)
        ],
    )
    u_pad = pl.pallas_call(
        han_kernel,
        out_shape=jax.ShapeDtypeStruct((T, Bp, HP), jnp.float32),
        grid_spec=grid_spec,
        compiler_params=pltpu.CompilerParams(
            dimension_semantics=("arbitrary",)),     # layers are sequential
    )(x, packed["wih"], packed["whh"], packed["bih"], packed["bhh_n"],
      packed["att_w"], packed["att_b"])

    return jnp.transpose(u_pad[:, :B, :H], (1, 0, 2))    # (B, T, H), batch_first


# ---------------------------------------------------------------------------
# Synthetic parameter init (PyTorch shapes) + pure-JAX reference for self-check
# ---------------------------------------------------------------------------
def init_raw_params(key, vocab_size, embed_dim):
    keys = iter(jax.random.split(key, 64))
    k = 1.0 / (H ** 0.5)

    def unif(shape):
        return jax.random.uniform(next(keys), shape, jnp.float32, minval=-k, maxval=k)

    gru = []
    for l in range(NUM_LAYERS):
        d_in = embed_dim if l == 0 else 2 * H
        layer = []
        for _ in range(2):                               # fwd, bwd
            layer.append((
                unif((3 * H, d_in)),                     # weight_ih
                unif((3 * H, H)),                        # weight_hh
                unif((3 * H,)),                          # bias_ih
                unif((3 * H,)),                          # bias_hh
            ))
        gru.append(layer)

    return {
        "embedding": jax.random.normal(next(keys), (vocab_size, embed_dim), jnp.float32),
        "gru": gru,
        "att": (unif((H, H)), unif((H,))),               # att_layer Linear(H, H)
    }


def han_reference(raw, token_ids):
    """Pure-JAX mirror of HAN's meaningful forward math (PyTorch GRU semantics)."""
    hp = lax.Precision.HIGHEST
    x = jnp.take(raw["embedding"], token_ids, axis=0).astype(jnp.float32)  # (B, T, E)
    B, T, _ = x.shape
    for layer in raw["gru"]:
        outs = []
        for d, (w_ih, w_hh, b_ih, b_hh) in enumerate(layer):
            seq = x if d == 0 else x[:, ::-1]
            h = jnp.zeros((B, H), jnp.float32)
            hs = []
            for t in range(T):
                gi = jnp.dot(seq[:, t], w_ih.T, precision=hp) + b_ih
                gh = jnp.dot(h, w_hh.T, precision=hp) + b_hh
                r = jax.nn.sigmoid(gi[:, :H] + gh[:, :H])
                z = jax.nn.sigmoid(gi[:, H:2 * H] + gh[:, H:2 * H])
                n = jnp.tanh(gi[:, 2 * H:] + r * gh[:, 2 * H:])
                h = (1.0 - z) * n + z * h
                hs.append(h)
            hs = jnp.stack(hs, axis=1)                   # (B, T, H)
            outs.append(hs[:, ::-1] if d == 1 else hs)
        x = jnp.concatenate(outs, axis=-1)               # (B, T, 2H)
    out_add = x[:, :, :H] + x[:, :, H:]
    att_w, att_b = raw["att"]
    return jnp.tanh(jnp.einsum("bth,oh->bto", out_add, att_w, precision=hp) + att_b)


if __name__ == "__main__":
    vocab_size, embed_dim, seq_max_length, n_class = 50, 32, 8, 4  # n_class unused in forward
    B, T = 2, seq_max_length

    key = jax.random.PRNGKey(0)
    pkey, xkey = jax.random.split(key)
    raw = init_raw_params(pkey, vocab_size, embed_dim)
    packed = prepare_params(raw)
    token_ids = jax.random.randint(xkey, (B, T), 0, vocab_size)

    u = jax.block_until_ready(han_forward(packed, token_ids))
    assert u.shape == (B, T, H) and u.dtype == jnp.float32

    # bf16-effective matmul precision (same as MXU default); tolerance reflects that.
    u_ref = jax.block_until_ready(jax.jit(han_reference)(raw, token_ids))
    err = float(jnp.max(jnp.abs(u - u_ref)))
    assert err < 3e-2, f"kernel/reference mismatch: max abs err = {err}"
    print("KERNEL_OK")
</pallas_src>

<mosaic_0001>
module attributes {stable_mosaic.version = 11 : i64} {
  func.func @han_kernel(%arg0: i32, %arg1: memref<8x8x128xbf16, #tpu.memory_space<vmem>>, %arg2: memref<1x2x128x768xbf16, #tpu.memory_space<vmem>>, %arg3: memref<1x2x128x384xbf16, #tpu.memory_space<vmem>>, %arg4: memref<1x1x768xf32, #tpu.memory_space<vmem>>, %arg5: memref<1x2x1x128xf32, #tpu.memory_space<vmem>>, %arg6: memref<128x128xbf16, #tpu.memory_space<vmem>>, %arg7: memref<1x128xf32, #tpu.memory_space<vmem>>, %arg8: memref<8x8x128xf32, #tpu.memory_space<vmem>>, %arg9: memref<8x8x128xf32, #tpu.memory_space<vmem>>, %arg10: memref<8x8x128xf32, #tpu.memory_space<vmem>>, %arg11: memref<8x8x768xf32, #tpu.memory_space<vmem>>) attributes {dimension_semantics = [#tpu.dimension_semantics<arbitrary>], iteration_bounds = array<i64: 4>, scalar_prefetch = 0 : i64, scratch_operands = 3 : i64, tpu.core_type = #tpu.core_type<tc>, window_params = [{pipeline_mode = #tpu.pipeline_mode<synchronous>, transform_indices = @transform_0, window_bounds = array<i64: 8, 8, 128>}, {transform_indices = @transform_1, window_bounds = array<i64: 1, 2, 128, 768>}, {transform_indices = @transform_2, window_bounds = array<i64: 1, 2, 128, 384>}, {transform_indices = @transform_3, window_bounds = array<i64: 1, 1, 768>}, {transform_indices = @transform_4, window_bounds = array<i64: 1, 2, 1, 128>}, {pipeline_mode = #tpu.pipeline_mode<synchronous>, transform_indices = @transform_5, window_bounds = array<i64: 128, 128>}, {pipeline_mode = #tpu.pipeline_mode<synchronous>, transform_indices = @transform_6, window_bounds = array<i64: 1, 128>}, {pipeline_mode = #tpu.pipeline_mode<synchronous>, transform_indices = @transform_7, window_bounds = array<i64: 8, 8, 128>}]} {
    %c0_i32 = arith.constant 0 : i32
    %0 = arith.cmpi eq, %arg0, %c0_i32 : i32
    %1 = arith.extui %0 : i1 to i32
    %c0_i32_0 = arith.constant 0 : i32
    %2 = arith.cmpi ne, %1, %c0_i32_0 : i32
    scf.if %2 {
      %c0_172 = arith.constant 0 : index
      %c0_173 = arith.constant 0 : index
      %c0_174 = arith.constant 0 : index
      %579 = vector.load %arg1[%c0_172, %c0_173, %c0_174] : memref<8x8x128xbf16, #tpu.memory_space<vmem>>, vector<8x8x128xbf16>
      %580 = vector.shape_cast %579 : vector<8x8x128xbf16> to vector<64x128xbf16>
      %c0_175 = arith.constant 0 : index
      %c0_176 = arith.constant 0 : index
      %c0_177 = arith.constant 0 : index
      %c0_178 = arith.constant 0 : index
      %581 = vector.load %arg2[%c0_175, %c0_176, %c0_177, %c0_178] : memref<1x2x128x768xbf16, #tpu.memory_space<vmem>>, vector<1x1x128x768xbf16>
      %582 = vector.shape_cast %581 : vector<1x1x128x768xbf16> to vector<128x768xbf16>
      %cst_179 = arith.constant dense<0.000000e+00> : vector<64x768xf32>
      %583 = tpu.matmul %580, %582, %cst_179 {dimension_numbers = #tpu.dot_dimension_numbers<[1], [0], [0], [1], [0, 0, 1, 1], [], []>} : vector<64x128xbf16>, vector<128x768xbf16>, vector<64x768xf32> -> vector<64x768xf32>
      %c0_180 = arith.constant 0 : index
      %c0_181 = arith.constant 0 : index
      %c0_182 = arith.constant 0 : index
      %584 = vector.load %arg4[%c0_180, %c0_181, %c0_182] : memref<1x1x768xf32, #tpu.memory_space<vmem>>, vector<1x1x768xf32>
      %585 = vector.shape_cast %584 : vector<1x1x768xf32> to vector<1x768xf32>
      %586 = vector.broadcast %585 : vector<1x768xf32> to vector<64x768xf32>
      %587 = arith.addf %583, %586 : vector<64x768xf32>
      %588 = vector.shape_cast %587 : vector<64x768xf32> to vector<8x8x768xf32>
      %c0_183 = arith.constant 0 : index
      %c0_184 = arith.constant 0 : index
      %c0_185 = arith.constant 0 : index
      %589 = vector.load %arg11[%c0_183, %c0_184, %c0_185] : memref<8x8x768xf32, #tpu.memory_space<vmem>>, vector<8x8x768xf32>
      tpu.vector_store %arg11[%c0_183, %c0_184, %c0_185], %588 {strides = array<i32>} : memref<8x8x768xf32, #tpu.memory_space<vmem>>, vector<8x8x768xf32>,
    } else {
    }
    %c0_i32_1 = arith.constant 0 : i32
    %3 = arith.cmpi sgt, %arg0, %c0_i32_1 : i32
    %4 = arith.extui %3 : i1 to i32
    %c0_i32_2 = arith.constant 0 : i32
    %5 = arith.cmpi ne, %4, %c0_i32_2 : i32
    scf.if %5 {
      %c0_172 = arith.constant 0 : index
      %c0_173 = arith.constant 0 : index
      %c0_174 = arith.constant 0 : index
      %579 = vector.load %arg9[%c0_172, %c0_173, %c0_174] : memref<8x8x128xf32, #tpu.memory_space<vmem>>, vector<8x8x128xf32>
      %580 = vector.shape_cast %579 : vector<8x8x128xf32> to vector<64x128xf32>
      %581 = arith.truncf %580 : vector<64x128xf32> to vector<64x128xbf16>
      %c0_175 = arith.constant 0 : index
      %c0_176 = arith.constant 0 : index
      %c0_177 = arith.constant 0 : index
      %582 = vector.load %arg10[%c0_175, %c0_176, %c0_177] : memref<8x8x128xf32, #tpu.memory_space<vmem>>, vector<8x8x128xf32>
      %583 = vector.shape_cast %582 : vector<8x8x128xf32> to vector<64x128xf32>
      %584 = arith.truncf %583 : vector<64x128xf32> to vector<64x128xbf16>
      %c0_178 = arith.constant 0 : index
      %c0_179 = arith.constant 0 : index
      %c0_180 = arith.constant 0 : index
      %c0_181 = arith.constant 0 : index
      %585 = vector.load %arg2[%c0_178, %c0_179, %c0_180, %c0_181] : memref<1x2x128x768xbf16, #tpu.memory_space<vmem>>, vector<1x1x128x768xbf16>
      %586 = vector.shape_cast %585 : vector<1x1x128x768xbf16> to vector<128x768xbf16>
      %cst_182 = arith.constant dense<0.000000e+00> : vector<64x768xf32>
      %587 = tpu.matmul %581, %586, %cst_182 {dimension_numbers = #tpu.dot_dimension_numbers<[1], [0], [0], [1], [0, 0, 1, 1], [], []>} : vector<64x128xbf16>, vector<128x768xbf16>, vector<64x768xf32> -> vector<64x768xf32>
      %c0_183 = arith.constant 0 : index
      %c1_184 = arith.constant 1 : index
      %c0_185 = arith.constant 0 : index
      %c0_186 = arith.constant 0 : index
      %588 = vector.load %arg2[%c0_183, %c1_184, %c0_185, %c0_186] : memref<1x2x128x768xbf16, #tpu.memory_space<vmem>>, vector<1x1x128x768xbf16>
      %589 = vector.shape_cast %588 : vector<1x1x128x768xbf16> to vector<128x768xbf16>
      %cst_187 = arith.constant dense<0.000000e+00> : vector<64x768xf32>
      %590 = tpu.matmul %584, %589, %cst_187 {dimension_numbers = #tpu.dot_dimension_numbers<[1], [0], [0], [1], [0, 0, 1, 1], [], []>} : vector<64x128xbf16>, vector<128x768xbf16>, vector<64x768xf32> -> vector<64x768xf32>
      %591 = arith.addf %587, %590 : vector<64x768xf32>
      %c0_188 = arith.constant 0 : index
      %c0_189 = arith.constant 0 : index
      %c0_190 = arith.constant 0 : index
      %592 = vector.load %arg4[%c0_188, %c0_189, %c0_190] : memref<1x1x768xf32, #tpu.memory_space<vmem>>, vector<1x1x768xf32>
      %593 = vector.shape_cast %592 : vector<1x1x768xf32> to vector<1x768xf32>
      %594 = vector.broadcast %593 : vector<1x768xf32> to vector<64x768xf32>
      %595 = arith.addf %591, %594 : vector<64x768xf32>
      %596 = vector.shape_cast %595 : vector<64x768xf32> to vector<8x8x768xf32>
      %c0_191 = arith.constant 0 : index
      %c0_192 = arith.constant 0 : index
      %c0_193 = arith.constant 0 : index
      %597 = vector.load %arg11[%c0_191, %c0_192, %c0_193] : memref<8x8x768xf32, #tpu.memory_space<vmem>>, vector<8x8x768xf32>
      tpu.vector_store %arg11[%c0_191, %c0_192, %c0_193], %596 {strides = array<i32>} : memref<8x8x768xf32, #tpu.memory_space<vmem>>, vector<8x8x768xf32>,
    } else {
    }
    %c0 = arith.constant 0 : index
    %c0_3 = arith.constant 0 : index
    %c0_4 = arith.constant 0 : index
    %c0_5 = arith.constant 0 : index
    %6 = vector.load %arg3[%c0, %c0_3, %c0_4, %c0_5] : memref<1x2x128x384xbf16, #tpu.memory_space<vmem>>, vector<1x1x128x384xbf16>
    %7 = vector.shape_cast %6 : vector<1x1x128x384xbf16> to vector<128x384xbf16>
    %c0_6 = arith.constant 0 : index
    %c1 = arith.constant 1 : index
    %c0_7 = arith.constant 0 : index
    %c0_8 = arith.constant 0 : index
    %8 = vector.load %arg3[%c0_6, %c1, %c0_7, %c0_8] : memref<1x2x128x384xbf16, #tpu.memory_space<vmem>>, vector<1x1x128x384xbf16>
    %9 = vector.shape_cast %8 : vector<1x1x128x384xbf16> to vector<128x384xbf16>
    %c0_9 = arith.constant 0 : index
    %c0_10 = arith.constant 0 : index
    %c0_11 = arith.constant 0 : index
    %c0_12 = arith.constant 0 : index
    %10 = vector.load %arg5[%c0_9, %c0_10, %c0_11, %c0_12] : memref<1x2x1x128xf32, #tpu.memory_space<vmem>>, vector<1x1x1x128xf32>
    %11 = vector.shape_cast %10 : vector<1x1x1x128xf32> to vector<1x128xf32>
    %c0_13 = arith.constant 0 : index
    %c1_14 = arith.constant 1 : index
    %c0_15 = arith.constant 0 : index
    %c0_16 = arith.constant 0 : index
    %12 = vector.load %arg5[%c0_13, %c1_14, %c0_15, %c0_16] : memref<1x2x1x128xf32, #tpu.memory_space<vmem>>, vector<1x1x1x128xf32>
    %13 = vector.shape_cast %12 : vector<1x1x1x128xf32> to vector<1x128xf32>
    %cst = arith.constant 0.000000e+00 : f32
    %14 = vector.broadcast %cst : f32 to vector<8x128xf32>
    %cst_17 = arith.constant 0.000000e+00 : f32
    %15 = vector.broadcast %cst_17 : f32 to vector<8x128xf32>
    %16 = arith.truncf %14 : vector<8x128xf32> to vector<8x128xbf16>
    %cst_18 = arith.constant dense<0.000000e+00> : vector<8x384xf32>
    %17 = tpu.matmul %16, %7, %cst_18 {dimension_numbers = #tpu.dot_dimension_numbers<[1], [0], [0], [1], [0, 0, 1, 1], [], []>} : vector<8x128xbf16>, vector<128x384xbf16>, vector<8x384xf32> -> vector<8x384xf32>
    %18 = arith.truncf %15 : vector<8x128xf32> to vector<8x128xbf16>
    %cst_19 = arith.constant dense<0.000000e+00> : vector<8x384xf32>
    %19 = tpu.matmul %18, %9, %cst_19 {dimension_numbers = #tpu.dot_dimension_numbers<[1], [0], [0], [1], [0, 0, 1, 1], [], []>} : vector<8x128xbf16>, vector<128x384xbf16>, vector<8x384xf32> -> vector<8x384xf32>
    %c0_20 = arith.constant 0 : index
    %c0_21 = arith.constant 0 : index
    %c0_22 = arith.constant 0 : index
    %20 = vector.load %arg11[%c0_20, %c0_21, %c0_22] : memref<8x8x768xf32, #tpu.memory_space<vmem>>, vector<1x8x384xf32>
    %21 = vector.shape_cast %20 : vector<1x8x384xf32> to vector<8x384xf32>
    %22 = vector.extract_strided_slice %21 {offsets = [0, 0], sizes = [8, 128], strides = [1, 1]} : vector<8x384xf32> to vector<8x128xf32>
    %23 = vector.extract_strided_slice %17 {offsets = [0, 0], sizes = [8, 128], strides = [1, 1]} : vector<8x384xf32> to vector<8x128xf32>
    %24 = arith.addf %22, %23 : vector<8x128xf32>
    %25 = arith.negf %24 : vector<8x128xf32>
    %26 = math.exp %25 : vector<8x128xf32>
    %cst_23 = arith.constant 1.000000e+00 : f32
    %27 = vector.broadcast %cst_23 : f32 to vector<8x128xf32>
    %28 = arith.addf %27, %26 : vector<8x128xf32>
    %29 = arith.divf %27, %28 : vector<8x128xf32>
    %30 = vector.extract_strided_slice %21 {offsets = [0, 128], sizes = [8, 128], strides = [1, 1]} : vector<8x384xf32> to vector<8x128xf32>
    %31 = vector.extract_strided_slice %17 {offsets = [0, 128], sizes = [8, 128], strides = [1, 1]} : vector<8x384xf32> to vector<8x128xf32>
    %32 = arith.addf %30, %31 : vector<8x128xf32>
    %33 = arith.negf %32 : vector<8x128xf32>
    %34 = math.exp %33 : vector<8x128xf32>
    %cst_24 = arith.constant 1.000000e+00 : f32
    %35 = vector.broadcast %cst_24 : f32 to vector<8x128xf32>
    %36 = arith.addf %35, %34 : vector<8x128xf32>
    %37 = arith.divf %35, %36 : vector<8x128xf32>
    %38 = vector.extract_strided_slice %21 {offsets = [0, 256], sizes = [8, 128], strides = [1, 1]} : vector<8x384xf32> to vector<8x128xf32>
    %39 = vector.extract_strided_slice %17 {offsets = [0, 256], sizes = [8, 128], strides = [1, 1]} : vector<8x384xf32> to vector<8x128xf32>
    %40 = vector.broadcast %11 : vector<1x128xf32> to vector<8x128xf32>
    %41 = arith.addf %39, %40 : vector<8x128xf32>
    %42 = arith.mulf %29, %41 : vector<8x128xf32>
    %43 = arith.addf %38, %42 : vector<8x128xf32>
    %44 = math.tanh %43 : vector<8x128xf32>
    %cst_25 = arith.constant 1.000000e+00 : f32
    %45 = vector.broadcast %cst_25 : f32 to vector<8x128xf32>
    %46 = arith.subf %45, %37 : vector<8x128xf32>
    %47 = arith.mulf %46, %44 : vector<8x128xf32>
    %48 = arith.mulf %37, %14 : vector<8x128xf32>
    %49 = arith.addf %47, %48 : vector<8x128xf32>
    %c7 = arith.constant 7 : index
    %c0_26 = arith.constant 0 : index
    %c384 = arith.constant 384 : index
    %50 = vector.load %arg11[%c7, %c0_26, %c384] : memref<8x8x768xf32, #tpu.memory_space<vmem>>, vector<1x8x384xf32>
    %51 = vector.shape_cast %50 : vector<1x8x384xf32> to vector<8x384xf32>
    %52 = vector.extract_strided_slice %51 {offsets = [0, 0], sizes = [8, 128], strides = [1, 1]} : vector<8x384xf32> to vector<8x128xf32>
    %53 = vector.extract_strided_slice %19 {offsets = [0, 0], sizes = [8, 128], strides = [1, 1]} : vector<8x384xf32> to vector<8x128xf32>
    %54 = arith.addf %52, %53 : vector<8x128xf32>
    %55 = arith.negf %54 : vector<8x128xf32>
    %56 = math.exp %55 : vector<8x128xf32>
    %cst_27 = arith.constant 1.000000e+00 : f32
    %57 = vector.broadcast %cst_27 : f32 to vector<8x128xf32>
    %58 = arith.addf %57, %56 : vector<8x128xf32>
    %59 = arith.divf %57, %58 : vector<8x128xf32>
    %60 = vector.extract_strided_slice %51 {offsets = [0, 128], sizes = [8, 128], strides = [1, 1]} : vector<8x384xf32> to vector<8x128xf32>
    %61 = vector.extract_strided_slice %19 {offsets = [0, 128], sizes = [8, 128], strides = [1, 1]} : vector<8x384xf32> to vector<8x128xf32>
    %62 = arith.addf %60, %61 : vector<8x128xf32>
    %63 = arith.negf %62 : vector<8x128xf32>
    %64 = math.exp %63 : vector<8x128xf32>
    %cst_28 = arith.constant 1.000000e+00 : f32
    %65 = vector.broadcast %cst_28 : f32 to vector<8x128xf32>
    %66 = arith.addf %65, %64 : vector<8x128xf32>
    %67 = arith.divf %65, %66 : vector<8x128xf32>
    %68 = vector.extract_strided_slice %51 {offsets = [0, 256], sizes = [8, 128], strides = [1, 1]} : vector<8x384xf32> to vector<8x128xf32>
    %69 = vector.extract_strided_slice %19 {offsets = [0, 256], sizes = [8, 128], strides = [1, 1]} : vector<8x384xf32> to vector<8x128xf32>
    %70 = vector.broadcast %13 : vector<1x128xf32> to vector<8x128xf32>
    %71 = arith.addf %69, %70 : vector<8x128xf32>
    %72 = arith.mulf %59, %71 : vector<8x128xf32>
    %73 = arith.addf %68, %72 : vector<8x128xf32>
    %74 = math.tanh %73 : vector<8x128xf32>
    %cst_29 = arith.constant 1.000000e+00 : f32
    %75 = vector.broadcast %cst_29 : f32 to vector<8x128xf32>
    %76 = arith.subf %75, %67 : vector<8x128xf32>
    %77 = arith.mulf %76, %74 : vector<8x128xf32>
    %78 = arith.mulf %67, %15 : vector<8x128xf32>
    %79 = arith.addf %77, %78 : vector<8x128xf32>
    %c0_30 = arith.constant 0 : index
    %c0_31 = arith.constant 0 : index
    %c0_32 = arith.constant 0 : index
    %80 = vector.load %arg9[%c0_30, %c0_31, %c0_32] : memref<8x8x128xf32, #tpu.memory_space<vmem>>, vector<1x8x128xf32>
    %81 = vector.shape_cast %80 : vector<1x8x128xf32> to vector<8x128xf32>
    %82 = vector.shape_cast %49 : vector<8x128xf32> to vector<1x8x128xf32>
    tpu.vector_store %arg9[%c0_30, %c0_31, %c0_32], %82 {strides = array<i32>} : memref<8x8x128xf32, #tpu.memory_space<vmem>>, vector<1x8x128xf32>,
    %c7_33 = arith.constant 7 : index
    %c0_34 = arith.constant 0 : index
    %c0_35 = arith.constant 0 : index
    %83 = vector.load %arg10[%c7_33, %c0_34, %c0_35] : memref<8x8x128xf32, #tpu.memory_space<vmem>>, vector<1x8x128xf32>
    %84 = vector.shape_cast %83 : vector<1x8x128xf32> to vector<8x128xf32>
    %85 = vector.shape_cast %79 : vector<8x128xf32> to vector<1x8x128xf32>
    tpu.vector_store %arg10[%c7_33, %c0_34, %c0_35], %85 {strides = array<i32>} : memref<8x8x128xf32, #tpu.memory_space<vmem>>, vector<1x8x128xf32>,
    %86 = arith.truncf %49 : vector<8x128xf32> to vector<8x128xbf16>
    %cst_36 = arith.constant dense<0.000000e+00> : vector<8x384xf32>
    %87 = tpu.matmul %86, %7, %cst_36 {dimension_numbers = #tpu.dot_dimension_numbers<[1], [0], [0], [1], [0, 0, 1, 1], [], []>} : vector<8x128xbf16>, vector<128x384xbf16>, vector<8x384xf32> -> vector<8x384xf32>
    %88 = arith.truncf %79 : vector<8x128xf32> to vector<8x128xbf16>
    %cst_37 = arith.constant dense<0.000000e+00> : vector<8x384xf32>
    %89 = tpu.matmul %88, %9, %cst_37 {dimension_numbers = #tpu.dot_dimension_numbers<[1], [0], [0], [1], [0, 0, 1, 1], [], []>} : vector<8x128xbf16>, vector<128x384xbf16>, vector<8x384xf32> -> vector<8x384xf32>
    %c1_38 = arith.constant 1 : index
    %c0_39 = arith.constant 0 : index
    %c0_40 = arith.constant 0 : index
    %90 = vector.load %arg11[%c1_38, %c0_39, %c0_40] : memref<8x8x768xf32, #tpu.memory_space<vmem>>, vector<1x8x384xf32>
    %91 = vector.shape_cast %90 : vector<1x8x384xf32> to vector<8x384xf32>
    %92 = vector.extract_strided_slice %91 {offsets = [0, 0], sizes = [8, 128], strides = [1, 1]} : vector<8x384xf32> to vector<8x128xf32>
    %93 = vector.extract_strided_slice %87 {offsets = [0, 0], sizes = [8, 128], strides = [1, 1]} : vector<8x384xf32> to vector<8x128xf32>
    %94 = arith.addf %92, %93 : vector<8x128xf32>
    %95 = arith.negf %94 : vector<8x128xf32>
    %96 = math.exp %95 : vector<8x128xf32>
    %cst_41 = arith.constant 1.000000e+00 : f32
    %97 = vector.broadcast %cst_41 : f32 to vector<8x128xf32>
    %98 = arith.addf %97, %96 : vector<8x128xf32>
    %99 = arith.divf %97, %98 : vector<8x128xf32>
    %100 = vector.extract_strided_slice %91 {offsets = [0, 128], sizes = [8, 128], strides = [1, 1]} : vector<8x384xf32> to vector<8x128xf32>
    %101 = vector.extract_strided_slice %87 {offsets = [0, 128], sizes = [8, 128], strides = [1, 1]} : vector<8x384xf32> to vector<8x128xf32>
    %102 = arith.addf %100, %101 : vector<8x128xf32>
    %103 = arith.negf %102 : vector<8x128xf32>
    %104 = math.exp %103 : vector<8x128xf32>
    %cst_42 = arith.constant 1.000000e+00 : f32
    %105 = vector.broadcast %cst_42 : f32 to vector<8x128xf32>
    %106 = arith.addf %105, %104 : vector<8x128xf32>
    %107 = arith.divf %105, %106 : vector<8x128xf32>
    %108 = vector.extract_strided_slice %91 {offsets = [0, 256], sizes = [8, 128], strides = [1, 1]} : vector<8x384xf32> to vector<8x128xf32>
    %109 = vector.extract_strided_slice %87 {offsets = [0, 256], sizes = [8, 128], strides = [1, 1]} : vector<8x384xf32> to vector<8x128xf32>
    %110 = vector.broadcast %11 : vector<1x128xf32> to vector<8x128xf32>
    %111 = arith.addf %109, %110 : vector<8x128xf32>
    %112 = arith.mulf %99, %111 : vector<8x128xf32>
    %113 = arith.addf %108, %112 : vector<8x128xf32>
    %114 = math.tanh %113 : vector<8x128xf32>
    %cst_43 = arith.constant 1.000000e+00 : f32
    %115 = vector.broadcast %cst_43 : f32 to vector<8x128xf32>
    %116 = arith.subf %115, %107 : vector<8x128xf32>
    %117 = arith.mulf %116, %114 : vector<8x128xf32>
    %118 = arith.mulf %107, %49 : vector<8x128xf32>
    %119 = arith.addf %117, %118 : vector<8x128xf32>
    %c6 = arith.constant 6 : index
    %c0_44 = arith.constant 0 : index
    %c384_45 = arith.constant 384 : index
    %120 = vector.load %arg11[%c6, %c0_44, %c384_45] : memref<8x8x768xf32, #tpu.memory_space<vmem>>, vector<1x8x384xf32>
    %121 = vector.shape_cast %120 : vector<1x8x384xf32> to vector<8x384xf32>
    %122 = vector.extract_strided_slice %121 {offsets = [0, 0], sizes = [8, 128], strides = [1, 1]} : vector<8x384xf32> to vector<8x128xf32>
    %123 = vector.extract_strided_slice %89 {offsets = [0, 0], sizes = [8, 128], strides = [1, 1]} : vector<8x384xf32> to vector<8x128xf32>
    %124 = arith.addf %122, %123 : vector<8x128xf32>
    %125 = arith.negf %124 : vector<8x128xf32>
    %126 = math.exp %125 : vector<8x128xf32>
    %cst_46 = arith.constant 1.000000e+00 : f32
    %127 = vector.broadcast %cst_46 : f32 to vector<8x128xf32>
    %128 = arith.addf %127, %126 : vector<8x128xf32>
    %129 = arith.divf %127, %128 : vector<8x128xf32>
    %130 = vector.extract_strided_slice %121 {offsets = [0, 128], sizes = [8, 128], strides = [1, 1]} : vector<8x384xf32> to vector<8x128xf32>
    %131 = vector.extract_strided_slice %89 {offsets = [0, 128], sizes = [8, 128], strides = [1, 1]} : vector<8x384xf32> to vector<8x128xf32>
    %132 = arith.addf %130, %131 : vector<8x128xf32>
    %133 = arith.negf %132 : vector<8x128xf32>
    %134 = math.exp %133 : vector<8x128xf32>
    %cst_47 = arith.constant 1.000000e+00 : f32
    %135 = vector.broadcast %cst_47 : f32 to vector<8x128xf32>
    %136 = arith.addf %135, %134 : vector<8x128xf32>
    %137 = arith.divf %135, %136 : vector<8x128xf32>
    %138 = vector.extract_strided_slice %121 {offsets = [0, 256], sizes = [8, 128], strides = [1, 1]} : vector<8x384xf32> to vector<8x128xf32>
    %139 = vector.extract_strided_slice %89 {offsets = [0, 256], sizes = [8, 128], strides = [1, 1]} : vector<8x384xf32> to vector<8x128xf32>
    %140 = vector.broadcast %13 : vector<1x128xf32> to vector<8x128xf32>
    %141 = arith.addf %139, %140 : vector<8x128xf32>
    %142 = arith.mulf %129, %141 : vector<8x128xf32>
    %143 = arith.addf %138, %142 : vector<8x128xf32>
    %144 = math.tanh %143 : vector<8x128xf32>
    %cst_48 = arith.constant 1.000000e+00 : f32
    %145 = vector.broadcast %cst_48 : f32 to vector<8x128xf32>
    %146 = arith.subf %145, %137 : vector<8x128xf32>
    %147 = arith.mulf %146, %144 : vector<8x128xf32>
    %148 = arith.mulf %137, %79 : vector<8x128xf32>
    %149 = arith.addf %147, %148 : vector<8x128xf32>
    %c1_49 = arith.constant 1 : index
    %c0_50 = arith.constant 0 : index
    %c0_51 = arith.constant 0 : index
    %150 = vector.load %arg9[%c1_49, %c0_50, %c0_51] : memref<8x8x128xf32, #tpu.memory_space<vmem>>, vector<1x8x128xf32>
    %151 = vector.shape_cast %150 : vector<1x8x128xf32> to vector<8x128xf32>
    %152 = vector.shape_cast %119 : vector<8x128xf32> to vector<1x8x128xf32>
    tpu.vector_store %arg9[%c1_49, %c0_50, %c0_51], %152 {strides = array<i32>} : memref<8x8x128xf32, #tpu.memory_space<vmem>>, vector<1x8x128xf32>,
    %c6_52 = arith.constant 6 : index
    %c0_53 = arith.constant 0 : index
    %c0_54 = arith.constant 0 : index
    %153 = vector.load %arg10[%c6_52, %c0_53, %c0_54] : memref<8x8x128xf32, #tpu.memory_space<vmem>>, vector<1x8x128xf32>
    %154 = vector.shape_cast %153 : vector<1x8x128xf32> to vector<8x128xf32>
    %155 = vector.shape_cast %149 : vector<8x128xf32> to vector<1x8x128xf32>
    tpu.vector_store %arg10[%c6_52, %c0_53, %c0_54], %155 {strides = array<i32>} : memref<8x8x128xf32, #tpu.memory_space<vmem>>, vector<1x8x128xf32>,
    %156 = arith.truncf %119 : vector<8x128xf32> to vector<8x128xbf16>
    %cst_55 = arith.constant dense<0.000000e+00> : vector<8x384xf32>
    %157 = tpu.matmul %156, %7, %cst_55 {dimension_numbers = #tpu.dot_dimension_numbers<[1], [0], [0], [1], [0, 0, 1, 1], [], []>} : vector<8x128xbf16>, vector<128x384xbf16>, vector<8x384xf32> -> vector<8x384xf32>
    %158 = arith.truncf %149 : vector<8x128xf32> to vector<8x128xbf16>
    %cst_56 = arith.constant dense<0.000000e+00> : vector<8x384xf32>
    %159 = tpu.matmul %158, %9, %cst_56 {dimension_numbers = #tpu.dot_dimension_numbers<[1], [0], [0], [1], [0, 0, 1, 1], [], []>} : vector<8x128xbf16>, vector<128x384xbf16>, vector<8x384xf32> -> vector<8x384xf32>
    %c2 = arith.constant 2 : index
    %c0_57 = arith.constant 0 : index
    %c0_58 = arith.constant 0 : index
    %160 = vector.load %arg11[%c2, %c0_57, %c0_58] : memref<8x8x768xf32, #tpu.memory_space<vmem>>, vector<1x8x384xf32>
    %161 = vector.shape_cast %160 : vector<1x8x384xf32> to vector<8x384xf32>
    %162 = vector.extract_strided_slice %161 {offsets = [0, 0], sizes = [8, 128], strides = [1, 1]} : vector<8x384xf32> to vector<8x128xf32>
    %163 = vector.extract_strided_slice %157 {offsets = [0, 0], sizes = [8, 128], strides = [1, 1]} : vector<8x384xf32> to vector<8x128xf32>
    %164 = arith.addf %162, %163 : vector<8x128xf32>
    %165 = arith.negf %164 : vector<8x128xf32>
    %166 = math.exp %165 : vector<8x128xf32>
    %cst_59 = arith.constant 1.000000e+00 : f32
    %167 = vector.broadcast %cst_59 : f32 to vector<8x128xf32>
    %168 = arith.addf %167, %166 : vector<8x128xf32>
    %169 = arith.divf %167, %168 : vector<8x128xf32>
    %170 = vector.extract_strided_slice %161 {offsets = [0, 128], sizes = [8, 128], strides = [1, 1]} : vector<8x384xf32> to vector<8x128xf32>
    %171 = vector.extract_strided_slice %157 {offsets = [0, 128], sizes = [8, 128], strides = [1, 1]} : vector<8x384xf32> to vector<8x128xf32>
    %172 = arith.addf %170, %171 : vector<8x128xf32>
    %173 = arith.negf %172 : vector<8x128xf32>
    %174 = math.exp %173 : vector<8x128xf32>
    %cst_60 = arith.constant 1.000000e+00 : f32
    %175 = vector.broadcast %cst_60 : f32 to vector<8x128xf32>
    %176 = arith.addf %175, %174 : vector<8x128xf32>
    %177 = arith.divf %175, %176 : vector<8x128xf32>
    %178 = vector.extract_strided_slice %161 {offsets = [0, 256], sizes = [8, 128], strides = [1, 1]} : vector<8x384xf32> to vector<8x128xf32>
    %179 = vector.extract_strided_slice %157 {offsets = [0, 256], sizes = [8, 128], strides = [1, 1]} : vector<8x384xf32> to vector<8x128xf32>
    %180 = vector.broadcast %11 : vector<1x128xf32> to vector<8x128xf32>
    %181 = arith.addf %179, %180 : vector<8x128xf32>
    %182 = arith.mulf %169, %181 : vector<8x128xf32>
    %183 = arith.addf %178, %182 : vector<8x128xf32>
    %184 = math.tanh %183 : vector<8x128xf32>
    %cst_61 = arith.constant 1.000000e+00 : f32
    %185 = vector.broadcast %cst_61 : f32 to vector<8x128xf32>
    %186 = arith.subf %185, %177 : vector<8x128xf32>
    %187 = arith.mulf %186, %184 : vector<8x128xf32>
    %188 = arith.mulf %177, %119 : vector<8x128xf32>
    %189 = arith.addf %187, %188 : vector<8x128xf32>
    %c5 = arith.constant 5 : index
    %c0_62 = arith.constant 0 : index
    %c384_63 = arith.constant 384 : index
    %190 = vector.load %arg11[%c5, %c0_62, %c384_63] : memref<8x8x768xf32, #tpu.memory_space<vmem>>, vector<1x8x384xf32>
    %191 = vector.shape_cast %190 : vector<1x8x384xf32> to vector<8x384xf32>
    %192 = vector.extract_strided_slice %191 {offsets = [0, 0], sizes = [8, 128], strides = [1, 1]} : vector<8x384xf32> to vector<8x128xf32>
    %193 = vector.extract_strided_slice %159 {offsets = [0, 0], sizes = [8, 128], strides = [1, 1]} : vector<8x384xf32> to vector<8x128xf32>
    %194 = arith.addf %192, %193 : vector<8x128xf32>
    %195 = arith.negf %194 : vector<8x128xf32>
    %196 = math.exp %195 : vector<8x128xf32>
    %cst_64 = arith.constant 1.000000e+00 : f32
    %197 = vector.broadcast %cst_64 : f32 to vector<8x128xf32>
    %198 = arith.addf %197, %196 : vector<8x128xf32>
    %199 = arith.divf %197, %198 : vector<8x128xf32>
    %200 = vector.extract_strided_slice %191 {offsets = [0, 128], sizes = [8, 128], strides = [1, 1]} : vector<8x384xf32> to vector<8x128xf32>
    %201 = vector.extract_strided_slice %159 {offsets = [0, 128], sizes = [8, 128], strides = [1, 1]} : vector<8x384xf32> to vector<8x128xf32>
    %202 = arith.addf %200, %201 : vector<8x128xf32>
    %203 = arith.negf %202 : vector<8x128xf32>
    %204 = math.exp %203 : vector<8x128xf32>
    %cst_65 = arith.constant 1.000000e+00 : f32
    %205 = vector.broadcast %cst_65 : f32 to vector<8x128xf32>
    %206 = arith.addf %205, %204 : vector<8x128xf32>
    %207 = arith.divf %205, %206 : vector<8x128xf32>
    %208 = vector.extract_strided_slice %191 {offsets = [0, 256], sizes = [8, 128], strides = [1, 1]} : vector<8x384xf32> to vector<8x128xf32>
    %209 = vector.extract_strided_slice %159 {offsets = [0, 256], sizes = [8, 128], strides = [1, 1]} : vector<8x384xf32> to vector<8x128xf32>
    %210 = vector.broadcast %13 : vector<1x128xf32> to vector<8x128xf32>
    %211 = arith.addf %209, %210 : vector<8x128xf32>
    %212 = arith.mulf %199, %211 : vector<8x128xf32>
    %213 = arith.addf %208, %212 : vector<8x128xf32>
    %214 = math.tanh %213 : vector<8x128xf32>
    %cst_66 = arith.constant 1.000000e+00 : f32
    %215 = vector.broadcast %cst_66 : f32 to vector<8x128xf32>
    %216 = arith.subf %215, %207 : vector<8x128xf32>
    %217 = arith.mulf %216, %214 : vector<8x128xf32>
    %218 = arith.mulf %207, %149 : vector<8x128xf32>
    %219 = arith.addf %217, %218 : vector<8x128xf32>
    %c2_67 = arith.constant 2 : index
    %c0_68 = arith.constant 0 : index
    %c0_69 = arith.constant 0 : index
    %220 = vector.load %arg9[%c2_67, %c0_68, %c0_69] : memref<8x8x128xf32, #tpu.memory_space<vmem>>, vector<1x8x128xf32>
    %221 = vector.shape_cast %220 : vector<1x8x128xf32> to vector<8x128xf32>
    %222 = vector.shape_cast %189 : vector<8x128xf32> to vector<1x8x128xf32>
    tpu.vector_store %arg9[%c2_67, %c0_68, %c0_69], %222 {strides = array<i32>} : memref<8x8x128xf32, #tpu.memory_space<vmem>>, vector<1x8x128xf32>,
    %c5_70 = arith.constant 5 : index
    %c0_71 = arith.constant 0 : index
    %c0_72 = arith.constant 0 : index
    %223 = vector.load %arg10[%c5_70, %c0_71, %c0_72] : memref<8x8x128xf32, #tpu.memory_space<vmem>>, vector<1x8x128xf32>
    %224 = vector.shape_cast %223 : vector<1x8x128xf32> to vector<8x128xf32>
    %225 = vector.shape_cast %219 : vector<8x128xf32> to vector<1x8x128xf32>
    tpu.vector_store %arg10[%c5_70, %c0_71, %c0_72], %225 {strides = array<i32>} : memref<8x8x128xf32, #tpu.memory_space<vmem>>, vector<1x8x128xf32>,
    %226 = arith.truncf %189 : vector<8x128xf32> to vector<8x128xbf16>
    %cst_73 = arith.constant dense<0.000000e+00> : vector<8x384xf32>
    %227 = tpu.matmul %226, %7, %cst_73 {dimension_numbers = #tpu.dot_dimension_numbers<[1], [0], [0], [1], [0, 0, 1, 1], [], []>} : vector<8x128xbf16>, vector<128x384xbf16>, vector<8x384xf32> -> vector<8x384xf32>
    %228 = arith.truncf %219 : vector<8x128xf32> to vector<8x128xbf16>
    %cst_74 = arith.constant dense<0.000000e+00> : vector<8x384xf32>
    %229 = tpu.matmul %228, %9, %cst_74 {dimension_numbers = #tpu.dot_dimension_numbers<[1], [0], [0], [1], [0, 0, 1, 1], [], []>} : vector<8x128xbf16>, vector<128x384xbf16>, vector<8x384xf32> -> vector<8x384xf32>
    %c3 = arith.constant 3 : index
    %c0_75 = arith.constant 0 : index
    %c0_76 = arith.constant 0 : index
    %230 = vector.load %arg11[%c3, %c0_75, %c0_76] : memref<8x8x768xf32, #tpu.memory_space<vmem>>, vector<1x8x384xf32>
    %231 = vector.shape_cast %230 : vector<1x8x384xf32> to vector<8x384xf32>
    %232 = vector.extract_strided_slice %231 {offsets = [0, 0], sizes = [8, 128], strides = [1, 1]} : vector<8x384xf32> to vector<8x128xf32>
    %233 = vector.extract_strided_slice %227 {offsets = [0, 0], sizes = [8, 128], strides = [1, 1]} : vector<8x384xf32> to vector<8x128xf32>
    %234 = arith.addf %232, %233 : vector<8x128xf32>
    %235 = arith.negf %234 : vector<8x128xf32>
    %236 = math.exp %235 : vector<8x128xf32>
    %cst_77 = arith.constant 1.000000e+00 : f32
    %237 = vector.broadcast %cst_77 : f32 to vector<8x128xf32>
    %238 = arith.addf %237, %236 : vector<8x128xf32>
    %239 = arith.divf %237, %238 : vector<8x128xf32>
    %240 = vector.extract_strided_slice %231 {offsets = [0, 128], sizes = [8, 128], strides = [1, 1]} : vector<8x384xf32> to vector<8x128xf32>
    %241 = vector.extract_strided_slice %227 {offsets = [0, 128], sizes = [8, 128], strides = [1, 1]} : vector<8x384xf32> to vector<8x128xf32>
    %242 = arith.addf %240, %241 : vector<8x128xf32>
    %243 = arith.negf %242 : vector<8x128xf32>
    %244 = math.exp %243 : vector<8x128xf32>
    %cst_78 = arith.constant 1.000000e+00 : f32
    %245 = vector.broadcast %cst_78 : f32 to vector<8x128xf32>
    %246 = arith.addf %245, %244 : vector<8x128xf32>
    %247 = arith.divf %245, %246 : vector<8x128xf32>
    %248 = vector.extract_strided_slice %231 {offsets = [0, 256], sizes = [8, 128], strides = [1, 1]} : vector<8x384xf32> to vector<8x128xf32>
    %249 = vector.extract_strided_slice %227 {offsets = [0, 256], sizes = [8, 128], strides = [1, 1]} : vector<8x384xf32> to vector<8x128xf32>
    %250 = vector.broadcast %11 : vector<1x128xf32> to vector<8x128xf32>
    %251 = arith.addf %249, %250 : vector<8x128xf32>
    %252 = arith.mulf %239, %251 : vector<8x128xf32>
    %253 = arith.addf %248, %252 : vector<8x128xf32>
    %254 = math.tanh %253 : vector<8x128xf32>
    %cst_79 = arith.constant 1.000000e+00 : f32
    %255 = vector.broadcast %cst_79 : f32 to vector<8x128xf32>
    %256 = arith.subf %255, %247 : vector<8x128xf32>
    %257 = arith.mulf %256, %254 : vector<8x128xf32>
    %258 = arith.mulf %247, %189 : vector<8x128xf32>
    %259 = arith.addf %257, %258 : vector<8x128xf32>
    %c4 = arith.constant 4 : index
    %c0_80 = arith.constant 0 : index
    %c384_81 = arith.constant 384 : index
    %260 = vector.load %arg11[%c4, %c0_80, %c384_81] : memref<8x8x768xf32, #tpu.memory_space<vmem>>, vector<1x8x384xf32>
    %261 = vector.shape_cast %260 : vector<1x8x384xf32> to vector<8x384xf32>
    %262 = vector.extract_strided_slice %261 {offsets = [0, 0], sizes = [8, 128], strides = [1, 1]} : vector<8x384xf32> to vector<8x128xf32>
    %263 = vector.extract_strided_slice %229 {offsets = [0, 0], sizes = [8, 128], strides = [1, 1]} : vector<8x384xf32> to vector<8x128xf32>
    %264 = arith.addf %262, %263 : vector<8x128xf32>
    %265 = arith.negf %264 : vector<8x128xf32>
    %266 = math.exp %265 : vector<8x128xf32>
    %cst_82 = arith.constant 1.000000e+00 : f32
    %267 = vector.broadcast %cst_82 : f32 to vector<8x128xf32>
    %268 = arith.addf %267, %266 : vector<8x128xf32>
    %269 = arith.divf %267, %268 : vector<8x128xf32>
    %270 = vector.extract_strided_slice %261 {offsets = [0, 128], sizes = [8, 128], strides = [1, 1]} : vector<8x384xf32> to vector<8x128xf32>
    %271 = vector.extract_strided_slice %229 {offsets = [0, 128], sizes = [8, 128], strides = [1, 1]} : vector<8x384xf32> to vector<8x128xf32>
    %272 = arith.addf %270, %271 : vector<8x128xf32>
    %273 = arith.negf %272 : vector<8x128xf32>
    %274 = math.exp %273 : vector<8x128xf32>
    %cst_83 = arith.constant 1.000000e+00 : f32
    %275 = vector.broadcast %cst_83 : f32 to vector<8x128xf32>
    %276 = arith.addf %275, %274 : vector<8x128xf32>
    %277 = arith.divf %275, %276 : vector<8x128xf32>
    %278 = vector.extract_strided_slice %261 {offsets = [0, 256], sizes = [8, 128], strides = [1, 1]} : vector<8x384xf32> to vector<8x128xf32>
    %279 = vector.extract_strided_slice %229 {offsets = [0, 256], sizes = [8, 128], strides = [1, 1]} : vector<8x384xf32> to vector<8x128xf32>
    %280 = vector.broadcast %13 : vector<1x128xf32> to vector<8x128xf32>
    %281 = arith.addf %279, %280 : vector<8x128xf32>
    %282 = arith.mulf %269, %281 : vector<8x128xf32>
    %283 = arith.addf %278, %282 : vector<8x128xf32>
    %284 = math.tanh %283 : vector<8x128xf32>
    %cst_84 = arith.constant 1.000000e+00 : f32
    %285 = vector.broadcast %cst_84 : f32 to vector<8x128xf32>
    %286 = arith.subf %285, %277 : vector<8x128xf32>
    %287 = arith.mulf %286, %284 : vector<8x128xf32>
    %288 = arith.mulf %277, %219 : vector<8x128xf32>
    %289 = arith.addf %287, %288 : vector<8x128xf32>
    %c3_85 = arith.constant 3 : index
    %c0_86 = arith.constant 0 : index
    %c0_87 = arith.constant 0 : index
    %290 = vector.load %arg9[%c3_85, %c0_86, %c0_87] : memref<8x8x128xf32, #tpu.memory_space<vmem>>, vector<1x8x128xf32>
    %291 = vector.shape_cast %290 : vector<1x8x128xf32> to vector<8x128xf32>
    %292 = vector.shape_cast %259 : vector<8x128xf32> to vector<1x8x128xf32>
    tpu.vector_store %arg9[%c3_85, %c0_86, %c0_87], %292 {strides = array<i32>} : memref<8x8x128xf32, #tpu.memory_space<vmem>>, vector<1x8x128xf32>,
    %c4_88 = arith.constant 4 : index
    %c0_89 = arith.constant 0 : index
    %c0_90 = arith.constant 0 : index
    %293 = vector.load %arg10[%c4_88, %c0_89, %c0_90] : memref<8x8x128xf32, #tpu.memory_space<vmem>>, vector<1x8x128xf32>
    %294 = vector.shape_cast %293 : vector<1x8x128xf32> to vector<8x128xf32>
    %295 = vector.shape_cast %289 : vector<8x128xf32> to vector<1x8x128xf32>
    tpu.vector_store %arg10[%c4_88, %c0_89, %c0_90], %295 {strides = array<i32>} : memref<8x8x128xf32, #tpu.memory_space<vmem>>, vector<1x8x128xf32>,
    %296 = arith.truncf %259 : vector<8x128xf32> to vector<8x128xbf16>
    %cst_91 = arith.constant dense<0.000000e+00> : vector<8x384xf32>
    %297 = tpu.matmul %296, %7, %cst_91 {dimension_numbers = #tpu.dot_dimension_numbers<[1], [0], [0], [1], [0, 0, 1, 1], [], []>} : vector<8x128xbf16>, vector<128x384xbf16>, vector<8x384xf32> -> vector<8x384xf32>
    %298 = arith.truncf %289 : vector<8x128xf32> to vector<8x128xbf16>
    %cst_92 = arith.constant dense<0.000000e+00> : vector<8x384xf32>
    %299 = tpu.matmul %298, %9, %cst_92 {dimension_numbers = #tpu.dot_dimension_numbers<[1], [0], [0], [1], [0, 0, 1, 1], [], []>} : vector<8x128xbf16>, vector<128x384xbf16>, vector<8x384xf32> -> vector<8x384xf32>
    %c4_93 = arith.constant 4 : index
    %c0_94 = arith.constant 0 : index
    %c0_95 = arith.constant 0 : index
    %300 = vector.load %arg11[%c4_93, %c0_94, %c0_95] : memref<8x8x768xf32, #tpu.memory_space<vmem>>, vector<1x8x384xf32>
    %301 = vector.shape_cast %300 : vector<1x8x384xf32> to vector<8x384xf32>
    %302 = vector.extract_strided_slice %301 {offsets = [0, 0], sizes = [8, 128], strides = [1, 1]} : vector<8x384xf32> to vector<8x128xf32>
    %303 = vector.extract_strided_slice %297 {offsets = [0, 0], sizes = [8, 128], strides = [1, 1]} : vector<8x384xf32> to vector<8x128xf32>
    %304 = arith.addf %302, %303 : vector<8x128xf32>
    %305 = arith.negf %304 : vector<8x128xf32>
    %306 = math.exp %305 : vector<8x128xf32>
    %cst_96 = arith.constant 1.000000e+00 : f32
    %307 = vector.broadcast %cst_96 : f32 to vector<8x128xf32>
    %308 = arith.addf %307, %306 : vector<8x128xf32>
    %309 = arith.divf %307, %308 : vector<8x128xf32>
    %310 = vector.extract_strided_slice %301 {offsets = [0, 128], sizes = [8, 128], strides = [1, 1]} : vector<8x384xf32> to vector<8x128xf32>
    %311 = vector.extract_strided_slice %297 {offsets = [0, 128], sizes = [8, 128], strides = [1, 1]} : vector<8x384xf32> to vector<8x128xf32>
    %312 = arith.addf %310, %311 : vector<8x128xf32>
    %313 = arith.negf %312 : vector<8x128xf32>
    %314 = math.exp %313 : vector<8x128xf32>
    %cst_97 = arith.constant 1.000000e+00 : f32
    %315 = vector.broadcast %cst_97 : f32 to vector<8x128xf32>
    %316 = arith.addf %315, %314 : vector<8x128xf32>
    %317 = arith.divf %315, %316 : vector<8x128xf32>
    %318 = vector.extract_strided_slice %301 {offsets = [0, 256], sizes = [8, 128], strides = [1, 1]} : vector<8x384xf32> to vector<8x128xf32>
    %319 = vector.extract_strided_slice %297 {offsets = [0, 256], sizes = [8, 128], strides = [1, 1]} : vector<8x384xf32> to vector<8x128xf32>
    %320 = vector.broadcast %11 : vector<1x128xf32> to vector<8x128xf32>
    %321 = arith.addf %319, %320 : vector<8x128xf32>
    %322 = arith.mulf %309, %321 : vector<8x128xf32>
    %323 = arith.addf %318, %322 : vector<8x128xf32>
    %324 = math.tanh %323 : vector<8x128xf32>
    %cst_98 = arith.constant 1.000000e+00 : f32
    %325 = vector.broadcast %cst_98 : f32 to vector<8x128xf32>
    %326 = arith.subf %325, %317 : vector<8x128xf32>
    %327 = arith.mulf %326, %324 : vector<8x128xf32>
    %328 = arith.mulf %317, %259 : vector<8x128xf32>
    %329 = arith.addf %327, %328 : vector<8x128xf32>
    %c3_99 = arith.constant 3 : index
    %c0_100 = arith.constant 0 : index
    %c384_101 = arith.constant 384 : index
    %330 = vector.load %arg11[%c3_99, %c0_100, %c384_101] : memref<8x8x768xf32, #tpu.memory_space<vmem>>, vector<1x8x384xf32>
    %331 = vector.shape_cast %330 : vector<1x8x384xf32> to vector<8x384xf32>
    %332 = vector.extract_strided_slice %331 {offsets = [0, 0], sizes = [8, 128], strides = [1, 1]} : vector<8x384xf32> to vector<8x128xf32>
    %333 = vector.extract_strided_slice %299 {offsets = [0, 0], sizes = [8, 128], strides = [1, 1]} : vector<8x384xf32> to vector<8x128xf32>
    %334 = arith.addf %332, %333 : vector<8x128xf32>
    %335 = arith.negf %334 : vector<8x128xf32>
    %336 = math.exp %335 : vector<8x128xf32>
    %cst_102 = arith.constant 1.000000e+00 : f32
    %337 = vector.broadcast %cst_102 : f32 to vector<8x128xf32>
    %338 = arith.addf %337, %336 : vector<8x128xf32>
    %339 = arith.divf %337, %338 : vector<8x128xf32>
    %340 = vector.extract_strided_slice %331 {offsets = [0, 128], sizes = [8, 128], strides = [1, 1]} : vector<8x384xf32> to vector<8x128xf32>
    %341 = vector.extract_strided_slice %299 {offsets = [0, 128], sizes = [8, 128], strides = [1, 1]} : vector<8x384xf32> to vector<8x128xf32>
    %342 = arith.addf %340, %341 : vector<8x128xf32>
    %343 = arith.negf %342 : vector<8x128xf32>
    %344 = math.exp %343 : vector<8x128xf32>
    %cst_103 = arith.constant 1.000000e+00 : f32
    %345 = vector.broadcast %cst_103 : f32 to vector<8x128xf32>
    %346 = arith.addf %345, %344 : vector<8x128xf32>
    %347 = arith.divf %345, %346 : vector<8x128xf32>
    %348 = vector.extract_strided_slice %331 {offsets = [0, 256], sizes = [8, 128], strides = [1, 1]} : vector<8x384xf32> to vector<8x128xf32>
    %349 = vector.extract_strided_slice %299 {offsets = [0, 256], sizes = [8, 128], strides = [1, 1]} : vector<8x384xf32> to vector<8x128xf32>
    %350 = vector.broadcast %13 : vector<1x128xf32> to vector<8x128xf32>
    %351 = arith.addf %349, %350 : vector<8x128xf32>
    %352 = arith.mulf %339, %351 : vector<8x128xf32>
    %353 = arith.addf %348, %352 : vector<8x128xf32>
    %354 = math.tanh %353 : vector<8x128xf32>
    %cst_104 = arith.constant 1.000000e+00 : f32
    %355 = vector.broadcast %cst_104 : f32 to vector<8x128xf32>
    %356 = arith.subf %355, %347 : vector<8x128xf32>
    %357 = arith.mulf %356, %354 : vector<8x128xf32>
    %358 = arith.mulf %347, %289 : vector<8x128xf32>
    %359 = arith.addf %357, %358 : vector<8x128xf32>
    %c4_105 = arith.constant 4 : index
    %c0_106 = arith.constant 0 : index
    %c0_107 = arith.constant 0 : index
    %360 = vector.load %arg9[%c4_105, %c0_106, %c0_107] : memref<8x8x128xf32, #tpu.memory_space<vmem>>, vector<1x8x128xf32>
    %361 = vector.shape_cast %360 : vector<1x8x128xf32> to vector<8x128xf32>
    %362 = vector.shape_cast %329 : vector<8x128xf32> to vector<1x8x128xf32>
    tpu.vector_store %arg9[%c4_105, %c0_106, %c0_107], %362 {strides = array<i32>} : memref<8x8x128xf32, #tpu.memory_space<vmem>>, vector<1x8x128xf32>,
    %c3_108 = arith.constant 3 : index
    %c0_109 = arith.constant 0 : index
    %c0_110 = arith.constant 0 : index
    %363 = vector.load %arg10[%c3_108, %c0_109, %c0_110] : memref<8x8x128xf32, #tpu.memory_space<vmem>>, vector<1x8x128xf32>
    %364 = vector.shape_cast %363 : vector<1x8x128xf32> to vector<8x128xf32>
    %365 = vector.shape_cast %359 : vector<8x128xf32> to vector<1x8x128xf32>
    tpu.vector_store %arg10[%c3_108, %c0_109, %c0_110], %365 {strides = array<i32>} : memref<8x8x128xf32, #tpu.memory_space<vmem>>, vector<1x8x128xf32>,
    %366 = arith.truncf %329 : vector<8x128xf32> to vector<8x128xbf16>
    %cst_111 = arith.constant dense<0.000000e+00> : vector<8x384xf32>
    %367 = tpu.matmul %366, %7, %cst_111 {dimension_numbers = #tpu.dot_dimension_numbers<[1], [0], [0], [1], [0, 0, 1, 1], [], []>} : vector<8x128xbf16>, vector<128x384xbf16>, vector<8x384xf32> -> vector<8x384xf32>
    %368 = arith.truncf %359 : vector<8x128xf32> to vector<8x128xbf16>
    %cst_112 = arith.constant dense<0.000000e+00> : vector<8x384xf32>
    %369 = tpu.matmul %368, %9, %cst_112 {dimension_numbers = #tpu.dot_dimension_numbers<[1], [0], [0], [1], [0, 0, 1, 1], [], []>} : vector<8x128xbf16>, vector<128x384xbf16>, vector<8x384xf32> -> vector<8x384xf32>
    %c5_113 = arith.constant 5 : index
    %c0_114 = arith.constant 0 : index
    %c0_115 = arith.constant 0 : index
    %370 = vector.load %arg11[%c5_113, %c0_114, %c0_115] : memref<8x8x768xf32, #tpu.memory_space<vmem>>, vector<1x8x384xf32>
    %371 = vector.shape_cast %370 : vector<1x8x384xf32> to vector<8x384xf32>
    %372 = vector.extract_strided_slice %371 {offsets = [0, 0], sizes = [8, 128], strides = [1, 1]} : vector<8x384xf32> to vector<8x128xf32>
    %373 = vector.extract_strided_slice %367 {offsets = [0, 0], sizes = [8, 128], strides = [1, 1]} : vector<8x384xf32> to vector<8x128xf32>
    %374 = arith.addf %372, %373 : vector<8x128xf32>
    %375 = arith.negf %374 : vector<8x128xf32>
    %376 = math.exp %375 : vector<8x128xf32>
    %cst_116 = arith.constant 1.000000e+00 : f32
    %377 = vector.broadcast %cst_116 : f32 to vector<8x128xf32>
    %378 = arith.addf %377, %376 : vector<8x128xf32>
    %379 = arith.divf %377, %378 : vector<8x128xf32>
    %380 = vector.extract_strided_slice %371 {offsets = [0, 128], sizes = [8, 128], strides = [1, 1]} : vector<8x384xf32> to vector<8x128xf32>
    %381 = vector.extract_strided_slice %367 {offsets = [0, 128], sizes = [8, 128], strides = [1, 1]} : vector<8x384xf32> to vector<8x128xf32>
    %382 = arith.addf %380, %381 : vector<8x128xf32>
    %383 = arith.negf %382 : vector<8x128xf32>
    %384 = math.exp %383 : vector<8x128xf32>
    %cst_117 = arith.constant 1.000000e+00 : f32
    %385 = vector.broadcast %cst_117 : f32 to vector<8x128xf32>
    %386 = arith.addf %385, %384 : vector<8x128xf32>
    %387 = arith.divf %385, %386 : vector<8x128xf32>
    %388 = vector.extract_strided_slice %371 {offsets = [0, 256], sizes = [8, 128], strides = [1, 1]} : vector<8x384xf32> to vector<8x128xf32>
    %389 = vector.extract_strided_slice %367 {offsets = [0, 256], sizes = [8, 128], strides = [1, 1]} : vector<8x384xf32> to vector<8x128xf32>
    %390 = vector.broadcast %11 : vector<1x128xf32> to vector<8x128xf32>
    %391 = arith.addf %389, %390 : vector<8x128xf32>
    %392 = arith.mulf %379, %391 : vector<8x128xf32>
    %393 = arith.addf %388, %392 : vector<8x128xf32>
    %394 = math.tanh %393 : vector<8x128xf32>
    %cst_118 = arith.constant 1.000000e+00 : f32
    %395 = vector.broadcast %cst_118 : f32 to vector<8x128xf32>
    %396 = arith.subf %395, %387 : vector<8x128xf32>
    %397 = arith.mulf %396, %394 : vector<8x128xf32>
    %398 = arith.mulf %387, %329 : vector<8x128xf32>
    %399 = arith.addf %397, %398 : vector<8x128xf32>
    %c2_119 = arith.constant 2 : index
    %c0_120 = arith.constant 0 : index
    %c384_121 = arith.constant 384 : index
    %400 = vector.load %arg11[%c2_119, %c0_120, %c384_121] : memref<8x8x768xf32, #tpu.memory_space<vmem>>, vector<1x8x384xf32>
    %401 = vector.shape_cast %400 : vector<1x8x384xf32> to vector<8x384xf32>
    %402 = vector.extract_strided_slice %401 {offsets = [0, 0], sizes = [8, 128], strides = [1, 1]} : vector<8x384xf32> to vector<8x128xf32>
    %403 = vector.extract_strided_slice %369 {offsets = [0, 0], sizes = [8, 128], strides = [1, 1]} : vector<8x384xf32> to vector<8x128xf32>
    %404 = arith.addf %402, %403 : vector<8x128xf32>
    %405 = arith.negf %404 : vector<8x128xf32>
    %406 = math.exp %405 : vector<8x128xf32>
    %cst_122 = arith.constant 1.000000e+00 : f32
    %407 = vector.broadcast %cst_122 : f32 to vector<8x128xf32>
    %408 = arith.addf %407, %406 : vector<8x128xf32>
    %409 = arith.divf %407, %408 : vector<8x128xf32>
    %410 = vector.extract_strided_slice %401 {offsets = [0, 128], sizes = [8, 128], strides = [1, 1]} : vector<8x384xf32> to vector<8x128xf32>
    %411 = vector.extract_strided_slice %369 {offsets = [0, 128], sizes = [8, 128], strides = [1, 1]} : vector<8x384xf32> to vector<8x128xf32>
    %412 = arith.addf %410, %411 : vector<8x128xf32>
    %413 = arith.negf %412 : vector<8x128xf32>
    %414 = math.exp %413 : vector<8x128xf32>
    %cst_123 = arith.constant 1.000000e+00 : f32
    %415 = vector.broadcast %cst_123 : f32 to vector<8x128xf32>
    %416 = arith.addf %415, %414 : vector<8x128xf32>
    %417 = arith.divf %415, %416 : vector<8x128xf32>
    %418 = vector.extract_strided_slice %401 {offsets = [0, 256], sizes = [8, 128], strides = [1, 1]} : vector<8x384xf32> to vector<8x128xf32>
    %419 = vector.extract_strided_slice %369 {offsets = [0, 256], sizes = [8, 128], strides = [1, 1]} : vector<8x384xf32> to vector<8x128xf32>
    %420 = vector.broadcast %13 : vector<1x128xf32> to vector<8x128xf32>
    %421 = arith.addf %419, %420 : vector<8x128xf32>
    %422 = arith.mulf %409, %421 : vector<8x128xf32>
    %423 = arith.addf %418, %422 : vector<8x128xf32>
    %424 = math.tanh %423 : vector<8x128xf32>
    %cst_124 = arith.constant 1.000000e+00 : f32
    %425 = vector.broadcast %cst_124 : f32 to vector<8x128xf32>
    %426 = arith.subf %425, %417 : vector<8x128xf32>
    %427 = arith.mulf %426, %424 : vector<8x128xf32>
    %428 = arith.mulf %417, %359 : vector<8x128xf32>
    %429 = arith.addf %427, %428 : vector<8x128xf32>
    %c5_125 = arith.constant 5 : index
    %c0_126 = arith.constant 0 : index
    %c0_127 = arith.constant 0 : index
    %430 = vector.load %arg9[%c5_125, %c0_126, %c0_127] : memref<8x8x128xf32, #tpu.memory_space<vmem>>, vector<1x8x128xf32>
    %431 = vector.shape_cast %430 : vector<1x8x128xf32> to vector<8x128xf32>
    %432 = vector.shape_cast %399 : vector<8x128xf32> to vector<1x8x128xf32>
    tpu.vector_store %arg9[%c5_125, %c0_126, %c0_127], %432 {strides = array<i32>} : memref<8x8x128xf32, #tpu.memory_space<vmem>>, vector<1x8x128xf32>,
    %c2_128 = arith.constant 2 : index
    %c0_129 = arith.constant 0 : index
    %c0_130 = arith.constant 0 : index
    %433 = vector.load %arg10[%c2_128, %c0_129, %c0_130] : memref<8x8x128xf32, #tpu.memory_space<vmem>>, vector<1x8x128xf32>
    %434 = vector.shape_cast %433 : vector<1x8x128xf32> to vector<8x128xf32>
    %435 = vector.shape_cast %429 : vector<8x128xf32> to vector<1x8x128xf32>
    tpu.vector_store %arg10[%c2_128, %c0_129, %c0_130], %435 {strides = array<i32>} : memref<8x8x128xf32, #tpu.memory_space<vmem>>, vector<1x8x128xf32>,
    %436 = arith.truncf %399 : vector<8x128xf32> to vector<8x128xbf16>
    %cst_131 = arith.constant dense<0.000000e+00> : vector<8x384xf32>
    %437 = tpu.matmul %436, %7, %cst_131 {dimension_numbers = #tpu.dot_dimension_numbers<[1], [0], [0], [1], [0, 0, 1, 1], [], []>} : vector<8x128xbf16>, vector<128x384xbf16>, vector<8x384xf32> -> vector<8x384xf32>
    %438 = arith.truncf %429 : vector<8x128xf32> to vector<8x128xbf16>
    %cst_132 = arith.constant dense<0.000000e+00> : vector<8x384xf32>
    %439 = tpu.matmul %438, %9, %cst_132 {dimension_numbers = #tpu.dot_dimension_numbers<[1], [0], [0], [1], [0, 0, 1, 1], [], []>} : vector<8x128xbf16>, vector<128x384xbf16>, vector<8x384xf32> -> vector<8x384xf32>
    %c6_133 = arith.constant 6 : index
    %c0_134 = arith.constant 0 : index
    %c0_135 = arith.constant 0 : index
    %440 = vector.load %arg11[%c6_133, %c0_134, %c0_135] : memref<8x8x768xf32, #tpu.memory_space<vmem>>, vector<1x8x384xf32>
    %441 = vector.shape_cast %440 : vector<1x8x384xf32> to vector<8x384xf32>
    %442 = vector.extract_strided_slice %441 {offsets = [0, 0], sizes = [8, 128], strides = [1, 1]} : vector<8x384xf32> to vector<8x128xf32>
    %443 = vector.extract_strided_slice %437 {offsets = [0, 0], sizes = [8, 128], strides = [1, 1]} : vector<8x384xf32> to vector<8x128xf32>
    %444 = arith.addf %442, %443 : vector<8x128xf32>
    %445 = arith.negf %444 : vector<8x128xf32>
    %446 = math.exp %445 : vector<8x128xf32>
    %cst_136 = arith.constant 1.000000e+00 : f32
    %447 = vector.broadcast %cst_136 : f32 to vector<8x128xf32>
    %448 = arith.addf %447, %446 : vector<8x128xf32>
    %449 = arith.divf %447, %448 : vector<8x128xf32>
    %450 = vector.extract_strided_slice %441 {offsets = [0, 128], sizes = [8, 128], strides = [1, 1]} : vector<8x384xf32> to vector<8x128xf32>
    %451 = vector.extract_strided_slice %437 {offsets = [0, 128], sizes = [8, 128], strides = [1, 1]} : vector<8x384xf32> to vector<8x128xf32>
    %452 = arith.addf %450, %451 : vector<8x128xf32>
    %453 = arith.negf %452 : vector<8x128xf32>
    %454 = math.exp %453 : vector<8x128xf32>
    %cst_137 = arith.constant 1.000000e+00 : f32
    %455 = vector.broadcast %cst_137 : f32 to vector<8x128xf32>
    %456 = arith.addf %455, %454 : vector<8x128xf32>
    %457 = arith.divf %455, %456 : vector<8x128xf32>
    %458 = vector.extract_strided_slice %441 {offsets = [0, 256], sizes = [8, 128], strides = [1, 1]} : vector<8x384xf32> to vector<8x128xf32>
    %459 = vector.extract_strided_slice %437 {offsets = [0, 256], sizes = [8, 128], strides = [1, 1]} : vector<8x384xf32> to vector<8x128xf32>
    %460 = vector.broadcast %11 : vector<1x128xf32> to vector<8x128xf32>
    %461 = arith.addf %459, %460 : vector<8x128xf32>
    %462 = arith.mulf %449, %461 : vector<8x128xf32>
    %463 = arith.addf %458, %462 : vector<8x128xf32>
    %464 = math.tanh %463 : vector<8x128xf32>
    %cst_138 = arith.constant 1.000000e+00 : f32
    %465 = vector.broadcast %cst_138 : f32 to vector<8x128xf32>
    %466 = arith.subf %465, %457 : vector<8x128xf32>
    %467 = arith.mulf %466, %464 : vector<8x128xf32>
    %468 = arith.mulf %457, %399 : vector<8x128xf32>
    %469 = arith.addf %467, %468 : vector<8x128xf32>
    %c1_139 = arith.constant 1 : index
    %c0_140 = arith.constant 0 : index
    %c384_141 = arith.constant 384 : index
    %470 = vector.load %arg11[%c1_139, %c0_140, %c384_141] : memref<8x8x768xf32, #tpu.memory_space<vmem>>, vector<1x8x384xf32>
    %471 = vector.shape_cast %470 : vector<1x8x384xf32> to vector<8x384xf32>
    %472 = vector.extract_strided_slice %471 {offsets = [0, 0], sizes = [8, 128], strides = [1, 1]} : vector<8x384xf32> to vector<8x128xf32>
    %473 = vector.extract_strided_slice %439 {offsets = [0, 0], sizes = [8, 128], strides = [1, 1]} : vector<8x384xf32> to vector<8x128xf32>
    %474 = arith.addf %472, %473 : vector<8x128xf32>
    %475 = arith.negf %474 : vector<8x128xf32>
    %476 = math.exp %475 : vector<8x128xf32>
    %cst_142 = arith.constant 1.000000e+00 : f32
    %477 = vector.broadcast %cst_142 : f32 to vector<8x128xf32>
    %478 = arith.addf %477, %476 : vector<8x128xf32>
    %479 = arith.divf %477, %478 : vector<8x128xf32>
    %480 = vector.extract_strided_slice %471 {offsets = [0, 128], sizes = [8, 128], strides = [1, 1]} : vector<8x384xf32> to vector<8x128xf32>
    %481 = vector.extract_strided_slice %439 {offsets = [0, 128], sizes = [8, 128], strides = [1, 1]} : vector<8x384xf32> to vector<8x128xf32>
    %482 = arith.addf %480, %481 : vector<8x128xf32>
    %483 = arith.negf %482 : vector<8x128xf32>
    %484 = math.exp %483 : vector<8x128xf32>
    %cst_143 = arith.constant 1.000000e+00 : f32
    %485 = vector.broadcast %cst_143 : f32 to vector<8x128xf32>
    %486 = arith.addf %485, %484 : vector<8x128xf32>
    %487 = arith.divf %485, %486 : vector<8x128xf32>
    %488 = vector.extract_strided_slice %471 {offsets = [0, 256], sizes = [8, 128], strides = [1, 1]} : vector<8x384xf32> to vector<8x128xf32>
    %489 = vector.extract_strided_slice %439 {offsets = [0, 256], sizes = [8, 128], strides = [1, 1]} : vector<8x384xf32> to vector<8x128xf32>
    %490 = vector.broadcast %13 : vector<1x128xf32> to vector<8x128xf32>
    %491 = arith.addf %489, %490 : vector<8x128xf32>
    %492 = arith.mulf %479, %491 : vector<8x128xf32>
    %493 = arith.addf %488, %492 : vector<8x128xf32>
    %494 = math.tanh %493 : vector<8x128xf32>
    %cst_144 = arith.constant 1.000000e+00 : f32
    %495 = vector.broadcast %cst_144 : f32 to vector<8x128xf32>
    %496 = arith.subf %495, %487 : vector<8x128xf32>
    %497 = arith.mulf %496, %494 : vector<8x128xf32>
    %498 = arith.mulf %487, %429 : vector<8x128xf32>
    %499 = arith.addf %497, %498 : vector<8x128xf32>
    %c6_145 = arith.constant 6 : index
    %c0_146 = arith.constant 0 : index
    %c0_147 = arith.constant 0 : index
    %500 = vector.load %arg9[%c6_145, %c0_146, %c0_147] : memref<8x8x128xf32, #tpu.memory_space<vmem>>, vector<1x8x128xf32>
    %501 = vector.shape_cast %500 : vector<1x8x128xf32> to vector<8x128xf32>
    %502 = vector.shape_cast %469 : vector<8x128xf32> to vector<1x8x128xf32>
    tpu.vector_store %arg9[%c6_145, %c0_146, %c0_147], %502 {strides = array<i32>} : memref<8x8x128xf32, #tpu.memory_space<vmem>>, vector<1x8x128xf32>,
    %c1_148 = arith.constant 1 : index
    %c0_149 = arith.constant 0 : index
    %c0_150 = arith.constant 0 : index
    %503 = vector.load %arg10[%c1_148, %c0_149, %c0_150] : memref<8x8x128xf32, #tpu.memory_space<vmem>>, vector<1x8x128xf32>
    %504 = vector.shape_cast %503 : vector<1x8x128xf32> to vector<8x128xf32>
    %505 = vector.shape_cast %499 : vector<8x128xf32> to vector<1x8x128xf32>
    tpu.vector_store %arg10[%c1_148, %c0_149, %c0_150], %505 {strides = array<i32>} : memref<8x8x128xf32, #tpu.memory_space<vmem>>, vector<1x8x128xf32>,
    %506 = arith.truncf %469 : vector<8x128xf32> to vector<8x128xbf16>
    %cst_151 = arith.constant dense<0.000000e+00> : vector<8x384xf32>
    %507 = tpu.matmul %506, %7, %cst_151 {dimension_numbers = #tpu.dot_dimension_numbers<[1], [0], [0], [1], [0, 0, 1, 1], [], []>} : vector<8x128xbf16>, vector<128x384xbf16>, vector<8x384xf32> -> vector<8x384xf32>
    %508 = arith.truncf %499 : vector<8x128xf32> to vector<8x128xbf16>
    %cst_152 = arith.constant dense<0.000000e+00> : vector<8x384xf32>
    %509 = tpu.matmul %508, %9, %cst_152 {dimension_numbers = #tpu.dot_dimension_numbers<[1], [0], [0], [1], [0, 0, 1, 1], [], []>} : vector<8x128xbf16>, vector<128x384xbf16>, vector<8x384xf32> -> vector<8x384xf32>
    %c7_153 = arith.constant 7 : index
    %c0_154 = arith.constant 0 : index
    %c0_155 = arith.constant 0 : index
    %510 = vector.load %arg11[%c7_153, %c0_154, %c0_155] : memref<8x8x768xf32, #tpu.memory_space<vmem>>, vector<1x8x384xf32>
    %511 = vector.shape_cast %510 : vector<1x8x384xf32> to vector<8x384xf32>
    %512 = vector.extract_strided_slice %511 {offsets = [0, 0], sizes = [8, 128], strides = [1, 1]} : vector<8x384xf32> to vector<8x128xf32>
    %513 = vector.extract_strided_slice %507 {offsets = [0, 0], sizes = [8, 128], strides = [1, 1]} : vector<8x384xf32> to vector<8x128xf32>
    %514 = arith.addf %512, %513 : vector<8x128xf32>
    %515 = arith.negf %514 : vector<8x128xf32>
    %516 = math.exp %515 : vector<8x128xf32>
    %cst_156 = arith.constant 1.000000e+00 : f32
    %517 = vector.broadcast %cst_156 : f32 to vector<8x128xf32>
    %518 = arith.addf %517, %516 : vector<8x128xf32>
    %519 = arith.divf %517, %518 : vector<8x128xf32>
    %520 = vector.extract_strided_slice %511 {offsets = [0, 128], sizes = [8, 128], strides = [1, 1]} : vector<8x384xf32> to vector<8x128xf32>
    %521 = vector.extract_strided_slice %507 {offsets = [0, 128], sizes = [8, 128], strides = [1, 1]} : vector<8x384xf32> to vector<8x128xf32>
    %522 = arith.addf %520, %521 : vector<8x128xf32>
    %523 = arith.negf %522 : vector<8x128xf32>
    %524 = math.exp %523 : vector<8x128xf32>
    %cst_157 = arith.constant 1.000000e+00 : f32
    %525 = vector.broadcast %cst_157 : f32 to vector<8x128xf32>
    %526 = arith.addf %525, %524 : vector<8x128xf32>
    %527 = arith.divf %525, %526 : vector<8x128xf32>
    %528 = vector.extract_strided_slice %511 {offsets = [0, 256], sizes = [8, 128], strides = [1, 1]} : vector<8x384xf32> to vector<8x128xf32>
    %529 = vector.extract_strided_slice %507 {offsets = [0, 256], sizes = [8, 128], strides = [1, 1]} : vector<8x384xf32> to vector<8x128xf32>
    %530 = vector.broadcast %11 : vector<1x128xf32> to vector<8x128xf32>
    %531 = arith.addf %529, %530 : vector<8x128xf32>
    %532 = arith.mulf %519, %531 : vector<8x128xf32>
    %533 = arith.addf %528, %532 : vector<8x128xf32>
    %534 = math.tanh %533 : vector<8x128xf32>
    %cst_158 = arith.constant 1.000000e+00 : f32
    %535 = vector.broadcast %cst_158 : f32 to vector<8x128xf32>
    %536 = arith.subf %535, %527 : vector<8x128xf32>
    %537 = arith.mulf %536, %534 : vector<8x128xf32>
    %538 = arith.mulf %527, %469 : vector<8x128xf32>
    %539 = arith.addf %537, %538 : vector<8x128xf32>
    %c0_159 = arith.constant 0 : index
    %c0_160 = arith.constant 0 : index
    %c384_161 = arith.constant 384 : index
    %540 = vector.load %arg11[%c0_159, %c0_160, %c384_161] : memref<8x8x768xf32, #tpu.memory_space<vmem>>, vector<1x8x384xf32>
    %541 = vector.shape_cast %540 : vector<1x8x384xf32> to vector<8x384xf32>
    %542 = vector.extract_strided_slice %541 {offsets = [0, 0], sizes = [8, 128], strides = [1, 1]} : vector<8x384xf32> to vector<8x128xf32>
    %543 = vector.extract_strided_slice %509 {offsets = [0, 0], sizes = [8, 128], strides = [1, 1]} : vector<8x384xf32> to vector<8x128xf32>
    %544 = arith.addf %542, %543 : vector<8x128xf32>
    %545 = arith.negf %544 : vector<8x128xf32>
    %546 = math.exp %545 : vector<8x128xf32>
    %cst_162 = arith.constant 1.000000e+00 : f32
    %547 = vector.broadcast %cst_162 : f32 to vector<8x128xf32>
    %548 = arith.addf %547, %546 : vector<8x128xf32>
    %549 = arith.divf %547, %548 : vector<8x128xf32>
    %550 = vector.extract_strided_slice %541 {offsets = [0, 128], sizes = [8, 128], strides = [1, 1]} : vector<8x384xf32> to vector<8x128xf32>
    %551 = vector.extract_strided_slice %509 {offsets = [0, 128], sizes = [8, 128], strides = [1, 1]} : vector<8x384xf32> to vector<8x128xf32>
    %552 = arith.addf %550, %551 : vector<8x128xf32>
    %553 = arith.negf %552 : vector<8x128xf32>
    %554 = math.exp %553 : vector<8x128xf32>
    %cst_163 = arith.constant 1.000000e+00 : f32
    %555 = vector.broadcast %cst_163 : f32 to vector<8x128xf32>
    %556 = arith.addf %555, %554 : vector<8x128xf32>
    %557 = arith.divf %555, %556 : vector<8x128xf32>
    %558 = vector.extract_strided_slice %541 {offsets = [0, 256], sizes = [8, 128], strides = [1, 1]} : vector<8x384xf32> to vector<8x128xf32>
    %559 = vector.extract_strided_slice %509 {offsets = [0, 256], sizes = [8, 128], strides = [1, 1]} : vector<8x384xf32> to vector<8x128xf32>
    %560 = vector.broadcast %13 : vector<1x128xf32> to vector<8x128xf32>
    %561 = arith.addf %559, %560 : vector<8x128xf32>
    %562 = arith.mulf %549, %561 : vector<8x128xf32>
    %563 = arith.addf %558, %562 : vector<8x128xf32>
    %564 = math.tanh %563 : vector<8x128xf32>
    %cst_164 = arith.constant 1.000000e+00 : f32
    %565 = vector.broadcast %cst_164 : f32 to vector<8x128xf32>
    %566 = arith.subf %565, %557 : vector<8x128xf32>
    %567 = arith.mulf %566, %564 : vector<8x128xf32>
    %568 = arith.mulf %557, %499 : vector<8x128xf32>
    %569 = arith.addf %567, %568 : vector<8x128xf32>
    %c7_165 = arith.constant 7 : index
    %c0_166 = arith.constant 0 : index
    %c0_167 = arith.constant 0 : index
    %570 = vector.load %arg9[%c7_165, %c0_166, %c0_167] : memref<8x8x128xf32, #tpu.memory_space<vmem>>, vector<1x8x128xf32>
    %571 = vector.shape_cast %570 : vector<1x8x128xf32> to vector<8x128xf32>
    %572 = vector.shape_cast %539 : vector<8x128xf32> to vector<1x8x128xf32>
    tpu.vector_store %arg9[%c7_165, %c0_166, %c0_167], %572 {strides = array<i32>} : memref<8x8x128xf32, #tpu.memory_space<vmem>>, vector<1x8x128xf32>,
    %c0_168 = arith.constant 0 : index
    %c0_169 = arith.constant 0 : index
    %c0_170 = arith.constant 0 : index
    %573 = vector.load %arg10[%c0_168, %c0_169, %c0_170] : memref<8x8x128xf32, #tpu.memory_space<vmem>>, vector<1x8x128xf32>
    %574 = vector.shape_cast %573 : vector<1x8x128xf32> to vector<8x128xf32>
    %575 = vector.shape_cast %569 : vector<8x128xf32> to vector<1x8x128xf32>
    tpu.vector_store %arg10[%c0_168, %c0_169, %c0_170], %575 {strides = array<i32>} : memref<8x8x128xf32, #tpu.memory_space<vmem>>, vector<1x8x128xf32>,
    %c3_i32 = arith.constant 3 : i32
    %576 = arith.cmpi eq, %arg0, %c3_i32 : i32
    %577 = arith.extui %576 : i1 to i32
    %c0_i32_171 = arith.constant 0 : i32
    %578 = arith.cmpi ne, %577, %c0_i32_171 : i32
    scf.if %578 {
      %c0_172 = arith.constant 0 : index
      %c0_173 = arith.constant 0 : index
      %c0_174 = arith.constant 0 : index
      %579 = vector.load %arg9[%c0_172, %c0_173, %c0_174] : memref<8x8x128xf32, #tpu.memory_space<vmem>>, vector<8x8x128xf32>
      %c0_175 = arith.constant 0 : index
      %c0_176 = arith.constant 0 : index
      %c0_177 = arith.constant 0 : index
      %580 = vector.load %arg10[%c0_175, %c0_176, %c0_177] : memref<8x8x128xf32, #tpu.memory_space<vmem>>, vector<8x8x128xf32>
      %581 = arith.addf %579, %580 : vector<8x8x128xf32>
      %582 = vector.shape_cast %581 : vector<8x8x128xf32> to vector<64x128xf32>
      %583 = arith.truncf %582 : vector<64x128xf32> to vector<64x128xbf16>
      %c0_178 = arith.constant 0 : index
      %c0_179 = arith.constant 0 : index
      %584 = vector.load %arg6[%c0_178, %c0_179] : memref<128x128xbf16, #tpu.memory_space<vmem>>, vector<128x128xbf16>
      %cst_180 = arith.constant dense<0.000000e+00> : vector<64x128xf32>
      %585 = tpu.matmul %583, %584, %cst_180 {dimension_numbers = #tpu.dot_dimension_numbers<[1], [0], [0], [1], [0, 0, 1, 1], [], []>} : vector<64x128xbf16>, vector<128x128xbf16>, vector<64x128xf32> -> vector<64x128xf32>
      %c0_181 = arith.constant 0 : index
      %c0_182 = arith.constant 0 : index
      %586 = vector.load %arg7[%c0_181, %c0_182] : memref<1x128xf32, #tpu.memory_space<vmem>>, vector<1x128xf32>
      %587 = vector.broadcast %586 : vector<1x128xf32> to vector<64x128xf32>
      %588 = arith.addf %585, %587 : vector<64x128xf32>
      %589 = math.tanh %588 : vector<64x128xf32>
      %590 = vector.shape_cast %589 : vector<64x128xf32> to vector<8x8x128xf32>
      %c0_183 = arith.constant 0 : index
      %c0_184 = arith.constant 0 : index
      %c0_185 = arith.constant 0 : index
      %591 = vector.load %arg8[%c0_183, %c0_184, %c0_185] : memref<8x8x128xf32, #tpu.memory_space<vmem>>, vector<8x8x128xf32>
      tpu.vector_store %arg8[%c0_183, %c0_184, %c0_185], %590 {strides = array<i32>} : memref<8x8x128xf32, #tpu.memory_space<vmem>>, vector<8x8x128xf32>,
    } else {
    }
    return
  }
  func.func @transform_0(%arg0: i32) -> (i32, i32, i32) {
    %c0_i32 = arith.constant 0 : i32
    %c0_i32_0 = arith.constant 0 : i32
    %c0_i32_1 = arith.constant 0 : i32
    %c0_i32_2 = arith.constant 0 : i32
    return %c0_i32, %c0_i32_0, %c0_i32_1 : i32, i32, i32
  }
  func.func @transform_1(%arg0: i32) -> (i32, i32, i32, i32) {
    %c0_i32 = arith.constant 0 : i32
    %c0_i32_0 = arith.constant 0 : i32
    %c0_i32_1 = arith.constant 0 : i32
    %c0_i32_2 = arith.constant 0 : i32
    return %arg0, %c0_i32, %c0_i32_0, %c0_i32_1 : i32, i32, i32, i32
  }
  func.func @transform_2(%arg0: i32) -> (i32, i32, i32, i32) {
    %c0_i32 = arith.constant 0 : i32
    %c0_i32_0 = arith.constant 0 : i32
    %c0_i32_1 = arith.constant 0 : i32
    %c0_i32_2 = arith.constant 0 : i32
    return %arg0, %c0_i32, %c0_i32_0, %c0_i32_1 : i32, i32, i32, i32
  }
  func.func @transform_3(%arg0: i32) -> (i32, i32, i32) {
    %c0_i32 = arith.constant 0 : i32
    %c0_i32_0 = arith.constant 0 : i32
    %c0_i32_1 = arith.constant 0 : i32
    return %arg0, %c0_i32, %c0_i32_0 : i32, i32, i32
  }
  func.func @transform_4(%arg0: i32) -> (i32, i32, i32, i32) {
    %c0_i32 = arith.constant 0 : i32
    %c0_i32_0 = arith.constant 0 : i32
    %c0_i32_1 = arith.constant 0 : i32
    %c0_i32_2 = arith.constant 0 : i32
    return %arg0, %c0_i32, %c0_i32_0, %c0_i32_1 : i32, i32, i32, i32
  }
  func.func @transform_5(%arg0: i32) -> (i32, i32) {
    %c0_i32 = arith.constant 0 : i32
    %c0_i32_0 = arith.constant 0 : i32
    %c0_i32_1 = arith.constant 0 : i32
    return %c0_i32, %c0_i32_0 : i32, i32
  }
  func.func @transform_6(%arg0: i32) -> (i32, i32) {
    %c0_i32 = arith.constant 0 : i32
    %c0_i32_0 = arith.constant 0 : i32
    %c0_i32_1 = arith.constant 0 : i32
    return %c0_i32, %c0_i32_0 : i32, i32
  }
  func.func @transform_7(%arg0: i32) -> (i32, i32, i32) {
    %c0_i32 = arith.constant 0 : i32
    %c0_i32_0 = arith.constant 0 : i32
    %c0_i32_1 = arith.constant 0 : i32
    %c0_i32_2 = arith.constant 0 : i32
    return %c0_i32, %c0_i32_0, %c0_i32_1 : i32, i32, i32
  }
}

</mosaic_0001>

<bundles_post_ra>
// kernel: han_forward.1
= control target key start
LH: loop header
LB: loop body
LE: loop exit
PB: predicated region body
PF: predicated region fallthrough
CT: control target
= control target key end

     0   :  { %s8083_s0 = inlined_call_operand.vmem [shape: bf16[8,8,128], index: 0, kind: input, shape index: {}]   ;;  %s8084_s1 = inlined_call_operand.hbm [shape: bf16[4,2,128,768], index: 1, kind: input, shape index: {}]   ;;  %s8085_s2 = inlined_call_operand.hbm [shape: bf16[4,2,128,384], index: 2, kind: input, shape index: {}]   ;;  %s8086_s3 = inlined_call_operand.hbm [shape: f32[4,1,768], index: 3, kind: input, shape index: {}]   ;;  %s8087_s4 = inlined_call_operand.hbm [shape: f32[4,2,1,128], index: 4, kind: input, shape index: {}]   ;;  %s8088_s5 = inlined_call_operand.hbm [shape: bf16[128,128], index: 5, kind: input, shape index: {}]   ;;  %s8089_s6 = inlined_call_operand.hbm [shape: f32[1,128], index: 6, kind: input, shape index: {}]   ;;  %s8090_s7 = inlined_call_operand.vmem [shape: f32[8,8,128], index: 7, kind: output, shape index: {}]  }
   0x1   :  { %8144 = sst [smem:[#allocation33_spill]] %s8084_s1 }
   0x2   :  { %8145 = sst [smem:[#allocation34_spill]] %s8085_s2 }
   0x3   :  { %8146 = sst [smem:[#allocation35_spill]] %s8088_s5 }
   0x4   :  { %8147 = sst [smem:[#allocation36_spill]] %s8089_s6 }
   0x5   :  { %12 = vsyncpa [#allocation6], 0 }
   0x6   :  { %14 = vsyncpa [#allocation6 + $0x1], 0 }
   0x7   :  { %15 = vsyncpa [#allocation8], 0 }
   0x8   :  { %17 = vsyncpa [#allocation8 + $0x1], 0 }
   0x9   :  { %18 = vsyncpa [#allocation11], 0 }
   0xa   :  { %20 = vsyncpa [#allocation11 + $0x1], 0 }
   0xb   :  { %21 = vsyncpa [#allocation14], 0  ;;  %s6435_s24 = smov 0   ;;  %s6437_s25 = smov 0  }
   0xc   :  { %s6439_s26 = smov 0   ;;  %s6441_s27 = smov 0  }
   0xd LB: > { %8148 = sst [smem:[#allocation20_spill]] %s6370_s26  ;;  %s6454_s28 = sadd.s32 4294967295, %s6374_s27   ;;  %s6374_s27 = sphi %s6441_s27, %s8243_s27   ;;  %s6370_s26 = sphi %s6439_s26, %s8242_s26   ;;  %s6366_s25 = sphi %s6437_s25, %s8241_s25   ;;  %s6362_s24 = sphi %s6435_s24, %s8240_s24  }
   0xe   : > { %s6457_s29 = sadd.s32 1, %s6374_s27   ;;  %s55_s8 = sadd.s32 1, %s6370_s26 }
   0xf   : > { %s52_s30 = ssub.s32 %s6374_s27, %s6457_s29  ;;  %p62_p1 = scmp.ne.s32.totalorder %s6370_s26, %s6366_s25 }
  0x10   : > { %p53_p0 = scmp.eq.s32.totalorder %s52_s30, 0  ;;  %p63_p2 = scmp.eq.s32.totalorder %s6374_s27, 0 }
  0x11   : > { %p68_p3 = scmp.ne.s32.totalorder %s6366_s25, %s6362_s24  ;;  %p8091_p5 = scmp.eq.s32.totalorder %s6454_s28, 0 }
  0x12   : > { %s6467_s9 = scalar_select %p53_p0, %s6370_s26, %s55_s8  }
  0x13   : > { %p6469_p4 = por %p63_p2, %p62_p1  ;;  %p4613_p6 = scmp.ge.s32.totalorder %s6374_s27, 1 }
  0x14   : > { %8149 = sst [smem:[#allocation21_spill]] %s6467_s9  ;;  %p220_p7 = scmp.lt.s32.totalorder %s6374_s27, 5 }
  0x15   : > { %p6478_p8 = por %p8091_p5, %p68_p3  ;;  %s6376_s13 = smov [#allocation12]  }
  0x16   : > { %p6483_p10 = pnand %p4613_p6, %p220_p7  ;;  %s235_s14 = sshll.u32 %s6376_s13, 4  ;;  %s236_s14 = int_to_ptr.vmem [resolvable:$true] %s235_s14 }
  0x17   : > { %s8151_s11 = scalar_select %p6478_p8, 1, 0 }
  0x18   : > { %s8152_s12 = scalar_select %p6483_p10, 1, 0 }
  0x19   : > { %p5558_p11 = pneg %p6483_p10  ;;  %p5580_p13 = scmp.lt.s32.totalorder %s6374_s27, 4 }
  0x1a   : > { %s6497_s16 = sand.u32 1, %s6370_s26   ;;  %s8155_s5 = sld [smem:[#allocation35_spill]] }
  0x1b   : > { %p6491_p12 = pnand %p5558_p11, %p8091_p5  ;;  %p6502_p0 = pnand %p5580_p13, %p6469_p4 }
  0x1d   : > { %s8153_s15 = scalar_select %p6491_p12, 1, 0 }
  0x1e   : > { %s8154_s18 = scalar_select %p6502_p0, 1, 0 }
  0x1f   : > { %p8096_p2 = pneg %p6491_p12 }
  0x20   : > { %s6148_s21 = scalar_lea.hbm %s8155_s5, 1024 }
  0x21   : > { %p6149_p1 = scmp.ne.s32.totalorder %s8155_s5, %s6148_s21  ;;  %p6155_p4 = scmp.lt.u32.totalorder %s6148_s21, %s8155_s5 }
  0x23   : > { %p6151_p3 = pnand %p8096_p2, %p6149_p1 }
  0x25   : > { %p6152_p6 = pneg %p6151_p3 }
  0x27   : > { %p6157_p7 = pnand %p6155_p4, %p6152_p6 }
  0x29   : > { %6160 = shalt.err (!%p6157_p7)
}
  0x2a   : > { %s6161_s8 = scalar_lea.vmem %s236_s14, 1024  ;;  %p6169_p5 = scmp.lt.s32.totalorder %s236_s14, %s236_s14 }
  0x2b   : > { %p6162_p11 = scmp.ne.s32.totalorder %s236_s14, %s6161_s8  ;;  %p6170_p8 = scmp.lt.s32.totalorder %s6161_s8, %s6161_s8 }
  0x2d   : > { %p6164_p13 = pnand %p6162_p11, %p8096_p2  ;;  %p6171_p10 = por %p6170_p8, %p6169_p5 }
  0x2f   : > { %p6165_p9 = pneg %p6164_p13 }
  0x31   : > { %p6172_p0 = pnand %p6171_p10, %p6165_p9 }
  0x33   : > { %6175 = shalt.err (!%p6172_p0)
}
  0x34   : > { %s6377_s10 = smov 64   ;;  %s6378_s13 = smov 4  }
  0x35   : > { %5561 = dma.hbm_to_vmem [thread:$0]  (!%p6491_p12), %s8155_s5, 1024, %s236_s14, [#allocation11], %s6377_s10, %s6377_s10, %s6378_s13  }
  0x36   : > { %s5535_s21 = smul.u32 384, %s6497_s16  ;;  %s8156_s2 = sld [smem:[#allocation34_spill]] }
  0x37   : > { %s5536_s22 = smul.u32 6144, %s6374_s27  ;;  %s8157_s9 = sand.u32 1, %s6374_s27  }
  0x38   : > { %s285_s8 = scalar_lea.vmem [#allocation7], %s5535_s21  ;;  %s6539_s26 = scalar_lea.sflag [#allocation8], %s8157_s9 }
  0x39   : > { %s292_s17 = sshll.u32 %s285_s8, 4  ;;  %p8158_p8 = scmp.ne.s32.totalorder %s8154_s18, 0  ;;  %s6535_s17 = int_to_ptr.vmem [resolvable:$true] %s292_s17 }
  0x3b   : > { %p6545_p9 = pneg %p8158_p8 }
  0x3c   : > { %s6533_s30 = scalar_lea.hbm %s8156_s2, %s5536_s22  ;;  %s6181_s20 = scalar_lea.hbm %s8156_s2, 24576 }
  0x3d   : > { %s6176_s19 = scalar_lea.hbm %s6533_s30, 6144  ;;  %p6182_p1 = scmp.lt.u32.totalorder %s6533_s30, %s8156_s2 }
  0x3e   : > { %p6177_p5 = scmp.ne.s32.totalorder %s6533_s30, %s6176_s19  ;;  %p6183_p3 = scmp.lt.u32.totalorder %s6181_s20, %s6176_s19 }
  0x3f   : > { %s8159_s14 = scalar_select %p6545_p9, 1, 0 }
  0x40   : > { %p6179_p10 = pnand %p6545_p9, %p6177_p5  ;;  %p6184_p6 = por %p6183_p3, %p6182_p1 }
  0x41   : > { %p6185_p4 = scmp.lt.u32.totalorder %s6176_s19, %s6533_s30 }
  0x42   : > { %p6180_p0 = pneg %p6179_p10 }
  0x43   : > { %p6186_p7 = por %p6185_p4, %p6184_p6 }
  0x45   : > { %p6187_p11 = pnand %p6186_p7, %p6180_p0 }
  0x47   : > { %6190 = shalt.err (!%p6187_p11)
}
  0x48   : > { %s6191_s9 = scalar_lea.vmem %s6535_s17, 6144  ;;  %s6379_s23 = smov [#allocation7]  }
  0x49   : > { %p6192_p13 = scmp.ne.s32.totalorder %s6535_s17, %s6191_s9  ;;  %s6196_s24 = sshll.u32 %s6379_s23, 4  ;;  %s6197_s24 = int_to_ptr.vmem [resolvable:$false] %s6196_s24 }
  0x4a   : > { %s6198_s8 = scalar_lea.vmem %s6197_s24, 12288  ;;  %p6199_p2 = scmp.lt.s32.totalorder %s6535_s17, %s6197_s24 }
  0x4b   : > { %p6194_p5 = pnand %p6192_p13, %p6545_p9  ;;  %p6200_p12 = scmp.lt.s32.totalorder %s6198_s8, %s6191_s9 }
  0x4d   : > { %p6195_p10 = pneg %p6194_p5  ;;  %p6201_p1 = por %p6200_p12, %p6199_p2 }
  0x4f   : > { %p6202_p3 = pnand %p6201_p1, %p6195_p10 }
  0x51   : > { %6205 = shalt.err (!%p6202_p3)
}
  0x52   : > { %s6380_s19 = smov 192   ;;  %s6381_s10 = smov 12  }
  0x53   : > { %5571 = dma.hbm_to_vmem [thread:$0]  (!%p8158_p8), %s6533_s30, 6144, %s6535_s17, %s6539_s26, %s6380_s19, %s6380_s19, %s6381_s10  }
  0x54   : > { %s6382_s13 = smov [#allocation13]   ;;  %s5533_s21 = smul.u32 768, %s6497_s16 }
  0x55   : > { %s249_s20 = sshll.u32 %s6382_s13, 4  ;;  %s8160_s6 = sld [smem:[#allocation36_spill]]  ;;  %s250_s20 = int_to_ptr.vmem [resolvable:$true] %s249_s20 }
  0x56   : > { %p8161_p2 = scmp.ne.s32.totalorder %s8153_s15, 0 }
  0x58   : > { %p8162_p0 = pneg %p8161_p2 }
  0x5b   : > { %s6206_s9 = scalar_lea.hbm %s8160_s6, 16 }
  0x5c   : > { %p6207_p12 = scmp.ne.s32.totalorder %s8160_s6, %s6206_s9  ;;  %p6213_p7 = scmp.lt.u32.totalorder %s6206_s9, %s8160_s6 }
  0x5e   : > { %p6209_p6 = pnand %p6207_p12, %p8162_p0 }
  0x60   : > { %p6210_p4 = pneg %p6209_p6 }
  0x62   : > { %p6215_p11 = pnand %p6213_p7, %p6210_p4 }
  0x64   : > { %6218 = shalt.err (!%p6215_p11)
}
  0x65   : > { %s6219_s17 = scalar_lea.vmem %s250_s20, 16  ;;  %p8163_p5 = pmov %p8162_p0 }
  0x66   : > { %p6220_p13 = scmp.ne.s32.totalorder %s250_s20, %s6219_s17  ;;  %s6226_s30 = scalar_lea.vmem %s250_s20, 32 }
  0x67   : > { %p6227_p3 = scmp.lt.s32.totalorder %s250_s20, %s250_s20  ;;  %p6228_p8 = scmp.lt.s32.totalorder %s6226_s30, %s6219_s17 }
  0x68   : > { %p6222_p10 = pnand %p6220_p13, %p8163_p5 }
  0x69   : > { %p6229_p9 = por %p6228_p8, %p6227_p3 }
  0x6a   : > { %p6223_p1 = pneg %p6222_p10 }
  0x6c   : > { %p6230_p0 = pnand %p6229_p9, %p6223_p1 }
  0x6e   : > { %6233 = shalt.err (!%p6230_p0)
}
  0x6f   : > { %5564 = dma.hbm_to_vmem [thread:$0]  (!%p8161_p2), %s8160_s6, 16, %s250_s20, [#allocation14]  }
  0x70   : > { %s5534_s5 = smul.u32 12288, %s6374_s27  ;;  %s264_s10 = scalar_lea.vmem [#allocation5], %s5533_s21 }
  0x71   : > { %s271_s13 = sshll.u32 %s264_s10, 4  ;;  %s8164_s1 = sld [smem:[#allocation33_spill]]  ;;  %s6596_s13 = int_to_ptr.vmem [resolvable:$true] %s271_s13 }
  0x72   : > { %s5537_s15 = smul.u32 6, %s6497_s16  ;;  %s261_s24 = scalar_lea.sflag [#allocation6], %s6497_s16 }
  0x73   : > { %p8165_p9 = scmp.ne.s32.totalorder %s8159_s14, 0 }
  0x77   : > { %s6594_s9 = scalar_lea.hbm %s8164_s1, %s5534_s5  ;;  %s6239_s17 = scalar_lea.hbm %s8164_s1, 49152 }
  0x78   : > { %s6234_s8 = scalar_lea.hbm %s6594_s9, 12288  ;;  %p6240_p6 = scmp.lt.u32.totalorder %s6594_s9, %s8164_s1 }
  0x79   : > { %p6235_p8 = scmp.ne.s32.totalorder %s6594_s9, %s6234_s8  ;;  %p6241_p4 = scmp.lt.u32.totalorder %s6239_s17, %s6234_s8 }
  0x7a   : > { %p6243_p11 = scmp.lt.u32.totalorder %s6234_s8, %s6594_s9 }
  0x7b   : > { %p6237_p12 = pnand %p6235_p8, %p8165_p9  ;;  %p6242_p7 = por %p6241_p4, %p6240_p6 }
  0x7d   : > { %p6238_p2 = pneg %p6237_p12  ;;  %p6244_p13 = por %p6243_p11, %p6242_p7 }
  0x7f   : > { %p6245_p5 = pnand %p6244_p13, %p6238_p2 }
  0x81   : > { %6248 = shalt.err (!%p6245_p5)
}
  0x82   : > { %s6249_s2 = scalar_lea.vmem %s6596_s13, 12288  ;;  %s6383_s5 = smov [#allocation5]  }
  0x83   : > { %p6250_p10 = scmp.ne.s32.totalorder %s6596_s13, %s6249_s2  ;;  %s6254_s10 = sshll.u32 %s6383_s5, 4  ;;  %s6255_s10 = int_to_ptr.vmem [resolvable:$false] %s6254_s10 }
  0x84   : > { %s6256_s22 = scalar_lea.vmem %s6255_s10, 24576  ;;  %p6257_p0 = scmp.lt.s32.totalorder %s6596_s13, %s6255_s10 }
  0x85   : > { %p6252_p1 = pnand %p6250_p10, %p8165_p9  ;;  %p6258_p8 = scmp.lt.s32.totalorder %s6256_s22, %s6249_s2 }
  0x87   : > { %p6253_p3 = pneg %p6252_p1  ;;  %p6259_p12 = por %p6258_p8, %p6257_p0 }
  0x89   : > { %p6260_p6 = pnand %p6259_p12, %p6253_p3 }
  0x8b   : > { %6263 = shalt.err (!%p6260_p6)
}
  0x8c   : > { %s6384_s23 = smov 384   ;;  %s6385_s8 = smov 24  }
  0x8d   : > { %p8166_p2 = scmp.ne.s32.totalorder %s8154_s18, 0  ;;  %s5538_s20 = smul.u32 96, %s6374_s27 }
  0x8e   : > { %s306_s21 = scalar_lea.vmem [#allocation9], %s5537_s15  ;;  %s4620_s30 = sshll.u32 %s6497_s16, 1 }
  0x8f   : > { %5568 = dma.hbm_to_vmem [thread:$0]  (!%p8166_p2), %s6594_s9, 12288, %s6596_s13, %s261_s24, %s6384_s23, %s6384_s23, %s6385_s8  }
  0x90   : > { %s314_s17 = sshll.u32 %s306_s21, 4  ;;  %s312_s5 = scalar_lea.hbm %s8086_s3, %s5538_s20  ;;  %s315_s17 = int_to_ptr.vmem [resolvable:$true] %s314_s17 }
  0x91   : > { %s6264_s10 = scalar_lea.hbm %s312_s5, 96  ;;  %s6269_s6 = scalar_lea.hbm %s8086_s3, 384 }
  0x92   : > { %p6265_p4 = scmp.ne.s32.totalorder %s312_s5, %s6264_s10  ;;  %p6270_p13 = scmp.lt.u32.totalorder %s312_s5, %s8086_s3 }
  0x93   : > { %p6271_p5 = scmp.lt.u32.totalorder %s6269_s6, %s6264_s10  ;;  %p6273_p1 = scmp.lt.u32.totalorder %s6264_s10, %s312_s5 }
  0x94   : > { %p6267_p7 = pnand %p6265_p4, %p8165_p9 }
  0x95   : > { %p6272_p10 = por %p6271_p5, %p6270_p13 }
  0x96   : > { %p6268_p11 = pneg %p6267_p7 }
  0x97   : > { %p6274_p3 = por %p6273_p1, %p6272_p10 }
  0x99   : > { %p6275_p0 = pnand %p6274_p3, %p6268_p11 }
  0x9b   : > { %6278 = shalt.err (!%p6275_p0)
}
  0x9c   : > { %s6279_s15 = scalar_lea.vmem %s315_s17, 96  ;;  %s6386_s24 = smov [#allocation9]  }
  0x9d   : > { %p6280_p8 = scmp.ne.s32.totalorder %s315_s17, %s6279_s15  ;;  %s6284_s23 = sshll.u32 %s6386_s24, 4  ;;  %s6285_s23 = int_to_ptr.vmem [resolvable:$false] %s6284_s23 }
  0x9e   : > { %s6286_s1 = scalar_lea.vmem %s6285_s23, 192  ;;  %p6287_p4 = scmp.lt.s32.totalorder %s315_s17, %s6285_s23 }
  0x9f   : > { %p6282_p12 = pnand %p6280_p8, %p8165_p9  ;;  %p6288_p7 = scmp.lt.s32.totalorder %s6286_s1, %s6279_s15 }
  0xa1   : > { %p6283_p6 = pneg %p6282_p12  ;;  %p6289_p2 = por %p6288_p7, %p6287_p4 }
  0xa3   : > { %p6290_p5 = pnand %p6289_p2, %p6283_p6 }
  0xa5   : > { %6293 = shalt.err (!%p6290_p5)
}
  0xa6   : > { %p8167_p13 = scmp.ne.s32.totalorder %s8154_s18, 0  ;;  %s4952_s6 = sshll.u32 %s6374_s27, 5 }
  0xa7   : > { %s6647_s21 = scalar_lea.hbm %s8087_s4, %s4952_s6  ;;  %s325_s19 = scalar_lea.vmem [#allocation10], %s4620_s30 }
  0xa8   : > { %5574 = dma.hbm_to_vmem [thread:$0]  (!%p8167_p13), %s312_s5, 96, %s315_s17, %s6539_s26  }
  0xa9   : > { %s332_s2 = sshll.u32 %s325_s19, 4  ;;  %s8168_s10 = sand.u32 1, %s6374_s27   ;;  %s6651_s2 = int_to_ptr.vmem [resolvable:$true] %s332_s2 }
  0xaa   : > { %s6655_s22 = scalar_lea.sflag [#allocation11], %s8168_s10  ;;  %s6294_s13 = scalar_lea.hbm %s6647_s21, 32 }
  0xab   : > { %p6295_p2 = scmp.ne.s32.totalorder %s6647_s21, %s6294_s13  ;;  %s6299_s16 = scalar_lea.hbm %s8087_s4, 128 }
  0xac   : > { %p6300_p1 = scmp.lt.u32.totalorder %s6647_s21, %s8087_s4  ;;  %p6301_p3 = scmp.lt.u32.totalorder %s6299_s16, %s6294_s13 }
  0xad   : > { %p6297_p11 = pnand %p6295_p2, %p8165_p9  ;;  %p6303_p8 = scmp.lt.u32.totalorder %s6294_s13, %s6647_s21 }
  0xae   : > { %p6302_p0 = por %p6301_p3, %p6300_p1 }
  0xaf   : > { %p6298_p10 = pneg %p6297_p11 }
  0xb0   : > { %p6304_p12 = por %p6303_p8, %p6302_p0 }
  0xb2   : > { %p6305_p6 = pnand %p6304_p12, %p6298_p10 }
  0xb4   : > { %6308 = shalt.err (!%p6305_p6)
}
  0xb5   : > { %s6309_s27 = scalar_lea.vmem %s6651_s2, 32  ;;  %s6387_s30 = smov [#allocation10]  }
  0xb6   : > { %p6310_p4 = scmp.ne.s32.totalorder %s6651_s2, %s6309_s27  ;;  %s6314_s15 = sshll.u32 %s6387_s30, 4  ;;  %s6315_s15 = int_to_ptr.vmem [resolvable:$false] %s6314_s15 }
  0xb7   : > { %s6316_s24 = scalar_lea.vmem %s6315_s15, 64  ;;  %p6317_p2 = scmp.lt.s32.totalorder %s6651_s2, %s6315_s15 }
  0xb8   : > { %p6312_p7 = pnand %p6310_p4, %p8165_p9  ;;  %p6318_p11 = scmp.lt.s32.totalorder %s6316_s24, %s6309_s27 }
  0xba   : > { %p6313_p5 = pneg %p6312_p7  ;;  %p6319_p1 = por %p6318_p11, %p6317_p2 }
  0xbc   : > { %p6320_p3 = pnand %p6319_p1, %p6313_p5 }
  0xbe   : > { %6323 = shalt.err (!%p6320_p3)
}
  0xbf   : > { %s6388_s23 = smov 16   ;;  %s6389_s1 = smov 1  }
  0xc0   : > { %5577 = dma.hbm_to_vmem [thread:$0]  (!%p8167_p13), %s6647_s21, 32, %s6651_s2, %s6655_s22, %s6388_s23, %s6388_s23, %s6389_s1  }
  0xc1   : > { %p8169_p9 = scmp.ne.s32.totalorder %s8152_s12, 0 }
  0xc3   : > { %344 = sbr.rel (%p8169_p9) target bundleno = 3254 (0xcb6), region = 48 }
  0xca   : > { %s346_s14 = sand.u32 1, %s6366_s25   ;;  %p8170_p10 = scmp.ne.s32.totalorder %s8151_s11, 0 }
  0xcb   : > { %s5539_s6 = smul.u32 768, %s346_s14  ;;  %s347_s8 = scalar_lea.sflag [#allocation6], %s346_s14 }
  0xcd   : > { %s6682_s20 = scalar_lea.vmem [#allocation5], %s5539_s6 }
  0xce   : > { %6341 = dma.done.wait (%p8170_p10), %s347_s8, 12288  }
  0xcf   : > { %6343 = vsyncadd (%p8170_p10), %s347_s8, 4294955008  ;;  %s355_s19 = sand.u32 1, %s6454_s28   ;;  %s5540_s18 = smul.u32 384, %s346_s14 }
  0xd0   : > { %s356_s21 = scalar_lea.sflag [#allocation8], %s355_s19 }
  0xd1   : > { %s6689_s2 = scalar_lea.vmem [#allocation7], %s5540_s18 }
  0xd2   : > { %6345 = dma.done.wait (%p8170_p10), %s356_s21, 6240  }
  0xd3   : > { %6347 = vsyncadd (%p8170_p10), %s356_s21, 4294961056  ;;  %s5541_s12 = smul.u32 6, %s346_s14  ;;  %s4624_s10 = sshll.u32 %s346_s14, 1 }
  0xd4   : > { %s374_s13 = scalar_lea.sflag [#allocation11], %s355_s19  ;;  %s6697_s26 = scalar_lea.vmem [#allocation10], %s4624_s10 }
  0xd5   : > { %s6695_s22 = scalar_lea.vmem [#allocation9], %s5541_s12 }
  0xd6   : > { %6349 = dma.done.wait (%p8170_p10), %s374_s13, 32  }
  0xd7   : > { %6351 = vsyncadd (%p8170_p10), %s374_s13, 4294967264  ;;  %p8171_p13 = scmp.eq.s32.totalorder %s6454_s28, 0 }
  0xd9   : > { %6353 = dma.done.wait (%p8171_p13), [#allocation11], 1024   ;;  %p8172_p0 = pmov %p8171_p13 }
  0xdb   : > { %6355 = vsyncadd (%p8172_p0), [#allocation11], 4294966272  ;;  %p8173_p8 = pmov %p8172_p0 }
  0xdc   : > { %p8174_p12 = pmov %p8172_p0 }
  0xdd   : > { %6357 = dma.done.wait (%p8173_p8), [#allocation14], 16  }
  0xde   : > { %6359 = vsyncadd (%p8174_p12), [#allocation14], 4294967280  ;;  %p8175_p6 = scmp.ne.s32.totalorder %s6454_s28, 0 }
  0xdf   : > { %v5630_v0 = vld [vmem:[%s6682_s20 + $0x4] ss:$24 sps:$4 sm:$0xff] (!%p8175_p6)   ;;  %v6390_v2 = vmov (!%p8175_p6), 0   ;;  %v5634_v3 = vld [vmem:[%s6682_s20] ss:$24 sps:$4 sm:$0xff] (!%p8175_p6)   ;;  %v5685_v39 = vld [vmem:[%s8083_s0 + $0x8] sm:$0xff] (!%p8175_p6)   ;;  %v489_v53 = vlaneseq (!%p8175_p6) }
  0xe0   : > { %430 = sbr.rel (%p8175_p6) target bundleno = 515 (0x203), region = 76  ;;  %v5632_v1 = vld [vmem:[%s6682_s20 + $0xc] ss:$24 sps:$4 sm:$0xff] (!%p8175_p6)   ;;  %815 = vmatprep.mubr.bf16.mxu0 (!%p8175_p6), %v6390_v2  ;;  %888 = vmatprep.mubr.bf16.mxu1 (!%p8175_p6), %v6390_v2  ;;  %v5635_v4 = vld [vmem:[%s6682_s20 + $0x8] ss:$24 sps:$4 sm:$0xff] (!%p8175_p6)   ;;  %v5692_v44 = vld [vmem:[%s8083_s0 + $0x10] sm:$0xff] (!%p8175_p6)  }
  0xe1   : > { %783 = vmatprep.subr.bf16.mxu0 (!%p8175_p6), %v5630_v0  ;;  %856 = vmatprep.subr.bf16.mxu1 (!%p8175_p6), %v5632_v1  ;;  %v5636_v5 = vld [vmem:[%s6682_s20 + $0x34] ss:$24 sps:$4 sm:$0xff] (!%p8175_p6)   ;;  %v5640_v7 = vld [vmem:[%s6682_s20 + $0x30] ss:$24 sps:$4 sm:$0xff] (!%p8175_p6)   ;;  %v5642_v9 = vld [vmem:[%s6682_s20 + $0x64] ss:$24 sps:$4 sm:$0xff] (!%p8175_p6)  }
  0xe2   : > { %784 = vmatpush1.bf16.msra.mxu0 (!%p8175_p6), %v5634_v3  ;;  %857 = vmatpush1.bf16.msra.mxu1 (!%p8175_p6), %v5635_v4  ;;  %v5638_v6 = vld [vmem:[%s6682_s20 + $0x3c] ss:$24 sps:$4 sm:$0xff] (!%p8175_p6)   ;;  %v5641_v8 = vld [vmem:[%s6682_s20 + $0x38] ss:$24 sps:$4 sm:$0xff] (!%p8175_p6)   ;;  %v5644_v10 = vld [vmem:[%s6682_s20 + $0x6c] ss:$24 sps:$4 sm:$0xff] (!%p8175_p6)  }
  0xe3   : > { %785 = vmatprep.subr.bf16.mxu0 (!%p8175_p6), %v5636_v5  ;;  %858 = vmatprep.subr.bf16.mxu1 (!%p8175_p6), %v5638_v6  ;;  %v5646_v11 = vld [vmem:[%s6682_s20 + $0x60] ss:$24 sps:$4 sm:$0xff] (!%p8175_p6)   ;;  %v5648_v13 = vld [vmem:[%s6682_s20 + $0x94] ss:$24 sps:$4 sm:$0xff] (!%p8175_p6)   ;;  %v5652_v15 = vld [vmem:[%s6682_s20 + $0x90] ss:$24 sps:$4 sm:$0xff] (!%p8175_p6)  }
  0xe4   : > { %v5647_v12 = vld [vmem:[%s6682_s20 + $0x68] ss:$24 sps:$4 sm:$0xff] (!%p8175_p6)   ;;  %v5650_v14 = vld [vmem:[%s6682_s20 + $0x9c] ss:$24 sps:$4 sm:$0xff] (!%p8175_p6)   ;;  %v5653_v16 = vld [vmem:[%s6682_s20 + $0x98] ss:$24 sps:$4 sm:$0xff] (!%p8175_p6)  }
  0xe5   : > { %v5654_v17 = vld [vmem:[%s6682_s20 + $0xc4] ss:$24 sps:$4 sm:$0xff] (!%p8175_p6)   ;;  %v5658_v19 = vld [vmem:[%s6682_s20 + $0xc0] ss:$24 sps:$4 sm:$0xff] (!%p8175_p6)   ;;  %v5660_v21 = vld [vmem:[%s6682_s20 + $0xf4] ss:$24 sps:$4 sm:$0xff] (!%p8175_p6)  }
  0xe6   : > { %786 = vmatpush1.bf16.msra.mxu0 (!%p8175_p6), %v5640_v7  ;;  %859 = vmatpush1.bf16.msra.mxu1 (!%p8175_p6), %v5641_v8  ;;  %v5656_v18 = vld [vmem:[%s6682_s20 + $0xcc] ss:$24 sps:$4 sm:$0xff] (!%p8175_p6)   ;;  %v5659_v20 = vld [vmem:[%s6682_s20 + $0xc8] ss:$24 sps:$4 sm:$0xff] (!%p8175_p6)   ;;  %v5662_v22 = vld [vmem:[%s6682_s20 + $0xfc] ss:$24 sps:$4 sm:$0xff] (!%p8175_p6)  }
  0xe7   : > { %787 = vmatprep.subr.bf16.mxu0 %v5642_v9  ;;  %860 = vmatprep.subr.bf16.mxu1 %v5644_v10  ;;  %v5664_v23 = vld [vmem:[%s6682_s20 + $0xf0] ss:$24 sps:$4 sm:$0xff]   ;;  %v5666_v25 = vld [vmem:[%s6682_s20 + $0x124] ss:$24 sps:$4 sm:$0xff]   ;;  %v5670_v27 = vld [vmem:[%s6682_s20 + $0x120] ss:$24 sps:$4 sm:$0xff]  }
  0xe8   : > { %v5665_v24 = vld [vmem:[%s6682_s20 + $0xf8] ss:$24 sps:$4 sm:$0xff]   ;;  %v5668_v26 = vld [vmem:[%s6682_s20 + $0x12c] ss:$24 sps:$4 sm:$0xff]   ;;  %v5671_v28 = vld [vmem:[%s6682_s20 + $0x128] ss:$24 sps:$4 sm:$0xff]  }
  0xe9   : > { %v5672_v29 = vld [vmem:[%s6682_s20 + $0x154] ss:$24 sps:$4 sm:$0xff]   ;;  %v5676_v31 = vld [vmem:[%s6682_s20 + $0x150] ss:$24 sps:$4 sm:$0xff]   ;;  %v6751_v34 = vld [vmem:[%s8083_s0] sm:$0xff]   ;;  %v6790_v54 = vshrl.u32 %v489_v53, 7 }
  0xea   : > { %788 = vmatpush1.bf16.msra.mxu0 %v5646_v11  ;;  %861 = vmatpush1.bf16.msra.mxu1 %v5647_v12  ;;  %v5674_v30 = vld [vmem:[%s6682_s20 + $0x15c] ss:$24 sps:$4 sm:$0xff]   ;;  %v5677_v32 = vld [vmem:[%s6682_s20 + $0x158] ss:$24 sps:$4 sm:$0xff]   ;;  %v6795_v57 = vld [vmem:[%s6695_s22] sm:$0x3f] }
  0xeb   : > { %789 = vmatprep.subr.bf16.mxu0 %v5648_v13  ;;  %862 = vmatprep.subr.bf16.mxu1 %v5650_v14  ;;  %v5681_v33 = vld [vmem:[%s6682_s20 + $0x14] ss:$24 sps:$4 sm:$0xff]   ;;  %v5679_v35 = vld [vmem:[%s6682_s20 + $0x10] ss:$24 sps:$4 sm:$0xff]   ;;  %v5684_v36 = vld [vmem:[%s6682_s20 + $0x44] ss:$24 sps:$4 sm:$0xff]  }
  0xec   : > { %v5682_v37 = vld [vmem:[%s6682_s20 + $0x40] ss:$24 sps:$4 sm:$0xff]   ;;  %v5688_v38 = vld [vmem:[%s6682_s20 + $0x74] ss:$24 sps:$4 sm:$0xff]   ;;  %v5686_v40 = vld [vmem:[%s6682_s20 + $0x70] ss:$24 sps:$4 sm:$0xff]  }
  0xed   : > { %v5691_v41 = vld [vmem:[%s6682_s20 + $0xa4] ss:$24 sps:$4 sm:$0xff]   ;;  %v5689_v42 = vld [vmem:[%s6682_s20 + $0xa0] ss:$24 sps:$4 sm:$0xff]   ;;  %v5695_v43 = vld [vmem:[%s6682_s20 + $0xd4] ss:$24 sps:$4 sm:$0xff]  }
  0xee   : > { %790 = vmatpush1.bf16.msra.mxu0 %v5652_v15  ;;  %863 = vmatpush1.bf16.msra.mxu1 %v5653_v16  ;;  %v5693_v45 = vld [vmem:[%s6682_s20 + $0xd0] ss:$24 sps:$4 sm:$0xff]   ;;  %v5698_v46 = vld [vmem:[%s6682_s20 + $0x104] ss:$24 sps:$4 sm:$0xff]   ;;  %v5696_v47 = vld [vmem:[%s6682_s20 + $0x100] ss:$24 sps:$4 sm:$0xff]  }
  0xef   : > { %791 = vmatprep.subr.bf16.mxu0 %v5654_v17  ;;  %864 = vmatprep.subr.bf16.mxu1 %v5656_v18  ;;  %v5702_v48 = vld [vmem:[%s6682_s20 + $0x134] ss:$24 sps:$4 sm:$0xff]   ;;  %v5699_v49 = vld [vmem:[%s8083_s0 + $0x18] sm:$0xff]   ;;  %v5700_v50 = vld [vmem:[%s6682_s20 + $0x130] ss:$24 sps:$4 sm:$0xff]   ;;  %v491_v55 = vsub.s32 0, %v6790_v54 }
  0xf0   : > { %v5705_v51 = vld [vmem:[%s6682_s20 + $0x164] ss:$24 sps:$4 sm:$0xff]   ;;  %v5703_v52 = vld [vmem:[%s6682_s20 + $0x160] ss:$24 sps:$4 sm:$0xff]   ;;  %v499_v56 = vsub.s32 2, %v6790_v54  ;;  %v495_v58 = vsub.s32 1, %v6790_v54 }
  0xf1   : > { %v503_v59 = vsub.s32 3, %v6790_v54  ;;  %v6800_v60 = vrot.slane %v6795_v57, %v491_v55  ;;  %v507_v55 = vsub.s32 4, %v6790_v54 }
  0xf2   : > { %792 = vmatpush1.bf16.msra.mxu0 %v5658_v19  ;;  %865 = vmatpush1.bf16.msra.mxu1 %v5659_v20  ;;  %v6803_v61 = vrot.slane %v6795_v57, %v499_v56  ;;  %v6806_v62 = vrot.slane %v6795_v57, %v495_v58 }
  0xf3   : > { %793 = vmatprep.subr.bf16.mxu0 %v5660_v21  ;;  %866 = vmatprep.subr.bf16.mxu1 %v5662_v22  ;;  %v6809_v63 = vrot.slane %v6795_v57, %v503_v59 }
  0xf6   : > { %794 = vmatpush1.bf16.msra.mxu0 %v5664_v23  ;;  %867 = vmatpush1.bf16.msra.mxu1 %v5665_v24 }
  0xf7   : > { %795 = vmatprep.subr.bf16.mxu0 %v5666_v25  ;;  %868 = vmatprep.subr.bf16.mxu1 %v5668_v26 }
  0xfa   : > { %796 = vmatpush1.bf16.msra.mxu0 %v5670_v27  ;;  %869 = vmatpush1.bf16.msra.mxu1 %v5671_v28 }
  0xfb   : > { %797 = vmatprep.subr.bf16.mxu0 %v5672_v29  ;;  %870 = vmatprep.subr.bf16.mxu1 %v5674_v30 }
  0xfe   : > { %798 = vmatpush1.bf16.msra.mxu0 %v5676_v31  ;;  %871 = vmatpush1.bf16.msra.mxu1 %v5677_v32 }
  0xff   : > { %929 = vmatprep.subr.bf16.mxu0 %v5681_v33  ;;  %5453 = vmatprep.subr.bf16.mxu1 %v5681_v33 }
 0x101   : > { %816 = vmatmul.mubr.bf16.vlgmr.msra.gmra.mrb[0].mxu0 %v6751_v34  ;;  %889 = vmatmul.mubr.bf16.vlgmr.msra.gmra.mrb[0].mxu1 %v6751_v34 }
 0x102   : > { %930 = vmatpush1.bf16.msra.mxu0 %v5679_v35  ;;  %5461 = vmatpush1.bf16.msra.mxu1 %v5679_v35 }
 0x103   : > { %931 = vmatprep.subr.bf16.mxu0 %v5684_v36  ;;  %5454 = vmatprep.subr.bf16.mxu1 %v5684_v36 }
 0x104   : > { %825 = vmatprep.mubr.bf16.mxu0 %v6390_v2  ;;  %898 = vmatprep.mubr.bf16.mxu1 %v6390_v2 }
 0x106   : > { %932 = vmatpush1.bf16.msra.mxu0 %v5682_v37  ;;  %5462 = vmatpush1.bf16.msra.mxu1 %v5682_v37 }
 0x107   : > { %933 = vmatprep.subr.bf16.mxu0 %v5688_v38  ;;  %5455 = vmatprep.subr.bf16.mxu1 %v5688_v38 }
 0x109   : > { %826 = vmatmul.mubr.bf16.gmra.mrb[4].mxu0 %v5685_v39  ;;  %899 = vmatmul.mubr.bf16.gmra.mrb[4].mxu1 %v5685_v39 }
 0x10a   : > { %934 = vmatpush1.bf16.msra.mxu0 %v5686_v40  ;;  %5463 = vmatpush1.bf16.msra.mxu1 %v5686_v40 }
 0x10b   : > { %935 = vmatprep.subr.bf16.mxu0 %v5691_v41  ;;  %5456 = vmatprep.subr.bf16.mxu1 %v5691_v41 }
 0x10c   : > { %835 = vmatprep.mubr.bf16.mxu0 %v6390_v2  ;;  %908 = vmatprep.mubr.bf16.mxu1 %v6390_v2 }
 0x10e   : > { %936 = vmatpush1.bf16.msra.mxu0 %v5689_v42  ;;  %5464 = vmatpush1.bf16.msra.mxu1 %v5689_v42 }
 0x10f   : > { %937 = vmatprep.subr.bf16.mxu0 %v5695_v43  ;;  %5457 = vmatprep.subr.bf16.mxu1 %v5695_v43 }
 0x111   : > { %836 = vmatmul.mubr.bf16.gmra.mrb[8].mxu0 %v5692_v44  ;;  %909 = vmatmul.mubr.bf16.gmra.mrb[8].mxu1 %v5692_v44 }
 0x112   : > { %938 = vmatpush1.bf16.msra.mxu0 %v5693_v45  ;;  %5465 = vmatpush1.bf16.msra.mxu1 %v5693_v45 }
 0x113   : > { %939 = vmatprep.subr.bf16.mxu0 %v5698_v46  ;;  %5458 = vmatprep.subr.bf16.mxu1 %v5698_v46 }
 0x114   : > { %845 = vmatprep.mubr.bf16.mxu0 %v6390_v2  ;;  %918 = vmatprep.mubr.bf16.mxu1 %v6390_v2 }
 0x116   : > { %940 = vmatpush1.bf16.msra.mxu0 %v5696_v47  ;;  %5466 = vmatpush1.bf16.msra.mxu1 %v5696_v47 }
 0x117   : > { %941 = vmatprep.subr.bf16.mxu0 %v5702_v48  ;;  %5459 = vmatprep.subr.bf16.mxu1 %v5702_v48 }
 0x119   : > { %846 = vmatmul.mubr.bf16.gmra.mrb[12].mxu0 %v5699_v49  ;;  %919 = vmatmul.mubr.bf16.gmra.mrb[12].mxu1 %v5699_v49 }
 0x11a   : > { %942 = vmatpush1.bf16.msra.mxu0 %v5700_v50  ;;  %5467 = vmatpush1.bf16.msra.mxu1 %v5700_v50 }
 0x11b   : > { %943 = vmatprep.subr.bf16.mxu0 %v5705_v51  ;;  %5460 = vmatprep.subr.bf16.mxu1 %v5705_v51 }
 0x11c   : > { %961 = vmatprep.mubr.bf16.mxu0 %v6390_v2  ;;  %981 = vmatprep.mubr.bf16.mxu1 %v6390_v2 }
 0x11e   : > { %944 = vmatpush1.bf16.msra.mxu0 %v5703_v52  ;;  %5468 = vmatpush1.bf16.msra.mxu1 %v5703_v52 }
 0x121   : > { %962 = vmatmul.mubr.bf16.vlgmr.msra.gmra.mrb[16].mxu0 %v6751_v34  ;;  %982 = vmatmul.mubr.bf16.vlgmr.msra.gmra.mrb[16].mxu1 %v5692_v44 }
 0x122   : > { %971 = vmatprep.mubr.bf16.mxu0 %v6390_v2  ;;  %991 = vmatprep.mubr.bf16.mxu1 %v6390_v2 }
 0x129   : > { %972 = vmatmul.mubr.bf16.gmra.mrb[20].mxu0 %v5685_v39  ;;  %992 = vmatmul.mubr.bf16.gmra.mrb[20].mxu1 %v5699_v49 }
 0x1d4   : > { %v817_v0 = vpop.f32.mrb[0].mxu0  ;;  %v890_v1 = vpop.f32.mrb[0].mxu1 }
 0x1d5   : > { %v818_v2 = vadd.f32 %v817_v0, %v6800_v60  ;;  %v891_v3 = vadd.f32 %v890_v1, %v6803_v61  ;;  %v819_v4 = vpop.f32.mrb[1].mxu0  ;;  %v892_v5 = vpop.f32.mrb[1].mxu1  ;;  %v511_v1 = vsub.s32 5, %v6790_v54 }
 0x1d6   : > { %v820_v6 = vadd.f32 %v819_v4, %v6806_v62  ;;  %v893_v7 = vadd.f32 %v892_v5, %v6809_v63  ;;  %v821_v8 = vpop.f32.mrb[2].mxu0  ;;  %v894_v9 = vpop.f32.mrb[2].mxu1 }
 0x1d7   : > { %1002 = vst [vmem:[#allocation4] sm:$0xff] %v818_v2  ;;  %1004 = vst [vmem:[#allocation4 + $0x10] sm:$0xff] %v891_v3  ;;  %v822_v10 = vadd.f32 %v821_v8, %v6800_v60  ;;  %v895_v11 = vadd.f32 %v894_v9, %v6803_v61  ;;  %v823_v12 = vpop.f32.mrb[3].mxu0  ;;  %v896_v13 = vpop.f32.mrb[3].mxu1  ;;  %v508_v8 = vrot.slane %v6795_v57, %v507_v55 }
 0x1d8   : > { %1003 = vst [vmem:[#allocation4 + $0x8] sm:$0xff] %v820_v6  ;;  %1005 = vst [vmem:[#allocation4 + $0x18] sm:$0xff] %v893_v7  ;;  %v824_v14 = vadd.f32 %v823_v12, %v6806_v62  ;;  %v897_v15 = vadd.f32 %v896_v13, %v6809_v63  ;;  %v512_v54 = vrot.slane %v6795_v57, %v511_v1 }
 0x1d9   : > { %1008 = vst [vmem:[#allocation4 + $0x30] sm:$0xff] %v822_v10  ;;  %1010 = vst [vmem:[#allocation4 + $0x40] sm:$0xff] %v895_v11 }
 0x1da   : > { %1009 = vst [vmem:[#allocation4 + $0x38] sm:$0xff] %v824_v14  ;;  %1011 = vst [vmem:[#allocation4 + $0x48] sm:$0xff] %v897_v15 }
 0x1dc   : > { %v827_v16 = vpop.f32.mrb[4].mxu0  ;;  %v900_v17 = vpop.f32.mrb[4].mxu1 }
 0x1dd   : > { %v828_v18 = vadd.f32 %v827_v16, %v6800_v60  ;;  %v901_v19 = vadd.f32 %v900_v17, %v6803_v61  ;;  %v829_v20 = vpop.f32.mrb[5].mxu0  ;;  %v902_v21 = vpop.f32.mrb[5].mxu1 }
 0x1de   : > { %v830_v22 = vadd.f32 %v829_v20, %v6806_v62  ;;  %v903_v23 = vadd.f32 %v902_v21, %v6809_v63  ;;  %v831_v24 = vpop.f32.mrb[6].mxu0  ;;  %v904_v25 = vpop.f32.mrb[6].mxu1 }
 0x1df   : > { %1014 = vst [vmem:[#allocation4 + $0x60] sm:$0xff] %v828_v18  ;;  %1016 = vst [vmem:[#allocation4 + $0x70] sm:$0xff] %v901_v19  ;;  %v832_v26 = vadd.f32 %v831_v24, %v6800_v60  ;;  %v905_v27 = vadd.f32 %v904_v25, %v6803_v61  ;;  %v833_v28 = vpop.f32.mrb[7].mxu0  ;;  %v906_v29 = vpop.f32.mrb[7].mxu1 }
 0x1e0   : > { %1015 = vst [vmem:[#allocation4 + $0x68] sm:$0xff] %v830_v22  ;;  %1017 = vst [vmem:[#allocation4 + $0x78] sm:$0xff] %v903_v23  ;;  %v834_v30 = vadd.f32 %v833_v28, %v6806_v62  ;;  %v907_v31 = vadd.f32 %v906_v29, %v6809_v63 }
 0x1e1   : > { %1020 = vst [vmem:[#allocation4 + $0x90] sm:$0xff] %v832_v26  ;;  %1022 = vst [vmem:[#allocation4 + $0xa0] sm:$0xff] %v905_v27 }
 0x1e2   : > { %1021 = vst [vmem:[#allocation4 + $0x98] sm:$0xff] %v834_v30  ;;  %1023 = vst [vmem:[#allocation4 + $0xa8] sm:$0xff] %v907_v31 }
 0x1e4   : > { %v837_v32 = vpop.f32.mrb[8].mxu0  ;;  %v910_v33 = vpop.f32.mrb[8].mxu1 }
 0x1e5   : > { %v838_v34 = vadd.f32 %v837_v32, %v6800_v60  ;;  %v911_v35 = vadd.f32 %v910_v33, %v6803_v61  ;;  %v839_v36 = vpop.f32.mrb[9].mxu0  ;;  %v912_v37 = vpop.f32.mrb[9].mxu1 }
 0x1e6   : > { %v840_v38 = vadd.f32 %v839_v36, %v6806_v62  ;;  %v913_v39 = vadd.f32 %v912_v37, %v6809_v63  ;;  %v841_v40 = vpop.f32.mrb[10].mxu0  ;;  %v914_v41 = vpop.f32.mrb[10].mxu1 }
 0x1e7   : > { %1026 = vst [vmem:[#allocation4 + $0xc0] sm:$0xff] %v838_v34  ;;  %1028 = vst [vmem:[#allocation4 + $0xd0] sm:$0xff] %v911_v35  ;;  %v842_v42 = vadd.f32 %v841_v40, %v6800_v60  ;;  %v915_v43 = vadd.f32 %v914_v41, %v6803_v61  ;;  %v843_v44 = vpop.f32.mrb[11].mxu0  ;;  %v916_v45 = vpop.f32.mrb[11].mxu1 }
 0x1e8   : > { %1027 = vst [vmem:[#allocation4 + $0xc8] sm:$0xff] %v840_v38  ;;  %1029 = vst [vmem:[#allocation4 + $0xd8] sm:$0xff] %v913_v39  ;;  %v844_v46 = vadd.f32 %v843_v44, %v6806_v62  ;;  %v917_v47 = vadd.f32 %v916_v45, %v6809_v63 }
 0x1e9   : > { %1032 = vst [vmem:[#allocation4 + $0xf0] sm:$0xff] %v842_v42  ;;  %1034 = vst [vmem:[#allocation4 + $0x100] sm:$0xff] %v915_v43 }
 0x1ea   : > { %1033 = vst [vmem:[#allocation4 + $0xf8] sm:$0xff] %v844_v46  ;;  %1035 = vst [vmem:[#allocation4 + $0x108] sm:$0xff] %v917_v47 }
 0x1ec   : > { %v847_v48 = vpop.f32.mrb[12].mxu0  ;;  %v920_v49 = vpop.f32.mrb[12].mxu1 }
 0x1ed   : > { %v848_v50 = vadd.f32 %v847_v48, %v6800_v60  ;;  %v921_v51 = vadd.f32 %v920_v49, %v6803_v61  ;;  %v849_v52 = vpop.f32.mrb[13].mxu0  ;;  %v922_v53 = vpop.f32.mrb[13].mxu1 }
 0x1ee   : > { %v850_v56 = vadd.f32 %v849_v52, %v6806_v62  ;;  %v923_v58 = vadd.f32 %v922_v53, %v6809_v63  ;;  %v851_v59 = vpop.f32.mrb[14].mxu0  ;;  %v924_v0 = vpop.f32.mrb[14].mxu1 }
 0x1ef   : > { %1038 = vst [vmem:[#allocation4 + $0x120] sm:$0xff] %v848_v50  ;;  %1040 = vst [vmem:[#allocation4 + $0x130] sm:$0xff] %v921_v51  ;;  %v852_v2 = vadd.f32 %v851_v59, %v6800_v60  ;;  %v925_v3 = vadd.f32 %v924_v0, %v6803_v61  ;;  %v853_v4 = vpop.f32.mrb[15].mxu0  ;;  %v926_v5 = vpop.f32.mrb[15].mxu1 }
 0x1f0   : > { %1039 = vst [vmem:[#allocation4 + $0x128] sm:$0xff] %v850_v56  ;;  %1041 = vst [vmem:[#allocation4 + $0x138] sm:$0xff] %v923_v58  ;;  %v854_v6 = vadd.f32 %v853_v4, %v6806_v62  ;;  %v927_v7 = vadd.f32 %v926_v5, %v6809_v63 }
 0x1f1   : > { %1044 = vst [vmem:[#allocation4 + $0x150] sm:$0xff] %v852_v2  ;;  %1046 = vst [vmem:[#allocation4 + $0x160] sm:$0xff] %v925_v3 }
 0x1f2   : > { %1045 = vst [vmem:[#allocation4 + $0x158] sm:$0xff] %v854_v6  ;;  %1047 = vst [vmem:[#allocation4 + $0x168] sm:$0xff] %v927_v7 }
 0x1f4   : > { %v963_v9 = vpop.f32.mrb[16].mxu0  ;;  %v983_v60 = vpop.f32.mrb[16].mxu1 }
 0x1f5   : > { %v964_v10 = vadd.f32 %v963_v9, %v508_v8  ;;  %v984_v61 = vadd.f32 %v983_v60, %v508_v8  ;;  %v965_v11 = vpop.f32.mrb[17].mxu0  ;;  %v985_v12 = vpop.f32.mrb[17].mxu1 }
 0x1f6   : > { %v966_v13 = vadd.f32 %v965_v11, %v512_v54  ;;  %v986_v14 = vadd.f32 %v985_v12, %v512_v54  ;;  %v967_v15 = vpop.f32.mrb[18].mxu0  ;;  %v987_v62 = vpop.f32.mrb[18].mxu1 }
 0x1f7   : > { %1006 = vst [vmem:[#allocation4 + $0x20] sm:$0xff] %v964_v10  ;;  %1030 = vst [vmem:[#allocation4 + $0xe0] sm:$0xff] %v984_v61  ;;  %v968_v63 = vadd.f32 %v967_v15, %v508_v8  ;;  %v988_v16 = vadd.f32 %v987_v62, %v508_v8  ;;  %v969_v17 = vpop.f32.mrb[19].mxu0  ;;  %v989_v18 = vpop.f32.mrb[19].mxu1 }
 0x1f8   : > { %1007 = vst [vmem:[#allocation4 + $0x28] sm:$0xff] %v966_v13  ;;  %1031 = vst [vmem:[#allocation4 + $0xe8] sm:$0xff] %v986_v14  ;;  %v970_v19 = vadd.f32 %v969_v17, %v512_v54  ;;  %v990_v57 = vadd.f32 %v989_v18, %v512_v54 }
 0x1f9   : > { %1012 = vst [vmem:[#allocation4 + $0x50] sm:$0xff] %v968_v63  ;;  %1036 = vst [vmem:[#allocation4 + $0x110] sm:$0xff] %v988_v16 }
 0x1fa   : > { %1013 = vst [vmem:[#allocation4 + $0x58] sm:$0xff] %v970_v19  ;;  %1037 = vst [vmem:[#allocation4 + $0x118] sm:$0xff] %v990_v57 }
 0x1fc   : > { %v973_v20 = vpop.f32.mrb[20].mxu0  ;;  %v993_v21 = vpop.f32.mrb[20].mxu1 }
 0x1fd   : > { %v974_v22 = vadd.f32 %v973_v20, %v508_v8  ;;  %v994_v23 = vadd.f32 %v993_v21, %v508_v8  ;;  %v975_v24 = vpop.f32.mrb[21].mxu0  ;;  %v995_v25 = vpop.f32.mrb[21].mxu1 }
 0x1fe   : > { %v976_v26 = vadd.f32 %v975_v24, %v512_v54  ;;  %v996_v27 = vadd.f32 %v995_v25, %v512_v54  ;;  %v977_v28 = vpop.f32.mrb[22].mxu0  ;;  %v997_v29 = vpop.f32.mrb[22].mxu1 }
 0x1ff   : > { %1018 = vst [vmem:[#allocation4 + $0x80] sm:$0xff] %v974_v22  ;;  %1042 = vst [vmem:[#allocation4 + $0x140] sm:$0xff] %v994_v23  ;;  %v978_v30 = vadd.f32 %v977_v28, %v508_v8  ;;  %v998_v31 = vadd.f32 %v997_v29, %v508_v8  ;;  %v979_v32 = vpop.f32.mrb[23].mxu0  ;;  %v999_v33 = vpop.f32.mrb[23].mxu1 }
 0x200   : > { %1019 = vst [vmem:[#allocation4 + $0x88] sm:$0xff] %v976_v26  ;;  %1043 = vst [vmem:[#allocation4 + $0x148] sm:$0xff] %v996_v27  ;;  %v980_v34 = vadd.f32 %v979_v32, %v512_v54  ;;  %v1000_v35 = vadd.f32 %v999_v33, %v512_v54 }
 0x201   : > { %1024 = vst [vmem:[#allocation4 + $0xb0] sm:$0xff] %v978_v30  ;;  %1048 = vst [vmem:[#allocation4 + $0x170] sm:$0xff] %v998_v31 }
 0x202   : > { %1025 = vst [vmem:[#allocation4 + $0xb8] sm:$0xff] %v980_v34  ;;  %1049 = vst [vmem:[#allocation4 + $0x178] sm:$0xff] %v1000_v35 }
 0x203 PF: > { %p4680_p4 = scmp.le.s32.totalorder %s6454_s28, 0 }
 0x204   : > { %v5706_v36 = vld [vmem:[%s6682_s20 + $0x184] ss:$24 sps:$4 sm:$0xff] (!%p4680_p4)   ;;  %v5708_v37 = vld [vmem:[%s6682_s20 + $0x194] ss:$24 sps:$4 sm:$0xff] (!%p4680_p4)   ;;  %v6391_v38 = vmov (!%p4680_p4), 0  }
 0x205   : > { %1053 = sbr.rel (%p4680_p4) target bundleno = 856 (0x358), region = 80  ;;  %1447 = vmatprep.mubr.bf16.mxu1 (!%p4680_p4), %v6391_v38  ;;  %1593 = vmatprep.mubr.bf16.mxu0 (!%p4680_p4), %v6391_v38  ;;  %v5710_v39 = vld [vmem:[%s6682_s20 + $0x180] ss:$24 sps:$4 sm:$0xff] (!%p4680_p4)   ;;  %v5711_v40 = vld [vmem:[%s6682_s20 + $0x190] ss:$24 sps:$4 sm:$0xff] (!%p4680_p4)  }
 0x206   : > { %1415 = vmatprep.subr.bf16.mxu1 (!%p4680_p4), %v5706_v36  ;;  %1561 = vmatprep.subr.bf16.mxu0 (!%p4680_p4), %v5708_v37  ;;  %v5712_v41 = vld [vmem:[%s6682_s20 + $0x1b4] ss:$24 sps:$4 sm:$0xff] (!%p4680_p4)   ;;  %v5714_v42 = vld [vmem:[%s6682_s20 + $0x1c4] ss:$24 sps:$4 sm:$0xff] (!%p4680_p4)   ;;  %v5716_v43 = vld [vmem:[%s6682_s20 + $0x1b0] ss:$24 sps:$4 sm:$0xff] (!%p4680_p4)  }
 0x207   : > { %1416 = vmatpush1.bf16.msra.mxu1 (!%p4680_p4), %v5710_v39  ;;  %1562 = vmatpush1.bf16.msra.mxu0 (!%p4680_p4), %v5711_v40  ;;  %v5717_v44 = vld [vmem:[%s6682_s20 + $0x1c0] ss:$24 sps:$4 sm:$0xff] (!%p4680_p4)   ;;  %v5718_v45 = vld [vmem:[%s6682_s20 + $0x1e4] ss:$24 sps:$4 sm:$0xff] (!%p4680_p4)   ;;  %v5720_v46 = vld [vmem:[%s6682_s20 + $0x1f4] ss:$24 sps:$4 sm:$0xff] (!%p4680_p4)  }
 0x208   : > { %1417 = vmatprep.subr.bf16.mxu1 (!%p4680_p4), %v5712_v41  ;;  %1563 = vmatprep.subr.bf16.mxu0 (!%p4680_p4), %v5714_v42  ;;  %v5722_v47 = vld [vmem:[%s6682_s20 + $0x1e0] ss:$24 sps:$4 sm:$0xff] (!%p4680_p4)   ;;  %v5723_v48 = vld [vmem:[%s6682_s20 + $0x1f0] ss:$24 sps:$4 sm:$0xff] (!%p4680_p4)   ;;  %v5724_v49 = vld [vmem:[%s6682_s20 + $0x214] ss:$24 sps:$4 sm:$0xff] (!%p4680_p4)  }
 0x209   : > { %v5726_v50 = vld [vmem:[%s6682_s20 + $0x224] ss:$24 sps:$4 sm:$0xff] (!%p4680_p4)   ;;  %v5728_v51 = vld [vmem:[%s6682_s20 + $0x210] ss:$24 sps:$4 sm:$0xff] (!%p4680_p4)   ;;  %v5729_v52 = vld [vmem:[%s6682_s20 + $0x220] ss:$24 sps:$4 sm:$0xff] (!%p4680_p4)  }
 0x20a   : > { %v5730_v53 = vld [vmem:[%s6682_s20 + $0x244] ss:$24 sps:$4 sm:$0xff] (!%p4680_p4)   ;;  %v5732_v55 = vld [vmem:[%s6682_s20 + $0x254] ss:$24 sps:$4 sm:$0xff] (!%p4680_p4)   ;;  %v5734_v56 = vld [vmem:[%s6682_s20 + $0x240] ss:$24 sps:$4 sm:$0xff] (!%p4680_p4)  }
 0x20b   : > { %1418 = vmatpush1.bf16.msra.mxu1 (!%p4680_p4), %v5716_v43  ;;  %1564 = vmatpush1.bf16.msra.mxu0 (!%p4680_p4), %v5717_v44  ;;  %v5735_v58 = vld [vmem:[%s6682_s20 + $0x250] ss:$24 sps:$4 sm:$0xff] (!%p4680_p4)   ;;  %v5736_v59 = vld [vmem:[%s6682_s20 + $0x274] ss:$24 sps:$4 sm:$0xff] (!%p4680_p4)   ;;  %v5738_v0 = vld [vmem:[%s6682_s20 + $0x284] ss:$24 sps:$4 sm:$0xff] (!%p4680_p4)  }
 0x20c   : > { %1419 = vmatprep.subr.bf16.mxu1 %v5718_v45  ;;  %1565 = vmatprep.subr.bf16.mxu0 %v5720_v46  ;;  %v5740_v1 = vld [vmem:[%s6682_s20 + $0x270] ss:$24 sps:$4 sm:$0xff]   ;;  %v5741_v2 = vld [vmem:[%s6682_s20 + $0x280] ss:$24 sps:$4 sm:$0xff]   ;;  %v5742_v3 = vld [vmem:[%s6682_s20 + $0x2a4] ss:$24 sps:$4 sm:$0xff]  }
 0x20d   : > { %v5744_v4 = vld [vmem:[%s6682_s20 + $0x2b4] ss:$24 sps:$4 sm:$0xff]   ;;  %v5746_v5 = vld [vmem:[%s6682_s20 + $0x2a0] ss:$24 sps:$4 sm:$0xff]   ;;  %v5747_v6 = vld [vmem:[%s6682_s20 + $0x2b0] ss:$24 sps:$4 sm:$0xff]  }
 0x20e   : > { %v5748_v7 = vld [vmem:[%s6682_s20 + $0x2d4] ss:$24 sps:$4 sm:$0xff]   ;;  %v5750_v8 = vld [vmem:[%s6682_s20 + $0x2e4] ss:$24 sps:$4 sm:$0xff]   ;;  %v5752_v54 = vld [vmem:[%s6682_s20 + $0x2d0] ss:$24 sps:$4 sm:$0xff]  }
 0x20f   : > { %1420 = vmatpush1.bf16.msra.mxu1 %v5722_v47  ;;  %1566 = vmatpush1.bf16.msra.mxu0 %v5723_v48  ;;  %v5753_v9 = vld [vmem:[%s6682_s20 + $0x2e0] ss:$24 sps:$4 sm:$0xff]   ;;  %v1067_v10 = vld [vmem:[#allocation3 + $0x8] sm:$0xff]  ;;  %v5759_v11 = vld [vmem:[%s6682_s20 + $0x4] ss:$24 sps:$4 sm:$0xff]  }
 0x210   : > { %1421 = vmatprep.subr.bf16.mxu1 %v5724_v49  ;;  %1567 = vmatprep.subr.bf16.mxu0 %v5726_v50  ;;  %v1066_v60 = vld [vmem:[#allocation3] sm:$0xff]  ;;  %v5762_v15 = vld [vmem:[%s6682_s20 + $0x1bc] ss:$24 sps:$4 sm:$0xff]   ;;  %v5760_v63 = vld [vmem:[%s6682_s20 + $0x1b8] ss:$24 sps:$4 sm:$0xff]  }
 0x211   : > { %v5756_v61 = vld [vmem:[%s6682_s20 + $0x18c] ss:$24 sps:$4 sm:$0xff]   ;;  %v6884_v12 = vpack.c.bf16 %v1067_v10, %v1066_v60  ;;  %v5754_v13 = vld [vmem:[%s6682_s20 + $0x188] ss:$24 sps:$4 sm:$0xff]   ;;  %v1068_v17 = vld [vmem:[#allocation3 + $0x10] sm:$0xff] }
 0x212   : > { %v5757_v14 = vld [vmem:[%s6682_s20] ss:$24 sps:$4 sm:$0xff]   ;;  %v5765_v62 = vld [vmem:[%s6682_s20 + $0x34] ss:$24 sps:$4 sm:$0xff]   ;;  %v5763_v16 = vld [vmem:[%s6682_s20 + $0x30] ss:$24 sps:$4 sm:$0xff]  }
 0x213   : > { %1422 = vmatpush1.bf16.msra.mxu1 %v5728_v51  ;;  %1568 = vmatpush1.bf16.msra.mxu0 %v5729_v52  ;;  %v1069_v18 = vld [vmem:[#allocation3 + $0x18] sm:$0xff]  ;;  %v5768_v19 = vld [vmem:[%s6682_s20 + $0x1ec] ss:$24 sps:$4 sm:$0xff]   ;;  %v5766_v21 = vld [vmem:[%s6682_s20 + $0x1e8] ss:$24 sps:$4 sm:$0xff]  }
 0x214   : > { %1423 = vmatprep.subr.bf16.mxu1 %v5730_v53  ;;  %1569 = vmatprep.subr.bf16.mxu0 %v5732_v55  ;;  %v5771_v57 = vld [vmem:[%s6682_s20 + $0x64] ss:$24 sps:$4 sm:$0xff]   ;;  %v6898_v20 = vpack.c.bf16 %v1069_v18, %v1068_v17  ;;  %v5769_v22 = vld [vmem:[%s6682_s20 + $0x60] ss:$24 sps:$4 sm:$0xff]   ;;  %v5777_v24 = vld [vmem:[%s6682_s20 + $0x94] ss:$24 sps:$4 sm:$0xff]  }
 0x215   : > { %v5774_v23 = vld [vmem:[%s6682_s20 + $0x21c] ss:$24 sps:$4 sm:$0xff]   ;;  %v5772_v25 = vld [vmem:[%s6682_s20 + $0x218] ss:$24 sps:$4 sm:$0xff]   ;;  %v1070_v27 = vld [vmem:[#allocation3 + $0x20] sm:$0xff] }
 0x216   : > { %v5775_v26 = vld [vmem:[%s6682_s20 + $0x90] ss:$24 sps:$4 sm:$0xff]   ;;  %v5780_v29 = vld [vmem:[%s6682_s20 + $0x24c] ss:$24 sps:$4 sm:$0xff]   ;;  %v5781_v33 = vld [vmem:[%s6682_s20 + $0xc0] ss:$24 sps:$4 sm:$0xff]  }
 0x217   : > { %1424 = vmatpush1.bf16.msra.mxu1 %v5734_v56  ;;  %1570 = vmatpush1.bf16.msra.mxu0 %v5735_v58  ;;  %v1071_v28 = vld [vmem:[#allocation3 + $0x28] sm:$0xff]  ;;  %v5783_v30 = vld [vmem:[%s6682_s20 + $0xc4] ss:$24 sps:$4 sm:$0xff]   ;;  %v5784_v36 = vld [vmem:[%s6682_s20 + $0x278] ss:$24 sps:$4 sm:$0xff]  }
 0x218   : > { %1425 = vmatprep.subr.bf16.mxu1 %v5736_v59  ;;  %1571 = vmatprep.subr.bf16.mxu0 %v5738_v0  ;;  %v6912_v31 = vpack.c.bf16 %v1071_v28, %v1070_v27  ;;  %v5778_v32 = vld [vmem:[%s6682_s20 + $0x248] ss:$24 sps:$4 sm:$0xff]   ;;  %v5786_v34 = vld [vmem:[%s6682_s20 + $0x27c] ss:$24 sps:$4 sm:$0xff]   ;;  %v5792_v41 = vld [vmem:[%s6682_s20 + $0x2ac] ss:$24 sps:$4 sm:$0xff]  }
 0x219   : > { %v5789_v35 = vld [vmem:[%s6682_s20 + $0xf4] ss:$24 sps:$4 sm:$0xff]   ;;  %v5787_v37 = vld [vmem:[%s6682_s20 + $0xf0] ss:$24 sps:$4 sm:$0xff]   ;;  %v1073_v40 = vld [vmem:[#allocation3 + $0x38] sm:$0xff] }
 0x21a   : > { %v1072_v39 = vld [vmem:[#allocation3 + $0x30] sm:$0xff]  ;;  %v5795_v42 = vld [vmem:[%s6682_s20 + $0x124] ss:$24 sps:$4 sm:$0xff]   ;;  %v5790_v44 = vld [vmem:[%s6682_s20 + $0x2a8] ss:$24 sps:$4 sm:$0xff]  }
 0x21b   : > { %1426 = vmatpush1.bf16.msra.mxu1 %v5740_v1  ;;  %1572 = vmatpush1.bf16.msra.mxu0 %v5741_v2  ;;  %v6926_v43 = vpack.c.bf16 %v1073_v40, %v1072_v39  ;;  %v5793_v45 = vld [vmem:[%s6682_s20 + $0x120] ss:$24 sps:$4 sm:$0xff]   ;;  %v5798_v46 = vld [vmem:[%s6682_s20 + $0x2dc] ss:$24 sps:$4 sm:$0xff]   ;;  %v5799_v49 = vld [vmem:[%s6682_s20 + $0x150] ss:$24 sps:$4 sm:$0xff]  }
 0x21c   : > { %1427 = vmatprep.subr.bf16.mxu1 %v5742_v3  ;;  %1573 = vmatprep.subr.bf16.mxu0 %v5744_v4  ;;  %v5801_v47 = vld [vmem:[%s6682_s20 + $0x154] ss:$24 sps:$4 sm:$0xff]   ;;  %v5796_v48 = vld [vmem:[%s6682_s20 + $0x2d8] ss:$24 sps:$4 sm:$0xff]   ;;  %v1054_v50 = vld [vmem:[#allocation2] sm:$0xff] }
 0x21d   : > { %v1055_v51 = vld [vmem:[#allocation2 + $0x8] sm:$0xff]  ;;  %v5810_v59 = vld [vmem:[%s6682_s20 + $0x3c] ss:$24 sps:$4 sm:$0xff]   ;;  %v5808_v1 = vld [vmem:[%s6682_s20 + $0x38] ss:$24 sps:$4 sm:$0xff]  }
 0x21e   : > { %v5804_v52 = vld [vmem:[%s6682_s20 + $0xc] ss:$24 sps:$4 sm:$0xff]   ;;  %v6940_v55 = vpack.c.bf16 %v1055_v51, %v1054_v50  ;;  %v5802_v56 = vld [vmem:[%s6682_s20 + $0x8] ss:$24 sps:$4 sm:$0xff]   ;;  %v1056_v3 = vld [vmem:[#allocation2 + $0x10] sm:$0xff] }
 0x21f   : > { %1428 = vmatpush1.bf16.msra.mxu1 %v5746_v5  ;;  %1574 = vmatpush1.bf16.msra.mxu0 %v5747_v6  ;;  %v5807_v53 = vld [vmem:[%s6682_s20 + $0x14] ss:$24 sps:$4 sm:$0xff]   ;;  %v5805_v58 = vld [vmem:[%s6682_s20 + $0x10] ss:$24 sps:$4 sm:$0xff]   ;;  %v5813_v0 = vld [vmem:[%s6682_s20 + $0x44] ss:$24 sps:$4 sm:$0xff]  }
 0x220   : > { %1429 = vmatprep.subr.bf16.mxu1 %v5748_v7  ;;  %1575 = vmatprep.subr.bf16.mxu0 %v5750_v8  ;;  %v5811_v2 = vld [vmem:[%s6682_s20 + $0x40] ss:$24 sps:$4 sm:$0xff]   ;;  %v5816_v5 = vld [vmem:[%s6682_s20 + $0x6c] ss:$24 sps:$4 sm:$0xff]  }
 0x221   : > { %v1057_v4 = vld [vmem:[#allocation2 + $0x18] sm:$0xff]  ;;  %v5819_v6 = vld [vmem:[%s6682_s20 + $0x74] ss:$24 sps:$4 sm:$0xff]   ;;  %v5814_v8 = vld [vmem:[%s6682_s20 + $0x68] ss:$24 sps:$4 sm:$0xff]  }
 0x222   : > { %v6954_v7 = vpack.c.bf16 %v1057_v4, %v1056_v3  ;;  %v5825_v60 = vld [vmem:[%s6682_s20 + $0xa4] ss:$24 sps:$4 sm:$0xff]   ;;  %v5820_v10 = vld [vmem:[%s6682_s20 + $0x98] ss:$24 sps:$4 sm:$0xff]  }
 0x223   : > { %1430 = vmatpush1.bf16.msra.mxu1 %v5752_v54  ;;  %1576 = vmatpush1.bf16.msra.mxu0 %v5753_v9  ;;  %v5817_v54 = vld [vmem:[%s6682_s20 + $0x70] ss:$24 sps:$4 sm:$0xff]   ;;  %v5822_v9 = vld [vmem:[%s6682_s20 + $0x9c] ss:$24 sps:$4 sm:$0xff]  }
 0x224   : > { %1488 = vmatprep.subr.bf16.mxu1 %v5756_v61  ;;  %1874 = vmatprep.subr.bf16.mxu0 %v5759_v11  ;;  %v5823_v61 = vld [vmem:[%s6682_s20 + $0xa0] ss:$24 sps:$4 sm:$0xff]   ;;  %v5837_v17 = vld [vmem:[%s6682_s20 + $0x104] ss:$24 sps:$4 sm:$0xff]  }
 0x225   : > { %v1058_v11 = vld [vmem:[#allocation2 + $0x20] sm:$0xff]  ;;  %v5832_v18 = vld [vmem:[%s6682_s20 + $0xf8] ss:$24 sps:$4 sm:$0xff]  }
 0x226   : > { %1448 = vmatmul.mubr.bf16.vlgmr.msra.gmra.mrb[0].mxu1 %v6884_v12  ;;  %1594 = vmatmul.mubr.bf16.vlgmr.msra.gmra.mrb[0].mxu0 %v6884_v12  ;;  %v5849_v27 = vld [vmem:[%s6682_s20 + $0x164] ss:$24 sps:$4 sm:$0xff]   ;;  %v5844_v28 = vld [vmem:[%s6682_s20 + $0x158] ss:$24 sps:$4 sm:$0xff]  }
 0x227   : > { %1489 = vmatpush1.bf16.msra.mxu1 %v5754_v13  ;;  %1875 = vmatpush1.bf16.msra.mxu0 %v5757_v14  ;;  %v5828_v13 = vld [vmem:[%s6682_s20 + $0xcc] ss:$24 sps:$4 sm:$0xff]  }
 0x228   : > { %1490 = vmatprep.subr.bf16.mxu1 %v5762_v15  ;;  %1876 = vmatprep.subr.bf16.mxu0 %v5765_v62  ;;  %v5831_v14 = vld [vmem:[%s6682_s20 + $0xd4] ss:$24 sps:$4 sm:$0xff]   ;;  %v5826_v62 = vld [vmem:[%s6682_s20 + $0xc8] ss:$24 sps:$4 sm:$0xff]  }
 0x229   : > { %1457 = vmatprep.mubr.bf16.mxu1 %v6391_v38  ;;  %1603 = vmatprep.mubr.bf16.mxu0 %v6391_v38 }
 0x22b   : > { %1491 = vmatpush1.bf16.msra.mxu1 %v5760_v63  ;;  %1877 = vmatpush1.bf16.msra.mxu0 %v5763_v16  ;;  %v5829_v63 = vld [vmem:[%s6682_s20 + $0xd0] ss:$24 sps:$4 sm:$0xff]   ;;  %v5834_v16 = vld [vmem:[%s6682_s20 + $0xfc] ss:$24 sps:$4 sm:$0xff]  }
 0x22c   : > { %1492 = vmatprep.subr.bf16.mxu1 %v5768_v19  ;;  %1878 = vmatprep.subr.bf16.mxu0 %v5771_v57  ;;  %v5835_v19 = vld [vmem:[%s6682_s20 + $0x100] ss:$24 sps:$4 sm:$0xff]   ;;  %v1060_v57 = vld [vmem:[#allocation2 + $0x30] sm:$0xff] }
 0x22e   : > { %1458 = vmatmul.mubr.bf16.gmra.mrb[4].mxu1 %v6898_v20  ;;  %1604 = vmatmul.mubr.bf16.gmra.mrb[4].mxu0 %v6898_v20 }
 0x22f   : > { %1493 = vmatpush1.bf16.msra.mxu1 %v5766_v21  ;;  %1879 = vmatpush1.bf16.msra.mxu0 %v5769_v22  ;;  %v5840_v21 = vld [vmem:[%s6682_s20 + $0x12c] ss:$24 sps:$4 sm:$0xff]  }
 0x230   : > { %1494 = vmatprep.subr.bf16.mxu1 %v5774_v23  ;;  %1880 = vmatprep.subr.bf16.mxu0 %v5777_v24  ;;  %v5843_v22 = vld [vmem:[%s6682_s20 + $0x134] ss:$24 sps:$4 sm:$0xff]   ;;  %v5838_v24 = vld [vmem:[%s6682_s20 + $0x128] ss:$24 sps:$4 sm:$0xff]  }
 0x231   : > { %1467 = vmatprep.mubr.bf16.mxu1 %v6391_v38  ;;  %1613 = vmatprep.mubr.bf16.mxu0 %v6391_v38 }
 0x233   : > { %1495 = vmatpush1.bf16.msra.mxu1 %v5772_v25  ;;  %1881 = vmatpush1.bf16.msra.mxu0 %v5775_v26  ;;  %v5841_v25 = vld [vmem:[%s6682_s20 + $0x130] ss:$24 sps:$4 sm:$0xff]   ;;  %v5846_v26 = vld [vmem:[%s6682_s20 + $0x15c] ss:$24 sps:$4 sm:$0xff]  }
 0x234   : > { %1496 = vmatprep.subr.bf16.mxu1 %v5780_v29  ;;  %1882 = vmatprep.subr.bf16.mxu0 %v5783_v30  ;;  %v5847_v29 = vld [vmem:[%s6682_s20 + $0x160] ss:$24 sps:$4 sm:$0xff]  }
 0x236   : > { %1468 = vmatmul.mubr.bf16.gmra.mrb[8].mxu1 %v6912_v31  ;;  %1614 = vmatmul.mubr.bf16.gmra.mrb[8].mxu0 %v6912_v31 }
 0x237   : > { %1497 = vmatpush1.bf16.msra.mxu1 %v5778_v32  ;;  %1883 = vmatpush1.bf16.msra.mxu0 %v5781_v33 }
 0x238   : > { %1498 = vmatprep.subr.bf16.mxu1 %v5786_v34  ;;  %1884 = vmatprep.subr.bf16.mxu0 %v5789_v35 }
 0x239   : > { %1477 = vmatprep.mubr.bf16.mxu1 %v6391_v38  ;;  %1623 = vmatprep.mubr.bf16.mxu0 %v6391_v38 }
 0x23b   : > { %1499 = vmatpush1.bf16.msra.mxu1 %v5784_v36  ;;  %1885 = vmatpush1.bf16.msra.mxu0 %v5787_v37 }
 0x23c   : > { %1500 = vmatprep.subr.bf16.mxu1 %v5792_v41  ;;  %1886 = vmatprep.subr.bf16.mxu0 %v5795_v42 }
 0x23e   : > { %1478 = vmatmul.mubr.bf16.gmra.mrb[12].mxu1 %v6926_v43  ;;  %1624 = vmatmul.mubr.bf16.gmra.mrb[12].mxu0 %v6926_v43 }
 0x23f   : > { %1501 = vmatpush1.bf16.msra.mxu1 %v5790_v44  ;;  %1887 = vmatpush1.bf16.msra.mxu0 %v5793_v45 }
 0x240   : > { %1502 = vmatprep.subr.bf16.mxu1 %v5798_v46  ;;  %1888 = vmatprep.subr.bf16.mxu0 %v5801_v47 }
 0x241   : > { %1520 = vmatprep.mubr.bf16.mxu1 %v6391_v38  ;;  %1906 = vmatprep.mubr.bf16.mxu0 %v6391_v38 }
 0x243   : > { %1503 = vmatpush1.bf16.msra.mxu1 %v5796_v48  ;;  %1889 = vmatpush1.bf16.msra.mxu0 %v5799_v49  ;;  %v7006_v49 = vld [vmem:[%s6695_s22] sm:$0x3f] }
 0x244   : > { %1947 = vmatprep.subr.bf16.mxu1 %v5804_v52  ;;  %2020 = vmatprep.subr.bf16.mxu0 %v5807_v53 }
 0x246   : > { %1521 = vmatmul.mubr.bf16.vlgmr.msra.gmra.mrb[16].mxu1 %v6884_v12  ;;  %1907 = vmatmul.mubr.bf16.vlgmr.msra.gmra.mrb[16].mxu0 %v6940_v55  ;;  %v1059_v12 = vld [vmem:[#allocation2 + $0x28] sm:$0xff] }
 0x247   : > { %1948 = vmatpush1.bf16.msra.mxu1 %v5802_v56  ;;  %2021 = vmatpush1.bf16.msra.mxu0 %v5805_v58  ;;  %v1064_v15 = vpack.c.bf16 %v1059_v12, %v1058_v11 }
 0x248   : > { %1949 = vmatprep.subr.bf16.mxu1 %v5810_v59  ;;  %2022 = vmatprep.subr.bf16.mxu0 %v5813_v0 }
 0x249   : > { %1530 = vmatprep.mubr.bf16.mxu1 %v6391_v38  ;;  %1916 = vmatprep.mubr.bf16.mxu0 %v6391_v38 }
 0x24b   : > { %1950 = vmatpush1.bf16.msra.mxu1 %v5808_v1  ;;  %2023 = vmatpush1.bf16.msra.mxu0 %v5811_v2 }
 0x24c   : > { %1951 = vmatprep.subr.bf16.mxu1 %v5816_v5  ;;  %2024 = vmatprep.subr.bf16.mxu0 %v5819_v6 }
 0x24e   : > { %1531 = vmatmul.mubr.bf16.gmra.mrb[20].mxu1 %v6898_v20  ;;  %1917 = vmatmul.mubr.bf16.gmra.mrb[20].mxu0 %v6954_v7  ;;  %v1061_v20 = vld [vmem:[#allocation2 + $0x38] sm:$0xff] }
 0x24f   : > { %1952 = vmatpush1.bf16.msra.mxu1 %v5814_v8  ;;  %2025 = vmatpush1.bf16.msra.mxu0 %v5817_v54  ;;  %v1065_v23 = vpack.c.bf16 %v1061_v20, %v1060_v57 }
 0x250   : > { %1953 = vmatprep.subr.bf16.mxu1 %v5822_v9  ;;  %2026 = vmatprep.subr.bf16.mxu0 %v5825_v60 }
 0x251   : > { %1540 = vmatprep.mubr.bf16.mxu1 %v6391_v38  ;;  %1926 = vmatprep.mubr.bf16.mxu0 %v6391_v38 }
 0x253   : > { %1954 = vmatpush1.bf16.msra.mxu1 %v5820_v10  ;;  %2027 = vmatpush1.bf16.msra.mxu0 %v5823_v61 }
 0x254   : > { %1955 = vmatprep.subr.bf16.mxu1 %v5828_v13  ;;  %2028 = vmatprep.subr.bf16.mxu0 %v5831_v14 }
 0x256   : > { %1541 = vmatmul.mubr.bf16.gmra.mrb[24].mxu1 %v6912_v31  ;;  %1927 = vmatmul.mubr.bf16.gmra.mrb[24].mxu0 %v1064_v15 }
 0x257   : > { %1956 = vmatpush1.bf16.msra.mxu1 %v5826_v62  ;;  %2029 = vmatpush1.bf16.msra.mxu0 %v5829_v63 }
 0x258   : > { %1957 = vmatprep.subr.bf16.mxu1 %v5834_v16  ;;  %2030 = vmatprep.subr.bf16.mxu0 %v5837_v17 }
 0x259   : > { %1550 = vmatprep.mubr.bf16.mxu1 %v6391_v38  ;;  %1936 = vmatprep.mubr.bf16.mxu0 %v6391_v38 }
 0x25b   : > { %1958 = vmatpush1.bf16.msra.mxu1 %v5832_v18  ;;  %2031 = vmatpush1.bf16.msra.mxu0 %v5835_v19 }
 0x25c   : > { %1959 = vmatprep.subr.bf16.mxu1 %v5840_v21  ;;  %2032 = vmatprep.subr.bf16.mxu0 %v5843_v22 }
 0x25e   : > { %1551 = vmatmul.mubr.bf16.gmra.mrb[28].mxu1 %v6926_v43  ;;  %1937 = vmatmul.mubr.bf16.gmra.mrb[28].mxu0 %v1065_v23  ;;  %v2095_v43 = vlaneseq }
 0x25f   : > { %1960 = vmatpush1.bf16.msra.mxu1 %v5838_v24  ;;  %2033 = vmatpush1.bf16.msra.mxu0 %v5841_v25 }
 0x260   : > { %1961 = vmatprep.subr.bf16.mxu1 %v5846_v26  ;;  %2034 = vmatprep.subr.bf16.mxu0 %v5849_v27  ;;  %v6998_v44 = vshrl.u32 %v2095_v43, 7 }
 0x261   : > { %1979 = vmatprep.mubr.bf16.mxu1 %v6391_v38  ;;  %2052 = vmatprep.mubr.bf16.mxu0 %v6391_v38 }
 0x262   : > { %v2097_v48 = vsub.s32 0, %v6998_v44  ;;  %v2101_v50 = vsub.s32 1, %v6998_v44 }
 0x263   : > { %1962 = vmatpush1.bf16.msra.mxu1 %v5844_v28  ;;  %2035 = vmatpush1.bf16.msra.mxu0 %v5847_v29  ;;  %v2105_v28 = vsub.s32 2, %v6998_v44  ;;  %v2113_v29 = vsub.s32 4, %v6998_v44 }
 0x264   : > { %v7010_v51 = vrot.slane %v7006_v49, %v2097_v48  ;;  %v7013_v53 = vrot.slane %v7006_v49, %v2101_v50 }
 0x266   : > { %1980 = vmatmul.mubr.bf16.vlgmr.msra.gmra.mrb[16].mxu1 %v6940_v55  ;;  %2053 = vmatmul.mubr.bf16.vlgmr.msra.gmra.mrb[0].mxu0 %v6940_v55 }
 0x267   : > { %1989 = vmatprep.mubr.bf16.mxu1 %v6391_v38  ;;  %2062 = vmatprep.mubr.bf16.mxu0 %v6391_v38 }
 0x26e   : > { %1990 = vmatmul.mubr.bf16.gmra.mrb[20].mxu1 %v6954_v7  ;;  %2063 = vmatmul.mubr.bf16.gmra.mrb[4].mxu0 %v6954_v7 }
 0x26f   : > { %1999 = vmatprep.mubr.bf16.mxu1 %v6391_v38  ;;  %2072 = vmatprep.mubr.bf16.mxu0 %v6391_v38 }
 0x276   : > { %2000 = vmatmul.mubr.bf16.gmra.mrb[24].mxu1 %v1064_v15  ;;  %2073 = vmatmul.mubr.bf16.gmra.mrb[8].mxu0 %v1064_v15 }
 0x277   : > { %2009 = vmatprep.mubr.bf16.mxu1 %v6391_v38  ;;  %2082 = vmatprep.mubr.bf16.mxu0 %v6391_v38 }
 0x27e   : > { %2010 = vmatmul.mubr.bf16.gmra.mrb[28].mxu1 %v1065_v23  ;;  %2083 = vmatmul.mubr.bf16.gmra.mrb[12].mxu0 %v1065_v23 }
 0x2f9   : > { %v1449_v30 = vpop.f32.mrb[0].mxu1 }
 0x2fa   : > { %v1451_v31 = vpop.f32.mrb[1].mxu1 }
 0x2fb   : > { %v1453_v32 = vpop.f32.mrb[2].mxu1 }
 0x2fc   : > { %v1455_v33 = vpop.f32.mrb[3].mxu1 }
 0x301   : > { %v1459_v34 = vpop.f32.mrb[4].mxu1 }
 0x302   : > { %v1461_v35 = vpop.f32.mrb[5].mxu1 }
 0x303   : > { %v1463_v36 = vpop.f32.mrb[6].mxu1 }
 0x304   : > { %v1465_v37 = vpop.f32.mrb[7].mxu1 }
 0x309   : > { %v1469_v39 = vpop.f32.mrb[8].mxu1 }
 0x30a   : > { %v1471_v40 = vpop.f32.mrb[9].mxu1 }
 0x30b   : > { %v1473_v41 = vpop.f32.mrb[10].mxu1 }
 0x30c   : > { %v1475_v42 = vpop.f32.mrb[11].mxu1 }
 0x311   : > { %v1479_v45 = vpop.f32.mrb[12].mxu1 }
 0x312   : > { %v1481_v38 = vpop.f32.mrb[13].mxu1 }
 0x313   : > { %v7000_v46 = vpop.f32.mrb[14].mxu1 }
 0x314   : > { %v7002_v47 = vpop.f32.mrb[15].mxu1 }
 0x319   : > { %v1908_v52 = vpop.f32.mrb[16].mxu0 }
 0x31a   : > { %v1909_v55 = vadd.f32 %v1908_v52, %v1449_v30  ;;  %v1910_v56 = vpop.f32.mrb[17].mxu0 }
 0x31b   : > { %v1911_v58 = vadd.f32 %v1910_v56, %v1451_v31  ;;  %v1912_v59 = vpop.f32.mrb[18].mxu0 }
 0x31c   : > { %v2125_v0 = vadd.f32 %v7010_v51, %v1909_v55  ;;  %v1913_v1 = vadd.f32 %v1912_v59, %v1453_v32  ;;  %v1914_v2 = vpop.f32.mrb[19].mxu0  ;;  %v2109_v32 = vsub.s32 3, %v6998_v44 }
 0x31d   : > { %v2126_v3 = vadd.f32 %v7013_v53, %v1911_v58  ;;  %v1915_v4 = vadd.f32 %v1914_v2, %v1455_v33  ;;  %v2117_v33 = vsub.s32 5, %v6998_v44 }
 0x31e   : > { %2173 = vst [vmem:[#allocation4] sm:$0xff] %v2125_v0  ;;  %v2131_v5 = vadd.f32 %v7010_v51, %v1913_v1  ;;  %v7044_v44 = vrot.slane %v7006_v49, %v2109_v32 }
 0x31f   : > { %2174 = vst [vmem:[#allocation4 + $0x8] sm:$0xff] %v2126_v3  ;;  %v2132_v6 = vadd.f32 %v7013_v53, %v1915_v4 }
 0x320   : > { %2179 = vst [vmem:[#allocation4 + $0x30] sm:$0xff] %v2131_v5 }
 0x321   : > { %2180 = vst [vmem:[#allocation4 + $0x38] sm:$0xff] %v2132_v6  ;;  %v1918_v7 = vpop.f32.mrb[20].mxu0 }
 0x322   : > { %v1919_v8 = vadd.f32 %v1918_v7, %v1459_v34  ;;  %v1920_v54 = vpop.f32.mrb[21].mxu0 }
 0x323   : > { %v1921_v9 = vadd.f32 %v1920_v54, %v1461_v35  ;;  %v1922_v60 = vpop.f32.mrb[22].mxu0 }
 0x324   : > { %v2137_v10 = vadd.f32 %v7010_v51, %v1919_v8  ;;  %v1923_v61 = vadd.f32 %v1922_v60, %v1463_v36  ;;  %v1924_v11 = vpop.f32.mrb[23].mxu0 }
 0x325   : > { %v2138_v12 = vadd.f32 %v7013_v53, %v1921_v9  ;;  %v1925_v13 = vadd.f32 %v1924_v11, %v1465_v37 }
 0x326   : > { %2185 = vst [vmem:[#allocation4 + $0x60] sm:$0xff] %v2137_v10  ;;  %v2143_v14 = vadd.f32 %v7010_v51, %v1923_v61 }
 0x327   : > { %2186 = vst [vmem:[#allocation4 + $0x68] sm:$0xff] %v2138_v12  ;;  %v2144_v15 = vadd.f32 %v7013_v53, %v1925_v13 }
 0x328   : > { %2191 = vst [vmem:[#allocation4 + $0x90] sm:$0xff] %v2143_v14 }
 0x329   : > { %2192 = vst [vmem:[#allocation4 + $0x98] sm:$0xff] %v2144_v15  ;;  %v1928_v62 = vpop.f32.mrb[24].mxu0 }
 0x32a   : > { %v1929_v63 = vadd.f32 %v1928_v62, %v1469_v39  ;;  %v1930_v16 = vpop.f32.mrb[25].mxu0 }
 0x32b   : > { %v1931_v17 = vadd.f32 %v1930_v16, %v1471_v40  ;;  %v1932_v18 = vpop.f32.mrb[26].mxu0 }
 0x32c   : > { %v2149_v19 = vadd.f32 %v7010_v51, %v1929_v63  ;;  %v1933_v57 = vadd.f32 %v1932_v18, %v1473_v41  ;;  %v1934_v20 = vpop.f32.mrb[27].mxu0  ;;  %v7037_v41 = vrot.slane %v7006_v49, %v2105_v28 }
 0x32d   : > { %v2150_v21 = vadd.f32 %v7013_v53, %v1931_v17  ;;  %v1935_v22 = vadd.f32 %v1934_v20, %v1475_v42  ;;  %v7040_v42 = vrot.slane %v7006_v49, %v2113_v29 }
 0x32e   : > { %2197 = vst [vmem:[#allocation4 + $0xc0] sm:$0xff] %v2149_v19  ;;  %v2155_v23 = vadd.f32 %v7010_v51, %v1933_v57 }
 0x32f   : > { %2198 = vst [vmem:[#allocation4 + $0xc8] sm:$0xff] %v2150_v21  ;;  %v2156_v24 = vadd.f32 %v7013_v53, %v1935_v22 }
 0x330   : > { %2203 = vst [vmem:[#allocation4 + $0xf0] sm:$0xff] %v2155_v23 }
 0x331   : > { %2204 = vst [vmem:[#allocation4 + $0xf8] sm:$0xff] %v2156_v24  ;;  %v1938_v25 = vpop.f32.mrb[28].mxu0 }
 0x332   : > { %v1939_v26 = vadd.f32 %v1938_v25, %v1479_v45  ;;  %v1940_v27 = vpop.f32.mrb[29].mxu0  ;;  %v7047_v45 = vrot.slane %v7006_v49, %v2117_v33 }
 0x333   : > { %v1941_v30 = vadd.f32 %v1940_v27, %v1481_v38  ;;  %v1942_v31 = vpop.f32.mrb[30].mxu0 }
 0x334   : > { %v2161_v34 = vadd.f32 %v7010_v51, %v1939_v26  ;;  %v1943_v35 = vadd.f32 %v1942_v31, %v7000_v46  ;;  %v1944_v36 = vpop.f32.mrb[31].mxu0 }
 0x335   : > { %v2162_v37 = vadd.f32 %v7013_v53, %v1941_v30  ;;  %v1945_v39 = vadd.f32 %v1944_v36, %v7002_v47 }
 0x336   : > { %2209 = vst [vmem:[#allocation4 + $0x120] sm:$0xff] %v2161_v34  ;;  %v2167_v40 = vadd.f32 %v7010_v51, %v1943_v35 }
 0x337   : > { %2210 = vst [vmem:[#allocation4 + $0x128] sm:$0xff] %v2162_v37  ;;  %v2168_v43 = vadd.f32 %v7013_v53, %v1945_v39 }
 0x338   : > { %2215 = vst [vmem:[#allocation4 + $0x150] sm:$0xff] %v2167_v40 }
 0x339   : > { %2216 = vst [vmem:[#allocation4 + $0x158] sm:$0xff] %v2168_v43  ;;  %v1981_v38 = vpop.f32.mrb[16].mxu1  ;;  %v2054_v46 = vpop.f32.mrb[0].mxu0 }
 0x33a   : > { %v2127_v47 = vadd.f32 %v7037_v41, %v1981_v38  ;;  %v2129_v48 = vadd.f32 %v7040_v42, %v2054_v46  ;;  %v1983_v50 = vpop.f32.mrb[17].mxu1  ;;  %v2056_v51 = vpop.f32.mrb[1].mxu0 }
 0x33b   : > { %v2128_v52 = vadd.f32 %v7044_v44, %v1983_v50  ;;  %v2130_v53 = vadd.f32 %v7047_v45, %v2056_v51  ;;  %v1985_v55 = vpop.f32.mrb[18].mxu1  ;;  %v2058_v56 = vpop.f32.mrb[2].mxu0 }
 0x33c   : > { %2175 = vst [vmem:[#allocation4 + $0x10] sm:$0xff] %v2127_v47  ;;  %2177 = vst [vmem:[#allocation4 + $0x20] sm:$0xff] %v2129_v48  ;;  %v2133_v49 = vadd.f32 %v7037_v41, %v1985_v55  ;;  %v2135_v58 = vadd.f32 %v7040_v42, %v2058_v56  ;;  %v1987_v59 = vpop.f32.mrb[19].mxu1  ;;  %v2060_v0 = vpop.f32.mrb[3].mxu0 }
 0x33d   : > { %2176 = vst [vmem:[#allocation4 + $0x18] sm:$0xff] %v2128_v52  ;;  %2178 = vst [vmem:[#allocation4 + $0x28] sm:$0xff] %v2130_v53  ;;  %v2134_v1 = vadd.f32 %v7044_v44, %v1987_v59  ;;  %v2136_v2 = vadd.f32 %v7047_v45, %v2060_v0 }
 0x33e   : > { %2181 = vst [vmem:[#allocation4 + $0x40] sm:$0xff] %v2133_v49  ;;  %2183 = vst [vmem:[#allocation4 + $0x50] sm:$0xff] %v2135_v58 }
 0x33f   : > { %2182 = vst [vmem:[#allocation4 + $0x48] sm:$0xff] %v2134_v1  ;;  %2184 = vst [vmem:[#allocation4 + $0x58] sm:$0xff] %v2136_v2 }
 0x341   : > { %v1991_v3 = vpop.f32.mrb[20].mxu1  ;;  %v2064_v4 = vpop.f32.mrb[4].mxu0 }
 0x342   : > { %v2139_v5 = vadd.f32 %v7037_v41, %v1991_v3  ;;  %v2141_v6 = vadd.f32 %v7040_v42, %v2064_v4  ;;  %v1993_v7 = vpop.f32.mrb[21].mxu1  ;;  %v2066_v8 = vpop.f32.mrb[5].mxu0 }
 0x343   : > { %v2140_v54 = vadd.f32 %v7044_v44, %v1993_v7  ;;  %v2142_v9 = vadd.f32 %v7047_v45, %v2066_v8  ;;  %v1995_v60 = vpop.f32.mrb[22].mxu1  ;;  %v2068_v10 = vpop.f32.mrb[6].mxu0 }
 0x344   : > { %2187 = vst [vmem:[#allocation4 + $0x70] sm:$0xff] %v2139_v5  ;;  %2189 = vst [vmem:[#allocation4 + $0x80] sm:$0xff] %v2141_v6  ;;  %v2145_v61 = vadd.f32 %v7037_v41, %v1995_v60  ;;  %v2147_v11 = vadd.f32 %v7040_v42, %v2068_v10  ;;  %v1997_v12 = vpop.f32.mrb[23].mxu1  ;;  %v2070_v13 = vpop.f32.mrb[7].mxu0 }
 0x345   : > { %2188 = vst [vmem:[#allocation4 + $0x78] sm:$0xff] %v2140_v54  ;;  %2190 = vst [vmem:[#allocation4 + $0x88] sm:$0xff] %v2142_v9  ;;  %v2146_v14 = vadd.f32 %v7044_v44, %v1997_v12  ;;  %v2148_v15 = vadd.f32 %v7047_v45, %v2070_v13 }
 0x346   : > { %2193 = vst [vmem:[#allocation4 + $0xa0] sm:$0xff] %v2145_v61  ;;  %2195 = vst [vmem:[#allocation4 + $0xb0] sm:$0xff] %v2147_v11 }
 0x347   : > { %2194 = vst [vmem:[#allocation4 + $0xa8] sm:$0xff] %v2146_v14  ;;  %2196 = vst [vmem:[#allocation4 + $0xb8] sm:$0xff] %v2148_v15 }
 0x349   : > { %v2001_v62 = vpop.f32.mrb[24].mxu1  ;;  %v2074_v63 = vpop.f32.mrb[8].mxu0 }
 0x34a   : > { %v2151_v16 = vadd.f32 %v7037_v41, %v2001_v62  ;;  %v2153_v17 = vadd.f32 %v7040_v42, %v2074_v63  ;;  %v2003_v18 = vpop.f32.mrb[25].mxu1  ;;  %v2076_v19 = vpop.f32.mrb[9].mxu0 }
 0x34b   : > { %v2152_v57 = vadd.f32 %v7044_v44, %v2003_v18  ;;  %v2154_v20 = vadd.f32 %v7047_v45, %v2076_v19  ;;  %v2005_v21 = vpop.f32.mrb[26].mxu1  ;;  %v2078_v22 = vpop.f32.mrb[10].mxu0 }
 0x34c   : > { %2199 = vst [vmem:[#allocation4 + $0xd0] sm:$0xff] %v2151_v16  ;;  %2201 = vst [vmem:[#allocation4 + $0xe0] sm:$0xff] %v2153_v17  ;;  %v2157_v23 = vadd.f32 %v7037_v41, %v2005_v21  ;;  %v2159_v24 = vadd.f32 %v7040_v42, %v2078_v22  ;;  %v2007_v25 = vpop.f32.mrb[27].mxu1  ;;  %v2080_v26 = vpop.f32.mrb[11].mxu0 }
 0x34d   : > { %2200 = vst [vmem:[#allocation4 + $0xd8] sm:$0xff] %v2152_v57  ;;  %2202 = vst [vmem:[#allocation4 + $0xe8] sm:$0xff] %v2154_v20  ;;  %v2158_v27 = vadd.f32 %v7044_v44, %v2007_v25  ;;  %v2160_v28 = vadd.f32 %v7047_v45, %v2080_v26 }
 0x34e   : > { %2205 = vst [vmem:[#allocation4 + $0x100] sm:$0xff] %v2157_v23  ;;  %2207 = vst [vmem:[#allocation4 + $0x110] sm:$0xff] %v2159_v24 }
 0x34f   : > { %2206 = vst [vmem:[#allocation4 + $0x108] sm:$0xff] %v2158_v27  ;;  %2208 = vst [vmem:[#allocation4 + $0x118] sm:$0xff] %v2160_v28 }
 0x351   : > { %v2011_v29 = vpop.f32.mrb[28].mxu1  ;;  %v2084_v30 = vpop.f32.mrb[12].mxu0 }
 0x352   : > { %v2163_v31 = vadd.f32 %v7037_v41, %v2011_v29  ;;  %v2165_v32 = vadd.f32 %v7040_v42, %v2084_v30  ;;  %v2013_v33 = vpop.f32.mrb[29].mxu1  ;;  %v2086_v34 = vpop.f32.mrb[13].mxu0 }
 0x353   : > { %v2164_v35 = vadd.f32 %v7044_v44, %v2013_v33  ;;  %v2166_v36 = vadd.f32 %v7047_v45, %v2086_v34  ;;  %v2015_v37 = vpop.f32.mrb[30].mxu1  ;;  %v2088_v39 = vpop.f32.mrb[14].mxu0 }
 0x354   : > { %2211 = vst [vmem:[#allocation4 + $0x130] sm:$0xff] %v2163_v31  ;;  %2213 = vst [vmem:[#allocation4 + $0x140] sm:$0xff] %v2165_v32  ;;  %v2169_v40 = vadd.f32 %v7037_v41, %v2015_v37  ;;  %v2171_v43 = vadd.f32 %v7040_v42, %v2088_v39  ;;  %v2017_v38 = vpop.f32.mrb[31].mxu1  ;;  %v2090_v46 = vpop.f32.mrb[15].mxu0 }
 0x355   : > { %2212 = vst [vmem:[#allocation4 + $0x138] sm:$0xff] %v2164_v35  ;;  %2214 = vst [vmem:[#allocation4 + $0x148] sm:$0xff] %v2166_v36  ;;  %v2170_v47 = vadd.f32 %v7044_v44, %v2017_v38  ;;  %v2172_v48 = vadd.f32 %v7047_v45, %v2090_v46 }
 0x356   : > { %2217 = vst [vmem:[#allocation4 + $0x160] sm:$0xff] %v2169_v40  ;;  %2219 = vst [vmem:[#allocation4 + $0x170] sm:$0xff] %v2171_v43 }
 0x357   : > { %2218 = vst [vmem:[#allocation4 + $0x168] sm:$0xff] %v2170_v47  ;;  %2220 = vst [vmem:[#allocation4 + $0x178] sm:$0xff] %v2172_v48 }
 0x358 PF: > { %v7082_v41 = vld [vmem:[%s6689_s2 + $0x4] ss:$12 sps:$4 sm:$0xff]   ;;  %v7085_v42 = vld [vmem:[%s6689_s2] ss:$12 sps:$4 sm:$0xff]   ;;  %v8106_v50 = vmov 0.0   ;;  %v8102_v44 = vmov 0  }
 0x359   : > { %5109 = vmatprep.subr.bf16.mxu1 %v8106_v50  ;;  %2449 = vmatprep.mubr.bf16.mxu0 %v8102_v44  ;;  %v7091_v45 = vld [vmem:[%s6689_s2 + $0x1c] ss:$12 sps:$4 sm:$0xff]   ;;  %vm6394_vm0 = vmmov 0   ;;  %v7097_v51 = vld [vmem:[%s6689_s2 + $0x18] ss:$12 sps:$4 sm:$0xff]   ;;  %p4940_p7 = scmp.ne.s32.totalorder %s6454_s28, 3 }
 0x35a   : > { %2417 = vmatprep.subr.bf16.mxu0 %v7082_v41  ;;  %5125 = vmatprep.mubr.msk.bf16.mxu1 %vm6394_vm0, %v8106_v50  ;;  %v7101_v52 = vld [vmem:[%s6689_s2 + $0x34] ss:$12 sps:$4 sm:$0xff]   ;;  %v7105_v53 = vld [vmem:[%s6689_s2 + $0x30] ss:$12 sps:$4 sm:$0xff]   ;;  %v7109_v55 = vld [vmem:[%s6689_s2 + $0x4c] ss:$12 sps:$4 sm:$0xff]  }
 0x35b   : > { %2418 = vmatpush1.bf16.msra.mxu0 %v7085_v42  ;;  %v7112_v56 = vld [vmem:[%s6689_s2 + $0x8] ss:$12 sps:$4 sm:$0xff]   ;;  %v7121_v58 = vld [vmem:[%s6689_s2 + $0x64] ss:$12 sps:$4 sm:$0xff]   ;;  %v7125_v59 = vld [vmem:[%s6689_s2 + $0x20] ss:$12 sps:$4 sm:$0xff]  }
 0x35c   : > { %2419 = vmatprep.subr.bf16.mxu0 %v7091_v45  ;;  %v7116_v49 = vld [vmem:[%s6689_s2 + $0x48] ss:$12 sps:$4 sm:$0xff]   ;;  %5110 = vmatpush3.bf16.msra.mxu1 %v7112_v56  ;;  %v7128_v0 = vld [vmem:[%s6689_s2 + $0x60] ss:$12 sps:$4 sm:$0xff]   ;;  %v7133_v1 = vld [vmem:[%s6689_s2 + $0x38] ss:$12 sps:$4 sm:$0xff]  }
 0x35d   : > { %5111 = vmatprep.subr.bf16.mxu1 %v8106_v50  ;;  %v7137_v2 = vld [vmem:[%s6689_s2 + $0x7c] ss:$12 sps:$4 sm:$0xff]   ;;  %v7142_v3 = vld [vmem:[%s6689_s2 + $0x78] ss:$12 sps:$4 sm:$0xff]   ;;  %v7150_v5 = vld [vmem:[%s6689_s2 + $0x94] ss:$12 sps:$4 sm:$0xff]  }
 0x35e   : > { %8176 = vst [vmem:[#allocation22_spill] sm:$0xff] %v7137_v2  ;;  %8177 = vst [vmem:[#allocation23_spill] sm:$0xff] %v7142_v3  ;;  %v7146_v4 = vld [vmem:[%s6689_s2 + $0x50] ss:$12 sps:$4 sm:$0xff]   ;;  %v7159_v7 = vld [vmem:[%s6689_s2 + $0x68] ss:$12 sps:$4 sm:$0xff]  }
 0x35f   : > { %2420 = vmatpush1.bf16.msra.mxu0 %v7097_v51  ;;  %8178 = vst [vmem:[#allocation24_spill] sm:$0xff] %v7150_v5  ;;  %v7154_v6 = vld [vmem:[%s6689_s2 + $0x90] ss:$12 sps:$4 sm:$0xff]   ;;  %v7163_v8 = vld [vmem:[%s6689_s2 + $0xac] ss:$12 sps:$4 sm:$0xff]   ;;  %v2707_v31 = vld [vmem:[#allocation4] sm:$0xff] }
 0x360   : > { %2421 = vmatprep.subr.bf16.mxu0 %v7101_v52  ;;  %5112 = vmatpush3.bf16.msra.mxu1 %v7125_v59  ;;  %8179 = vst [vmem:[#allocation25_spill] sm:$0xff] %v7154_v6  ;;  %8180 = vst [vmem:[#allocation26_spill] sm:$0xff] %v7163_v8  ;;  %v7167_v54 = vld [vmem:[%s6689_s2 + $0xa8] ss:$12 sps:$4 sm:$0xff]   ;;  %v7172_v9 = vld [vmem:[%s6689_s2 + $0x80] ss:$12 sps:$4 sm:$0xff]  }
 0x361   : > { %5113 = vmatprep.subr.bf16.mxu1 %v8106_v50  ;;  %8181 = vst [vmem:[#allocation27_spill] sm:$0xff] %v7167_v54  ;;  %8182 = vst [vmem:[#allocation28_spill] sm:$0xff] %v7172_v9  ;;  %v7176_v60 = vld [vmem:[%s6689_s2 + $0xc4] ss:$12 sps:$4 sm:$0xff]   ;;  %v7180_v10 = vld [vmem:[%s6689_s2 + $0xc0] ss:$12 sps:$4 sm:$0xff]  }
 0x362   : > { %8183 = vst [vmem:[#allocation29_spill] sm:$0xff] %v7176_v60  ;;  %v7185_v61 = vld [vmem:[%s6689_s2 + $0x98] ss:$12 sps:$4 sm:$0xff]   ;;  %v7189_v11 = vld [vmem:[%s6689_s2 + $0xdc] ss:$12 sps:$4 sm:$0xff]  }
 0x363   : > { %2422 = vmatpush1.bf16.msra.mxu0 %v7105_v53  ;;  %8184 = vst [vmem:[#allocation30_spill] sm:$0xff] %v7185_v61  ;;  %v7194_v12 = vld [vmem:[%s6689_s2 + $0xd8] ss:$12 sps:$4 sm:$0xff]   ;;  %v7199_v13 = vld [vmem:[%s6689_s2 + $0xb0] ss:$12 sps:$4 sm:$0xff]   ;;  %v2708_v35 = vld [vmem:[#allocation4 + $0x8] sm:$0xff] }
 0x364   : > { %2423 = vmatprep.subr.bf16.mxu0 %v7109_v55  ;;  %5114 = vmatpush3.bf16.msra.mxu1 %v7133_v1  ;;  %8185 = vst [vmem:[#allocation31_spill] sm:$0xff] %v7199_v13  ;;  %v7203_v14 = vld [vmem:[%s6689_s2 + $0xf4] ss:$12 sps:$4 sm:$0xff]   ;;  %v7209_v15 = vld [vmem:[%s6689_s2 + $0xf0] ss:$12 sps:$4 sm:$0xff]  }
 0x365   : > { %5115 = vmatprep.subr.bf16.mxu1 %v8106_v50  ;;  %v7213_v62 = vld [vmem:[%s6689_s2 + $0xc8] ss:$12 sps:$4 sm:$0xff]   ;;  %v7217_v63 = vld [vmem:[%s6689_s2 + $0x10c] ss:$12 sps:$4 sm:$0xff]   ;;  %v7231_v18 = vld [vmem:[%s6689_s2 + $0x124] ss:$12 sps:$4 sm:$0xff]  }
 0x366   : > { %v7223_v16 = vld [vmem:[%s6689_s2 + $0x108] ss:$12 sps:$4 sm:$0xff]   ;;  %v7227_v17 = vld [vmem:[%s6689_s2 + $0xe0] ss:$12 sps:$4 sm:$0xff]   ;;  %v7242_v57 = vld [vmem:[%s6689_s2 + $0xf8] ss:$12 sps:$4 sm:$0xff]  }
 0x367   : > { %2424 = vmatpush1.bf16.msra.mxu0 %v7116_v49  ;;  %v7238_v19 = vld [vmem:[%s6689_s2 + $0x120] ss:$12 sps:$4 sm:$0xff]   ;;  %v7246_v20 = vld [vmem:[%s6689_s2 + $0x13c] ss:$12 sps:$4 sm:$0xff]   ;;  %v7251_v21 = vld [vmem:[%s6689_s2 + $0x138] ss:$12 sps:$4 sm:$0xff]  }
 0x368   : > { %2425 = vmatprep.subr.bf16.mxu0 %v7121_v58  ;;  %5116 = vmatpush3.bf16.msra.mxu1 %v7146_v4  ;;  %v7255_v22 = vld [vmem:[%s6689_s2 + $0x110] ss:$12 sps:$4 sm:$0xff]   ;;  %v7259_v23 = vld [vmem:[%s6689_s2 + $0x154] ss:$12 sps:$4 sm:$0xff]   ;;  %v7272_v26 = vld [vmem:[%s6689_s2 + $0x16c] ss:$12 sps:$4 sm:$0xff]  }
 0x369   : > { %5117 = vmatprep.subr.bf16.mxu1 %v8106_v50  ;;  %v7264_v24 = vld [vmem:[%s6689_s2 + $0x150] ss:$12 sps:$4 sm:$0xff]   ;;  %v7268_v25 = vld [vmem:[%s6689_s2 + $0x128] ss:$12 sps:$4 sm:$0xff]   ;;  %v7281_v28 = vld [vmem:[%s6689_s2 + $0x140] ss:$12 sps:$4 sm:$0xff]  }
 0x36a   : > { %v7277_v27 = vld [vmem:[%s6689_s2 + $0x168] ss:$12 sps:$4 sm:$0xff]   ;;  %v7288_v29 = vld [vmem:[%s6689_s2 + $0x158] ss:$12 sps:$4 sm:$0xff]   ;;  %v7295_v30 = vld [vmem:[%s6689_s2 + $0x170] ss:$12 sps:$4 sm:$0xff]  }
 0x36b   : > { %2426 = vmatpush1.bf16.msra.mxu0 %v7128_v0 }
 0x36c   : > { %2427 = vmatprep.subr.bf16.mxu0 %v7137_v2  ;;  %5118 = vmatpush3.bf16.msra.mxu1 %v7159_v7 }
 0x36d   : > { %5119 = vmatprep.subr.bf16.mxu1 %v8106_v50 }
 0x36f   : > { %2428 = vmatpush1.bf16.msra.mxu0 %v7142_v3 }
 0x370   : > { %2429 = vmatprep.subr.bf16.mxu0 %v7150_v5  ;;  %5120 = vmatpush3.bf16.msra.mxu1 %v7172_v9 }
 0x371   : > { %5121 = vmatprep.subr.bf16.mxu1 %v8106_v50 }
 0x373   : > { %2430 = vmatpush1.bf16.msra.mxu0 %v7154_v6 }
 0x374   : > { %2431 = vmatprep.subr.bf16.mxu0 %v7163_v8  ;;  %5122 = vmatpush3.bf16.msra.mxu1 %v7185_v61 }
 0x375   : > { %5123 = vmatprep.subr.bf16.mxu1 %v8106_v50 }
 0x377   : > { %2432 = vmatpush1.bf16.msra.mxu0 %v7167_v54 }
 0x378   : > { %2626 = vmatprep.subr.bf16.mxu0 %v7176_v60  ;;  %5124 = vmatpush3.bf16.msra.mxu1 %v7199_v13 }
 0x379   : > { %5129 = vmatprep.subr.bf16.mxu1 %v8106_v50 }
 0x37a   : > { %2450 = vmatmul.mubr.bf16.vlgmr.msra.gmra.mrb[0].mxu0 %v8102_v44 }
 0x37b   : > { %2627 = vmatpush1.bf16.msra.mxu0 %v7180_v10  ;;  %2658 = vmatprep.mubr.bf16.mxu0 %v8102_v44 }
 0x37c   : > { %2628 = vmatprep.subr.bf16.mxu0 %v7189_v11  ;;  %5126 = vmatmul.mubr.bf16.vlgmr.msra.gmra.mrb[0].mxu1 %v8102_v44 }
 0x37d   : > { %5130 = vmatpush3.bf16.msra.mxu1 %v7213_v62  ;;  %5145 = vmatprep.mubr.msk.bf16.mxu1 %vm6394_vm0, %v8106_v50 }
 0x37e   : > { %5131 = vmatprep.subr.bf16.mxu1 %v8106_v50 }
 0x37f   : > { %2629 = vmatpush1.bf16.msra.mxu0 %v7194_v12 }
 0x380   : > { %2630 = vmatprep.subr.bf16.mxu0 %v7203_v14 }
 0x381   : > { %5132 = vmatpush3.bf16.msra.mxu1 %v7227_v17 }
 0x382   : > { %5133 = vmatprep.subr.bf16.mxu1 %v8106_v50 }
 0x383   : > { %2631 = vmatpush1.bf16.msra.mxu0 %v7209_v15 }
 0x384   : > { %2632 = vmatprep.subr.bf16.mxu0 %v7217_v63 }
 0x385   : > { %5134 = vmatpush3.bf16.msra.mxu1 %v7242_v57 }
 0x386   : > { %5135 = vmatprep.subr.bf16.mxu1 %v8106_v50 }
 0x387   : > { %2633 = vmatpush1.bf16.msra.mxu0 %v7223_v16 }
 0x388   : > { %2634 = vmatprep.subr.bf16.mxu0 %v7231_v18 }
 0x389   : > { %5136 = vmatpush3.bf16.msra.mxu1 %v7255_v22 }
 0x38a   : > { %5137 = vmatprep.subr.bf16.mxu1 %v8106_v50 }
 0x38b   : > { %2635 = vmatpush1.bf16.msra.mxu0 %v7238_v19 }
 0x38c   : > { %2636 = vmatprep.subr.bf16.mxu0 %v7246_v20 }
 0x38d   : > { %5138 = vmatpush3.bf16.msra.mxu1 %v7268_v25 }
 0x38e   : > { %5139 = vmatprep.subr.bf16.mxu1 %v8106_v50 }
 0x38f   : > { %2637 = vmatpush1.bf16.msra.mxu0 %v7251_v21 }
 0x390   : > { %2638 = vmatprep.subr.bf16.mxu0 %v7259_v23 }
 0x391   : > { %5140 = vmatpush3.bf16.msra.mxu1 %v7281_v28 }
 0x392   : > { %5141 = vmatprep.subr.bf16.mxu1 %v8106_v50 }
 0x393   : > { %2639 = vmatpush1.bf16.msra.mxu0 %v7264_v24 }
 0x394   : > { %2640 = vmatprep.subr.bf16.mxu0 %v7272_v26 }
 0x395   : > { %5142 = vmatpush3.bf16.msra.mxu1 %v7288_v29 }
 0x396   : > { %5143 = vmatprep.subr.bf16.mxu1 %v8106_v50 }
 0x397   : > { %2641 = vmatpush1.bf16.msra.mxu0 %v7277_v27 }
 0x398   : > { %2774 = vmatprep.subr.bf16.mxu0 %v7082_v41 }
 0x399   : > { %5144 = vmatpush3.bf16.msra.mxu1 %v7295_v30 }
 0x39a   : > { %2659 = vmatmul.mubr.bf16.vlgmr.msra.gmra.mrb[4].mxu0 %v8102_v44  ;;  %5149 = vmatprep.subr.bf16.mxu1 %v8106_v50 }
 0x39b   : > { %2775 = vmatpush1.bf16.msra.mxu0 %v7085_v42  ;;  %2806 = vmatprep.mubr.bf16.mxu0 %v8102_v44 }
 0x39c   : > { %2776 = vmatprep.subr.bf16.mxu0 %v7091_v45  ;;  %5146 = vmatmul.mubr.bf16.vlgmr.msra.gmra.mrb[4].mxu1 %v8102_v44 }
 0x39d   : > { %5150 = vmatpush3.bf16.msra.mxu1 %v7112_v56  ;;  %5165 = vmatprep.mubr.msk.bf16.mxu1 %vm6394_vm0, %v8106_v50 }
 0x39e   : > { %5151 = vmatprep.subr.bf16.mxu1 %v8106_v50 }
 0x39f   : > { %2777 = vmatpush1.bf16.msra.mxu0 %v7097_v51 }
 0x3a0   : > { %2778 = vmatprep.subr.bf16.mxu0 %v7101_v52 }
 0x3a1   : > { %5152 = vmatpush3.bf16.msra.mxu1 %v7125_v59 }
 0x3a2   : > { %5153 = vmatprep.subr.bf16.mxu1 %v8106_v50 }
 0x3a3   : > { %2779 = vmatpush1.bf16.msra.mxu0 %v7105_v53 }
 0x3a4   : > { %2780 = vmatprep.subr.bf16.mxu0 %v7109_v55 }
 0x3a5   : > { %5154 = vmatpush3.bf16.msra.mxu1 %v7133_v1 }
 0x3a6   : > { %5155 = vmatprep.subr.bf16.mxu1 %v8106_v50 }
 0x3a7   : > { %2781 = vmatpush1.bf16.msra.mxu0 %v7116_v49 }
 0x3a8   : > { %2782 = vmatprep.subr.bf16.mxu0 %v7121_v58 }
 0x3a9   : > { %5156 = vmatpush3.bf16.msra.mxu1 %v7146_v4 }
 0x3aa   : > { %5157 = vmatprep.subr.bf16.mxu1 %v8106_v50 }
 0x3ab   : > { %2783 = vmatpush1.bf16.msra.mxu0 %v7128_v0 }
 0x3ac   : > { %2784 = vmatprep.subr.bf16.mxu0 %v7137_v2 }
 0x3ad   : > { %5158 = vmatpush3.bf16.msra.mxu1 %v7159_v7 }
 0x3ae   : > { %5159 = vmatprep.subr.bf16.mxu1 %v8106_v50 }
 0x3af   : > { %2785 = vmatpush1.bf16.msra.mxu0 %v7142_v3 }
 0x3b0   : > { %2786 = vmatprep.subr.bf16.mxu0 %v7150_v5 }
 0x3b1   : > { %5160 = vmatpush3.bf16.msra.mxu1 %v7172_v9 }
 0x3b2   : > { %5161 = vmatprep.subr.bf16.mxu1 %v8106_v50 }
 0x3b3   : > { %2787 = vmatpush1.bf16.msra.mxu0 %v7154_v6 }
 0x3b4   : > { %2788 = vmatprep.subr.bf16.mxu0 %v7163_v8 }
 0x3b5   : > { %5162 = vmatpush3.bf16.msra.mxu1 %v7185_v61 }
 0x3b6   : > { %5163 = vmatprep.subr.bf16.mxu1 %v8106_v50 }
 0x3b7   : > { %2789 = vmatpush1.bf16.msra.mxu0 %v7167_v54 }
 0x3b8   : > { %2856 = vmatprep.subr.bf16.mxu0 %v7176_v60 }
 0x3b9   : > { %5164 = vmatpush3.bf16.msra.mxu1 %v7199_v13  ;;  %v7337_v13 = vld [vmem:[%s6697_s26] ss:$0 sm:$0xff] }
 0x3ba   : > { %5169 = vmatprep.subr.bf16.mxu1 %v8106_v50  ;;  %8186 = vst [vmem:[#allocation32_spill] sm:$0xff] %v7337_v13 }
 0x44d   : > { %v2451_v32 = vpop.f32.mrb[0].mxu0 }
 0x44e   : > { %v2710_v33 = vadd.f32 %v2707_v31, %v2451_v32  ;;  %v2453_v34 = vpop.f32.mrb[1].mxu0 }
 0x44f   : > { %v2455_v36 = vpop.f32.mrb[2].mxu0  ;;  %v2717_v40 = vadd.f32 %v2708_v35, %v2453_v34  ;;  %v2492_v38 = vpop.f32.mrb[0].mxu1  ;;  %v2739_v35 = vld [vmem:[#allocation4 + $0x168] sm:$0xff] }
 0x450   : > { %v4906_v37 = vmul.f32 -1.442695, %v2710_v33  ;;  %v2456_v39 = vpop.f32.mrb[3].mxu0  ;;  %v5127_v46 = vpop.f32.mrb[1].mxu1  ;;  %v2730_v32 = vadd.f32 %v7337_v13, %v2492_v38  ;;  %v2709_v33 = vld [vmem:[#allocation4 + $0x10] sm:$0xff] }
 0x451   : > { %v4907_v43 = vmul.f32 -1.442695, %v2717_v40  ;;  %v2495_v47 = vpop.f32.mrb[2].mxu1 }
 0x452   : > { %5914 = vpow2.f32 %v4906_v37  ;;  %v5128_v48 = vpop.f32.mrb[3].mxu1 }
 0x453   : > { %5916 = vpow2.f32 %v4907_v43  ;;  %v2740_v43 = vld [vmem:[#allocation4 + $0x170] sm:$0xff] }
 0x45c   : > { %v5915_v44 = vpop.eup %5914 }
 0x45d   : > { %v2714_v60 = vadd.f32 1.0, %v5915_v44  ;;  %v5917_v50 = vpop.eup %5916 }
 0x45e   : > { %v2721_v31 = vadd.f32 1.0, %v5917_v50 }
 0x45f   : > { %5918 = vrcp.f32 %v2714_v60 }
 0x460   : > { %5920 = vrcp.f32 %v2721_v31 }
 0x469   : > { %v5919_v36 = vpop.eup %5918 }
 0x46a   : > { %v2731_v34 = vmul.f32 %v5919_v36, %v2730_v32  ;;  %v5921_v54 = vpop.eup %5920 }
 0x46b   : > { %v2734_v13 = vsub.f32 1.0, %v5921_v54 }
 0x46c   : > { %v2732_v37 = vadd.f32 %v2731_v34, %v2709_v33  ;;  %v2736_v33 = vmul.f32 0.0, %v5921_v54  ;;  %v8187_v54 = vmov 0.0  }
 0x46d   : > { %v2660_v39 = vpop.f32.mrb[4].mxu0 }
 0x46e   : > { %5922 = vtanh.f32 %v2732_v37  ;;  %v2742_v40 = vadd.f32 %v2739_v35, %v2660_v39  ;;  %v2662_v46 = vpop.f32.mrb[5].mxu0 }
 0x46f   : > { %v2664_v47 = vpop.f32.mrb[6].mxu0  ;;  %v2749_v48 = vadd.f32 %v2740_v43, %v2662_v46  ;;  %v2701_v8 = vpop.f32.mrb[4].mxu1 }
 0x470   : > { %v4909_v44 = vmul.f32 -1.442695, %v2742_v40  ;;  %v2665_v60 = vpop.f32.mrb[7].mxu0  ;;  %v5147_v38 = vpop.f32.mrb[5].mxu1  ;;  %v7353_v40 = vld [vmem:[%s6697_s26 + $0x1] ss:$0 sm:$0xff] }
 0x471   : > { %v4910_v50 = vmul.f32 -1.442695, %v2749_v48  ;;  %v2704_v61 = vpop.f32.mrb[6].mxu1  ;;  %v2762_v43 = vadd.f32 %v7353_v40, %v2701_v8 }
 0x472   : > { %5924 = vpow2.f32 %v4909_v44  ;;  %v5148_v32 = vpop.f32.mrb[7].mxu1  ;;  %v8188_v61 = vmov 0   ;;  %v2741_v44 = vld [vmem:[#allocation4 + $0x178] sm:$0xff] }
 0x473   : > { %5926 = vpow2.f32 %v4910_v50 }
 0x478   : > { %v5923_v31 = vpop.eup %5922 }
 0x479   : > { %v2735_v36 = vmul.f32 %v5923_v31, %v2734_v13 }
 0x47b   : > { %v7340_v34 = vadd.f32 %v2736_v33, %v2735_v36 }
 0x47c   : > { %v5925_v35 = vpop.eup %5924 }
 0x47d   : > { %v2746_v37 = vadd.f32 1.0, %v5925_v35  ;;  %2770 = vst [vmem:[#allocation2] sm:$0xff] %v7340_v34  ;;  %v2773_v39 = vpack.c.bf16 %v7340_v34, %v7340_v34  ;;  %v5927_v13 = vpop.eup %5926  ;;  %v8189_v35 = vld [vmem:[#allocation30_spill] sm:$0xff] }
 0x47e   : > { %v2753_v46 = vadd.f32 1.0, %v5927_v13  ;;  %v8192_v13 = vld [vmem:[#allocation31_spill] sm:$0xff] }
 0x47f   : > { %5928 = vrcp.f32 %v2746_v37  ;;  %2807 = vmatmul.mubr.bf16.vlgmr.msra.gmra.mrb[8].mxu0 %v2773_v39  ;;  %5166 = vmatmul.mubr.bf16.vlgmr.msra.gmra.mrb[8].mxu1 %v2773_v39  ;;  %v8190_v37 = vld [vmem:[#allocation26_spill] sm:$0xff]  ;;  %v8191_v39 = vld [vmem:[#allocation27_spill] sm:$0xff] }
 0x480   : > { %2857 = vmatpush1.bf16.msra.mxu0 %v7180_v10  ;;  %5170 = vmatpush3.bf16.msra.mxu1 %v7213_v62  ;;  %5930 = vrcp.f32 %v2753_v46  ;;  %v8193_v46 = vld [vmem:[#allocation29_spill] sm:$0xff] }
 0x481   : > { %2858 = vmatprep.subr.bf16.mxu0 %v7189_v11  ;;  %5171 = vmatprep.subr.bf16.mxu1 %v8187_v54 }
 0x482   : > { %2888 = vmatprep.mubr.bf16.mxu0 %v8188_v61  ;;  %5185 = vmatprep.mubr.msk.bf16.mxu1 %vm6394_vm0, %v8187_v54 }
 0x484   : > { %2859 = vmatpush1.bf16.msra.mxu0 %v7194_v12  ;;  %5172 = vmatpush3.bf16.msra.mxu1 %v7227_v17 }
 0x485   : > { %2860 = vmatprep.subr.bf16.mxu0 %v7203_v14  ;;  %5173 = vmatprep.subr.bf16.mxu1 %v8187_v54 }
 0x488   : > { %2861 = vmatpush1.bf16.msra.mxu0 %v7209_v15  ;;  %5174 = vmatpush3.bf16.msra.mxu1 %v7242_v57 }
 0x489   : > { %v5929_v47 = vpop.eup %5928  ;;  %2862 = vmatprep.subr.bf16.mxu0 %v7217_v63  ;;  %5175 = vmatprep.subr.bf16.mxu1 %v8187_v54 }
 0x48a   : > { %v2763_v60 = vmul.f32 %v5929_v47, %v2762_v43  ;;  %v5931_v8 = vpop.eup %5930  ;;  %v2938_v43 = vld [vmem:[#allocation4 + $0x30] sm:$0xff] }
 0x48b   : > { %v2766_v50 = vsub.f32 1.0, %v5931_v8  ;;  %v2768_v32 = vmul.f32 0.0, %v5931_v8  ;;  %v2939_v8 = vld [vmem:[#allocation4 + $0x38] sm:$0xff] }
 0x48c   : > { %v2764_v48 = vadd.f32 %v2763_v60, %v2741_v44  ;;  %2863 = vmatpush1.bf16.msra.mxu0 %v7223_v16  ;;  %5176 = vmatpush3.bf16.msra.mxu1 %v7255_v22 }
 0x48d   : > { %2864 = vmatprep.subr.bf16.mxu0 %v7231_v18  ;;  %5177 = vmatprep.subr.bf16.mxu1 %v8187_v54 }
 0x48e   : > { %5932 = vtanh.f32 %v2764_v48 }
 0x490   : > { %2865 = vmatpush1.bf16.msra.mxu0 %v7238_v19  ;;  %5178 = vmatpush3.bf16.msra.mxu1 %v7268_v25 }
 0x491   : > { %2866 = vmatprep.subr.bf16.mxu0 %v7246_v20  ;;  %5179 = vmatprep.subr.bf16.mxu1 %v8187_v54 }
 0x494   : > { %2867 = vmatpush1.bf16.msra.mxu0 %v7251_v21  ;;  %5180 = vmatpush3.bf16.msra.mxu1 %v7281_v28 }
 0x495   : > { %2868 = vmatprep.subr.bf16.mxu0 %v7259_v23  ;;  %5181 = vmatprep.subr.bf16.mxu1 %v8187_v54 }
 0x498   : > { %v5933_v38 = vpop.eup %5932  ;;  %2869 = vmatpush1.bf16.msra.mxu0 %v7264_v24  ;;  %5182 = vmatpush3.bf16.msra.mxu1 %v7288_v29 }
 0x499   : > { %2870 = vmatprep.subr.bf16.mxu0 %v7272_v26  ;;  %5183 = vmatprep.subr.bf16.mxu1 %v8187_v54  ;;  %v2767_v31 = vmul.f32 %v5933_v38, %v2766_v50 }
 0x49b   : > { %v7380_v36 = vadd.f32 %v2768_v32, %v2767_v31 }
 0x49c   : > { %2871 = vmatpush1.bf16.msra.mxu0 %v7277_v27  ;;  %5184 = vmatpush3.bf16.msra.mxu1 %v7295_v30 }
 0x49d   : > { %2772 = vst [vmem:[#allocation3 + $0x38] sm:$0xff] %v7380_v36  ;;  %v2855_v33 = vpack.c.bf16 %v7380_v36, %v7380_v36  ;;  %2994 = vmatprep.subr.bf16.mxu0 %v7082_v41  ;;  %5189 = vmatprep.subr.bf16.mxu1 %v8187_v54 }
 0x49f   : > { %2889 = vmatmul.mubr.bf16.vlgmr.msra.gmra.mrb[12].mxu0 %v2855_v33  ;;  %5186 = vmatmul.mubr.bf16.vlgmr.msra.gmra.mrb[12].mxu1 %v2855_v33 }
 0x4a0   : > { %2995 = vmatpush1.bf16.msra.mxu0 %v7085_v42  ;;  %5190 = vmatpush3.bf16.msra.mxu1 %v7112_v56 }
 0x4a1   : > { %2996 = vmatprep.subr.bf16.mxu0 %v7091_v45  ;;  %5191 = vmatprep.subr.bf16.mxu1 %v8187_v54 }
 0x4a2   : > { %3026 = vmatprep.mubr.bf16.mxu0 %v8188_v61  ;;  %5205 = vmatprep.mubr.msk.bf16.mxu1 %vm6394_vm0, %v8187_v54 }
 0x4a4   : > { %2997 = vmatpush1.bf16.msra.mxu0 %v7097_v51  ;;  %5192 = vmatpush3.bf16.msra.mxu1 %v7125_v59 }
 0x4a5   : > { %2998 = vmatprep.subr.bf16.mxu0 %v7101_v52  ;;  %5193 = vmatprep.subr.bf16.mxu1 %v8187_v54 }
 0x4a8   : > { %2999 = vmatpush1.bf16.msra.mxu0 %v7105_v53  ;;  %5194 = vmatpush3.bf16.msra.mxu1 %v7133_v1 }
 0x4a9   : > { %3000 = vmatprep.subr.bf16.mxu0 %v7109_v55  ;;  %5195 = vmatprep.subr.bf16.mxu1 %v8187_v54 }
 0x4ac   : > { %3001 = vmatpush1.bf16.msra.mxu0 %v7116_v49  ;;  %5196 = vmatpush3.bf16.msra.mxu1 %v7146_v4 }
 0x4ad   : > { %3002 = vmatprep.subr.bf16.mxu0 %v7121_v58  ;;  %5197 = vmatprep.subr.bf16.mxu1 %v8187_v54 }
 0x4b0   : > { %3003 = vmatpush1.bf16.msra.mxu0 %v7128_v0  ;;  %5198 = vmatpush3.bf16.msra.mxu1 %v7159_v7 }
 0x4b1   : > { %3004 = vmatprep.subr.bf16.mxu0 %v7137_v2  ;;  %5199 = vmatprep.subr.bf16.mxu1 %v8187_v54 }
 0x4b4   : > { %3005 = vmatpush1.bf16.msra.mxu0 %v7142_v3  ;;  %5200 = vmatpush3.bf16.msra.mxu1 %v7172_v9  ;;  %v8194_v9 = vld [vmem:[#allocation32_spill] sm:$0xff] }
 0x4b5   : > { %3006 = vmatprep.subr.bf16.mxu0 %v7150_v5  ;;  %5201 = vmatprep.subr.bf16.mxu1 %v8187_v54 }
 0x4b8   : > { %3007 = vmatpush1.bf16.msra.mxu0 %v7154_v6  ;;  %5202 = vmatpush3.bf16.msra.mxu1 %v8189_v35 }
 0x4b9   : > { %3008 = vmatprep.subr.bf16.mxu0 %v8190_v37  ;;  %5203 = vmatprep.subr.bf16.mxu1 %v8187_v54 }
 0x4bc   : > { %3009 = vmatpush1.bf16.msra.mxu0 %v8191_v39  ;;  %5204 = vmatpush3.bf16.msra.mxu1 %v8192_v13 }
 0x4bd   : > { %3076 = vmatprep.subr.bf16.mxu0 %v8193_v46  ;;  %5209 = vmatprep.subr.bf16.mxu1 %v8187_v54 }
 0x552   : > { %v2808_v47 = vpop.f32.mrb[8].mxu0  ;;  %v2849_v44 = vpop.f32.mrb[8].mxu1 }
 0x553   : > { %v2941_v60 = vadd.f32 %v2938_v43, %v2808_v47  ;;  %v2810_v48 = vpop.f32.mrb[9].mxu0  ;;  %v5167_v50 = vpop.f32.mrb[9].mxu1  ;;  %v2955_v3 = vadd.f32 %v8194_v9, %v2849_v44  ;;  %v2940_v47 = vld [vmem:[#allocation4 + $0x40] sm:$0xff] }
 0x554   : > { %v2812_v38 = vpop.f32.mrb[10].mxu0  ;;  %v2852_v31 = vpop.f32.mrb[10].mxu1  ;;  %v2948_v35 = vadd.f32 %v2939_v8, %v2810_v48  ;;  %v2964_v50 = vld [vmem:[#allocation4 + $0x138] sm:$0xff] }
 0x555   : > { %v4912_v32 = vmul.f32 -1.442695, %v2941_v60  ;;  %v2813_v33 = vpop.f32.mrb[11].mxu0  ;;  %v5168_v37 = vpop.f32.mrb[11].mxu1 }
 0x556   : > { %v4913_v39 = vmul.f32 -1.442695, %v2948_v35  ;;  %v2965_v35 = vld [vmem:[#allocation4 + $0x140] sm:$0xff] }
 0x557   : > { %5934 = vpow2.f32 %v4912_v32 }
 0x558   : > { %5936 = vpow2.f32 %v4913_v39 }
 0x561   : > { %v5935_v13 = vpop.eup %5934 }
 0x562   : > { %v2945_v46 = vadd.f32 1.0, %v5935_v13  ;;  %v5937_v6 = vpop.eup %5936 }
 0x563   : > { %v2952_v5 = vadd.f32 1.0, %v5937_v6 }
 0x564   : > { %5938 = vrcp.f32 %v2945_v46 }
 0x565   : > { %5940 = vrcp.f32 %v2952_v5 }
 0x56e   : > { %v5939_v43 = vpop.eup %5938 }
 0x56f   : > { %v2956_v2 = vmul.f32 %v5939_v43, %v2955_v3  ;;  %v5941_v44 = vpop.eup %5940 }
 0x570   : > { %v2959_v3 = vsub.f32 1.0, %v5941_v44  ;;  %v2961_v43 = vmul.f32 %v5941_v44, %v7340_v34 }
 0x571   : > { %v2957_v38 = vadd.f32 %v2956_v2, %v2940_v47 }
 0x572   : > { %v2890_v60 = vpop.f32.mrb[12].mxu0  ;;  %v2931_v31 = vpop.f32.mrb[12].mxu1 }
 0x573   : > { %5942 = vtanh.f32 %v2957_v38  ;;  %v2967_v37 = vadd.f32 %v2964_v50, %v2890_v60  ;;  %v2892_v48 = vpop.f32.mrb[13].mxu0  ;;  %v5187_v39 = vpop.f32.mrb[13].mxu1 }
 0x574   : > { %v2894_v8 = vpop.f32.mrb[14].mxu0  ;;  %v2934_v13 = vpop.f32.mrb[14].mxu1  ;;  %v2974_v33 = vadd.f32 %v2965_v35, %v2892_v48  ;;  %v2966_v35 = vld [vmem:[#allocation4 + $0x148] sm:$0xff] }
 0x575   : > { %v4914_v46 = vmul.f32 -1.442695, %v2967_v37  ;;  %v2895_v32 = vpop.f32.mrb[15].mxu0  ;;  %v5188_v6 = vpop.f32.mrb[15].mxu1  ;;  %v2981_v37 = vadd.f32 %v7353_v40, %v2931_v31 }
 0x576   : > { %v4915_v9 = vmul.f32 -1.442695, %v2974_v33 }
 0x577   : > { %5944 = vpow2.f32 %v4914_v46 }
 0x578   : > { %5946 = vpow2.f32 %v4915_v9 }
 0x57d   : > { %v5943_v5 = vpop.eup %5942 }
 0x57e   : > { %v2960_v2 = vmul.f32 %v5943_v5, %v2959_v3 }
 0x580   : > { %v7426_v47 = vadd.f32 %v2961_v43, %v2960_v2 }
 0x581   : > { %v5945_v50 = vpop.eup %5944 }
 0x582   : > { %v2971_v38 = vadd.f32 1.0, %v5945_v50  ;;  %2990 = vst [vmem:[#allocation2 + $0x8] sm:$0xff] %v7426_v47  ;;  %v2993_v60 = vpack.c.bf16 %v7426_v47, %v7426_v47  ;;  %v5947_v9 = vpop.eup %5946 }
 0x583   : > { %v2978_v34 = vadd.f32 1.0, %v5947_v9 }
 0x584   : > { %5948 = vrcp.f32 %v2971_v38  ;;  %3027 = vmatmul.mubr.bf16.vlgmr.msra.gmra.mrb[16].mxu0 %v2993_v60  ;;  %5206 = vmatmul.mubr.bf16.vlgmr.msra.gmra.mrb[16].mxu1 %v2993_v60 }
 0x585   : > { %3077 = vmatpush1.bf16.msra.mxu0 %v7180_v10  ;;  %5210 = vmatpush3.bf16.msra.mxu1 %v7213_v62  ;;  %5950 = vrcp.f32 %v2978_v34 }
 0x586   : > { %3078 = vmatprep.subr.bf16.mxu0 %v7189_v11  ;;  %5211 = vmatprep.subr.bf16.mxu1 %v8187_v54 }
 0x587   : > { %3108 = vmatprep.mubr.bf16.mxu0 %v8188_v61  ;;  %5225 = vmatprep.mubr.msk.bf16.mxu1 %vm6394_vm0, %v8187_v54 }
 0x589   : > { %3079 = vmatpush1.bf16.msra.mxu0 %v7194_v12  ;;  %5212 = vmatpush3.bf16.msra.mxu1 %v7227_v17 }
 0x58a   : > { %3080 = vmatprep.subr.bf16.mxu0 %v7203_v14  ;;  %5213 = vmatprep.subr.bf16.mxu1 %v8187_v54 }
 0x58d   : > { %3081 = vmatpush1.bf16.msra.mxu0 %v7209_v15  ;;  %5214 = vmatpush3.bf16.msra.mxu1 %v7242_v57 }
 0x58e   : > { %v5949_v48 = vpop.eup %5948  ;;  %3082 = vmatprep.subr.bf16.mxu0 %v7217_v63  ;;  %5215 = vmatprep.subr.bf16.mxu1 %v8187_v54 }
 0x58f   : > { %v2982_v39 = vmul.f32 %v5949_v48, %v2981_v37  ;;  %v5951_v31 = vpop.eup %5950 }
 0x590   : > { %v2985_v13 = vsub.f32 1.0, %v5951_v31  ;;  %v2987_v6 = vmul.f32 %v5951_v31, %v7380_v36  ;;  %v3159_v36 = vld [vmem:[#allocation4 + $0x68] sm:$0xff] }
 0x591   : > { %v2983_v8 = vadd.f32 %v2982_v39, %v2966_v35  ;;  %3083 = vmatpush1.bf16.msra.mxu0 %v7223_v16  ;;  %5216 = vmatpush3.bf16.msra.mxu1 %v7255_v22  ;;  %v8205_v39 = vld [vmem:[#allocation32_spill] sm:$0xff] }
 0x592   : > { %3084 = vmatprep.subr.bf16.mxu0 %v7231_v18  ;;  %5217 = vmatprep.subr.bf16.mxu1 %v8187_v54 }
 0x593   : > { %5952 = vtanh.f32 %v2983_v8 }
 0x595   : > { %3085 = vmatpush1.bf16.msra.mxu0 %v7238_v19  ;;  %5218 = vmatpush3.bf16.msra.mxu1 %v7268_v25 }
 0x596   : > { %3086 = vmatprep.subr.bf16.mxu0 %v7246_v20  ;;  %5219 = vmatprep.subr.bf16.mxu1 %v8187_v54 }
 0x599   : > { %3087 = vmatpush1.bf16.msra.mxu0 %v7251_v21  ;;  %5220 = vmatpush3.bf16.msra.mxu1 %v7281_v28 }
 0x59a   : > { %3088 = vmatprep.subr.bf16.mxu0 %v7259_v23  ;;  %5221 = vmatprep.subr.bf16.mxu1 %v8187_v54 }
 0x59d   : > { %v5953_v46 = vpop.eup %5952  ;;  %3089 = vmatpush1.bf16.msra.mxu0 %v7264_v24  ;;  %5222 = vmatpush3.bf16.msra.mxu1 %v7288_v29 }
 0x59e   : > { %3090 = vmatprep.subr.bf16.mxu0 %v7272_v26  ;;  %5223 = vmatprep.subr.bf16.mxu1 %v8187_v54  ;;  %v2986_v32 = vmul.f32 %v5953_v46, %v2985_v13  ;;  %v3160_v13 = vld [vmem:[#allocation4 + $0x70] sm:$0xff] }
 0x5a0   : > { %v7464_v33 = vadd.f32 %v2987_v6, %v2986_v32  ;;  %v3184_v32 = vld [vmem:[#allocation4 + $0x108] sm:$0xff] }
 0x5a1   : > { %3091 = vmatpush1.bf16.msra.mxu0 %v7277_v27  ;;  %5224 = vmatpush3.bf16.msra.mxu1 %v7295_v30 }
 0x5a2   : > { %2992 = vst [vmem:[#allocation3 + $0x30] sm:$0xff] %v7464_v33  ;;  %v3075_v44 = vpack.c.bf16 %v7464_v33, %v7464_v33  ;;  %3214 = vmatprep.subr.bf16.mxu0 %v7082_v41  ;;  %5229 = vmatprep.subr.bf16.mxu1 %v8187_v54  ;;  %v8195_v41 = vld [vmem:[#allocation22_spill] sm:$0xff] }
 0x5a4   : > { %3109 = vmatmul.mubr.bf16.vlgmr.msra.gmra.mrb[20].mxu0 %v3075_v44  ;;  %5226 = vmatmul.mubr.bf16.vlgmr.msra.gmra.mrb[20].mxu1 %v3075_v44 }
 0x5a5   : > { %3215 = vmatpush1.bf16.msra.mxu0 %v7085_v42  ;;  %5230 = vmatpush3.bf16.msra.mxu1 %v7112_v56  ;;  %v8196_v42 = vld [vmem:[#allocation23_spill] sm:$0xff] }
 0x5a6   : > { %3216 = vmatprep.subr.bf16.mxu0 %v7091_v45  ;;  %5231 = vmatprep.subr.bf16.mxu1 %v8187_v54  ;;  %v8197_v45 = vld [vmem:[#allocation28_spill] sm:$0xff]  ;;  %v8202_v56 = vld [vmem:[#allocation27_spill] sm:$0xff] }
 0x5a7   : > { %3246 = vmatprep.mubr.bf16.mxu0 %v8188_v61  ;;  %5245 = vmatprep.mubr.msk.bf16.mxu1 %vm6394_vm0, %v8187_v54 }
 0x5a9   : > { %3217 = vmatpush1.bf16.msra.mxu0 %v7097_v51  ;;  %5232 = vmatpush3.bf16.msra.mxu1 %v7125_v59  ;;  %v8198_v51 = vld [vmem:[#allocation24_spill] sm:$0xff] }
 0x5aa   : > { %3218 = vmatprep.subr.bf16.mxu0 %v7101_v52  ;;  %5233 = vmatprep.subr.bf16.mxu1 %v8187_v54  ;;  %v8199_v52 = vld [vmem:[#allocation25_spill] sm:$0xff]  ;;  %v3158_v59 = vld [vmem:[#allocation4 + $0x60] sm:$0xff] }
 0x5ad   : > { %3219 = vmatpush1.bf16.msra.mxu0 %v7105_v53  ;;  %5234 = vmatpush3.bf16.msra.mxu1 %v7133_v1  ;;  %v8200_v53 = vld [vmem:[#allocation30_spill] sm:$0xff] }
 0x5ae   : > { %3220 = vmatprep.subr.bf16.mxu0 %v7109_v55  ;;  %5235 = vmatprep.subr.bf16.mxu1 %v8187_v54  ;;  %v8201_v55 = vld [vmem:[#allocation26_spill] sm:$0xff] }
 0x5b1   : > { %3221 = vmatpush1.bf16.msra.mxu0 %v7116_v49  ;;  %5236 = vmatpush3.bf16.msra.mxu1 %v7146_v4  ;;  %v8203_v49 = vld [vmem:[#allocation31_spill] sm:$0xff] }
 0x5b2   : > { %3222 = vmatprep.subr.bf16.mxu0 %v7121_v58  ;;  %5237 = vmatprep.subr.bf16.mxu1 %v8187_v54  ;;  %v8204_v58 = vld [vmem:[#allocation29_spill] sm:$0xff] }
 0x5b5   : > { %3223 = vmatpush1.bf16.msra.mxu0 %v7128_v0  ;;  %5238 = vmatpush3.bf16.msra.mxu1 %v7159_v7 }
 0x5b6   : > { %3224 = vmatprep.subr.bf16.mxu0 %v8195_v41  ;;  %5239 = vmatprep.subr.bf16.mxu1 %v8187_v54 }
 0x5b9   : > { %3225 = vmatpush1.bf16.msra.mxu0 %v8196_v42  ;;  %5240 = vmatpush3.bf16.msra.mxu1 %v8197_v45 }
 0x5ba   : > { %3226 = vmatprep.subr.bf16.mxu0 %v8198_v51  ;;  %5241 = vmatprep.subr.bf16.mxu1 %v8187_v54  ;;  %v3185_v51 = vld [vmem:[#allocation4 + $0x110] sm:$0xff] }
 0x5bd   : > { %3227 = vmatpush1.bf16.msra.mxu0 %v8199_v52  ;;  %5242 = vmatpush3.bf16.msra.mxu1 %v8200_v53 }
 0x5be   : > { %3228 = vmatprep.subr.bf16.mxu0 %v8201_v55  ;;  %5243 = vmatprep.subr.bf16.mxu1 %v8187_v54 }
 0x5c1   : > { %3229 = vmatpush1.bf16.msra.mxu0 %v8202_v56  ;;  %5244 = vmatpush3.bf16.msra.mxu1 %v8203_v49 }
 0x5c2   : > { %3296 = vmatprep.subr.bf16.mxu0 %v8204_v58  ;;  %5249 = vmatprep.subr.bf16.mxu1 %v8187_v54 }
 0x657   : > { %v3028_v0 = vpop.f32.mrb[16].mxu0  ;;  %v3069_v1 = vpop.f32.mrb[16].mxu1 }
 0x658   : > { %v3161_v4 = vadd.f32 %v3158_v59, %v3028_v0  ;;  %v3030_v7 = vpop.f32.mrb[17].mxu0  ;;  %v5207_v3 = vpop.f32.mrb[17].mxu1  ;;  %v3175_v8 = vadd.f32 %v8205_v39, %v3069_v1 }
 0x659   : > { %v3032_v5 = vpop.f32.mrb[18].mxu0  ;;  %v3072_v2 = vpop.f32.mrb[18].mxu1  ;;  %v3168_v60 = vadd.f32 %v3159_v36, %v3030_v7 }
 0x65a   : > { %v4916_v43 = vmul.f32 -1.442695, %v3161_v4  ;;  %v3033_v50 = vpop.f32.mrb[19].mxu0  ;;  %v5208_v38 = vpop.f32.mrb[19].mxu1 }
 0x65b   : > { %v4917_v9 = vmul.f32 -1.442695, %v3168_v60  ;;  %v3186_v38 = vld [vmem:[#allocation4 + $0x118] sm:$0xff]  ;;  %v7611_v60 = vld [vmem:[%s6689_s2 + $0x64] ss:$12 sps:$4 sm:$0xff]  }
 0x65c   : > { %5954 = vpow2.f32 %v4916_v43 }
 0x65d   : > { %5956 = vpow2.f32 %v4917_v9  ;;  %v7616_v9 = vld [vmem:[%s6689_s2 + $0x60] ss:$12 sps:$4 sm:$0xff]  }
 0x666   : > { %v5955_v34 = vpop.eup %5954 }
 0x667   : > { %v3165_v37 = vadd.f32 1.0, %v5955_v34  ;;  %v5957_v48 = vpop.eup %5956  ;;  %v7620_v34 = vld [vmem:[%s6689_s2 + $0x68] ss:$12 sps:$4 sm:$0xff]  }
 0x668   : > { %v3172_v35 = vadd.f32 1.0, %v5957_v48  ;;  %v7629_v48 = vld [vmem:[%s6689_s2 + $0x78] ss:$12 sps:$4 sm:$0xff]  }
 0x669   : > { %5958 = vrcp.f32 %v3165_v37  ;;  %v7624_v37 = vld [vmem:[%s6689_s2 + $0x7c] ss:$12 sps:$4 sm:$0xff]   ;;  %8207 = vst [vmem:[#allocation23_spill] sm:$0xff] %v7629_v48 }
 0x66a   : > { %5960 = vrcp.f32 %v3172_v35  ;;  %8206 = vst [vmem:[#allocation22_spill] sm:$0xff] %v7624_v37  ;;  %v7633_v35 = vld [vmem:[%s6689_s2 + $0x80] ss:$12 sps:$4 sm:$0xff]  }
 0x66b   : > { %8208 = vst [vmem:[#allocation28_spill] sm:$0xff] %v7633_v35 }
 0x673   : > { %v5959_v31 = vpop.eup %5958 }
 0x674   : > { %v3176_v46 = vmul.f32 %v5959_v31, %v3175_v8  ;;  %v5961_v0 = vpop.eup %5960  ;;  %v7637_v8 = vld [vmem:[%s6689_s2 + $0x94] ss:$12 sps:$4 sm:$0xff]   ;;  %v7642_v31 = vld [vmem:[%s6689_s2 + $0x90] ss:$12 sps:$4 sm:$0xff]  }
 0x675   : > { %v3179_v4 = vsub.f32 1.0, %v5961_v0  ;;  %v3181_v3 = vmul.f32 %v5961_v0, %v7426_v47  ;;  %8209 = vst [vmem:[#allocation24_spill] sm:$0xff] %v7637_v8  ;;  %8210 = vst [vmem:[#allocation25_spill] sm:$0xff] %v7642_v31 }
 0x676   : > { %v3177_v6 = vadd.f32 %v3176_v46, %v3160_v13  ;;  %v7646_v13 = vld [vmem:[%s6689_s2 + $0x98] ss:$12 sps:$4 sm:$0xff]  }
 0x677   : > { %v3110_v44 = vpop.f32.mrb[20].mxu0  ;;  %v3151_v41 = vpop.f32.mrb[20].mxu1  ;;  %8211 = vst [vmem:[#allocation30_spill] sm:$0xff] %v7646_v13  ;;  %v7650_v46 = vld [vmem:[%s6689_s2 + $0xac] ss:$12 sps:$4 sm:$0xff]  }
 0x678   : > { %5962 = vtanh.f32 %v3177_v6  ;;  %v3187_v42 = vadd.f32 %v3184_v32, %v3110_v44  ;;  %v3112_v45 = vpop.f32.mrb[21].mxu0  ;;  %v5227_v52 = vpop.f32.mrb[21].mxu1  ;;  %8212 = vst [vmem:[#allocation26_spill] sm:$0xff] %v7650_v46  ;;  %v7655_v32 = vld [vmem:[%s6689_s2 + $0xa8] ss:$12 sps:$4 sm:$0xff]  }
 0x679   : > { %v3114_v53 = vpop.f32.mrb[22].mxu0  ;;  %v3154_v55 = vpop.f32.mrb[22].mxu1  ;;  %v3194_v59 = vadd.f32 %v3185_v51, %v3112_v45  ;;  %8213 = vst [vmem:[#allocation27_spill] sm:$0xff] %v7655_v32  ;;  %v7659_v6 = vld [vmem:[%s6689_s2 + $0xb0] ss:$12 sps:$4 sm:$0xff]  }
 0x67a   : > { %v4918_v56 = vmul.f32 -1.442695, %v3187_v42  ;;  %v3115_v49 = vpop.f32.mrb[23].mxu0  ;;  %v5228_v58 = vpop.f32.mrb[23].mxu1  ;;  %8214 = vst [vmem:[#allocation31_spill] sm:$0xff] %v7659_v6  ;;  %v3379_v53 = vld [vmem:[#allocation4 + $0x98] sm:$0xff] }
 0x67b   : > { %v4919_v1 = vmul.f32 -1.442695, %v3194_v59  ;;  %v7663_v44 = vld [vmem:[%s6689_s2 + $0xc4] ss:$12 sps:$4 sm:$0xff]  }
 0x67c   : > { %5964 = vpow2.f32 %v4918_v56  ;;  %8215 = vst [vmem:[#allocation29_spill] sm:$0xff] %v7663_v44 }
 0x67d   : > { %5966 = vpow2.f32 %v4919_v1 }
 0x682   : > { %v5963_v7 = vpop.eup %5962 }
 0x683   : > { %v3180_v36 = vmul.f32 %v5963_v7, %v3179_v4 }
 0x685   : > { %v7510_v5 = vadd.f32 %v3181_v3, %v3180_v36 }
 0x686   : > { %v5965_v2 = vpop.eup %5964 }
 0x687   : > { %v3191_v43 = vadd.f32 1.0, %v5965_v2  ;;  %3210 = vst [vmem:[#allocation2 + $0x10] sm:$0xff] %v7510_v5  ;;  %v3213_v50 = vpack.c.bf16 %v7510_v5, %v7510_v5  ;;  %v5967_v47 = vpop.eup %5966 }
 0x689   : > { %5968 = vrcp.f32 %v3191_v43  ;;  %3247 = vmatmul.mubr.bf16.vlgmr.msra.gmra.mrb[24].mxu0 %v3213_v50  ;;  %5246 = vmatmul.mubr.bf16.vlgmr.msra.gmra.mrb[24].mxu1 %v3213_v50 }
 0x68a   : > { %3297 = vmatpush1.bf16.msra.mxu0 %v7180_v10  ;;  %5250 = vmatpush3.bf16.msra.mxu1 %v7213_v62  ;;  %v3198_v10 = vadd.f32 1.0, %v5967_v47  ;;  %v3201_v62 = vadd.f32 %v7353_v40, %v3151_v41  ;;  %v3378_v41 = vld [vmem:[#allocation4 + $0x90] sm:$0xff]  ;;  %v3380_v47 = vld [vmem:[#allocation4 + $0xa0] sm:$0xff] }
 0x68b   : > { %3298 = vmatprep.subr.bf16.mxu0 %v7189_v11  ;;  %5251 = vmatprep.subr.bf16.mxu1 %v8187_v54 }
 0x68c   : > { %3328 = vmatprep.mubr.bf16.mxu0 %v8188_v61  ;;  %5265 = vmatprep.mubr.msk.bf16.mxu1 %vm6394_vm0, %v8187_v54  ;;  %5970 = vrcp.f32 %v3198_v10 }
 0x68e   : > { %3299 = vmatpush1.bf16.msra.mxu0 %v7194_v12  ;;  %5252 = vmatpush3.bf16.msra.mxu1 %v7227_v17 }
 0x68f   : > { %3300 = vmatprep.subr.bf16.mxu0 %v7203_v14  ;;  %5253 = vmatprep.subr.bf16.mxu1 %v8187_v54 }
 0x692   : > { %3301 = vmatpush1.bf16.msra.mxu0 %v7209_v15  ;;  %5254 = vmatpush3.bf16.msra.mxu1 %v7242_v57 }
 0x693   : > { %v5969_v11 = vpop.eup %5968  ;;  %3302 = vmatprep.subr.bf16.mxu0 %v7217_v63  ;;  %5255 = vmatprep.subr.bf16.mxu1 %v8187_v54 }
 0x694   : > { %v3202_v12 = vmul.f32 %v5969_v11, %v3201_v62  ;;  %v3404_v62 = vld [vmem:[#allocation4 + $0xd8] sm:$0xff] }
 0x696   : > { %v3203_v17 = vadd.f32 %v3202_v12, %v3186_v38  ;;  %3303 = vmatpush1.bf16.msra.mxu0 %v7223_v16  ;;  %5256 = vmatpush3.bf16.msra.mxu1 %v7255_v22  ;;  %v5971_v14 = vpop.eup %5970  ;;  %v7565_v22 = vld [vmem:[%s6689_s2 + $0x8] ss:$12 sps:$4 sm:$0xff]  }
 0x697   : > { %3304 = vmatprep.subr.bf16.mxu0 %v7231_v18  ;;  %5257 = vmatprep.subr.bf16.mxu1 %v8187_v54  ;;  %v3205_v15 = vsub.f32 1.0, %v5971_v14  ;;  %v3207_v18 = vmul.f32 %v5971_v14, %v7464_v33  ;;  %v7607_v33 = vld [vmem:[%s6689_s2 + $0x50] ss:$12 sps:$4 sm:$0xff]  }
 0x698   : > { %5972 = vtanh.f32 %v3203_v17 }
 0x69a   : > { %3305 = vmatpush1.bf16.msra.mxu0 %v7238_v19  ;;  %5258 = vmatpush3.bf16.msra.mxu1 %v7268_v25  ;;  %v7581_v25 = vld [vmem:[%s6689_s2 + $0x20] ss:$12 sps:$4 sm:$0xff]  }
 0x69b   : > { %3306 = vmatprep.subr.bf16.mxu0 %v7246_v20  ;;  %5259 = vmatprep.subr.bf16.mxu1 %v8187_v54  ;;  %v7556_v20 = vld [vmem:[%s6689_s2 + $0x4] ss:$12 sps:$4 sm:$0xff]  }
 0x69e   : > { %3307 = vmatpush1.bf16.msra.mxu0 %v7251_v21  ;;  %5260 = vmatpush3.bf16.msra.mxu1 %v7281_v28  ;;  %v7561_v21 = vld [vmem:[%s6689_s2] ss:$12 sps:$4 sm:$0xff]   ;;  %v7594_v28 = vld [vmem:[%s6689_s2 + $0x38] ss:$12 sps:$4 sm:$0xff]  }
 0x69f   : > { %3308 = vmatprep.subr.bf16.mxu0 %v7259_v23  ;;  %5261 = vmatprep.subr.bf16.mxu1 %v8187_v54  ;;  %v7569_v23 = vld [vmem:[%s6689_s2 + $0x1c] ss:$12 sps:$4 sm:$0xff]  }
 0x6a2   : > { %v5973_v63 = vpop.eup %5972  ;;  %3309 = vmatpush1.bf16.msra.mxu0 %v7264_v24  ;;  %5262 = vmatpush3.bf16.msra.mxu1 %v7288_v29  ;;  %v7577_v24 = vld [vmem:[%s6689_s2 + $0x18] ss:$12 sps:$4 sm:$0xff]  }
 0x6a3   : > { %3310 = vmatprep.subr.bf16.mxu0 %v7272_v26  ;;  %5263 = vmatprep.subr.bf16.mxu1 %v8187_v54  ;;  %v3206_v16 = vmul.f32 %v5973_v63, %v3205_v15  ;;  %v7585_v26 = vld [vmem:[%s6689_s2 + $0x34] ss:$12 sps:$4 sm:$0xff]   ;;  %v7598_v29 = vld [vmem:[%s6689_s2 + $0x4c] ss:$12 sps:$4 sm:$0xff]  }
 0x6a4   : > { %v3405_v15 = vld [vmem:[#allocation4 + $0xe0] sm:$0xff] }
 0x6a5   : > { %v7548_v19 = vadd.f32 %v3207_v18, %v3206_v16 }
 0x6a6   : > { %3311 = vmatpush1.bf16.msra.mxu0 %v7277_v27  ;;  %5264 = vmatpush3.bf16.msra.mxu1 %v7295_v30  ;;  %v7590_v27 = vld [vmem:[%s6689_s2 + $0x30] ss:$12 sps:$4 sm:$0xff]   ;;  %v7603_v30 = vld [vmem:[%s6689_s2 + $0x48] ss:$12 sps:$4 sm:$0xff]  }
 0x6a7   : > { %3212 = vst [vmem:[#allocation3 + $0x28] sm:$0xff] %v7548_v19  ;;  %v3295_v57 = vpack.c.bf16 %v7548_v19, %v7548_v19  ;;  %3434 = vmatprep.subr.bf16.mxu0 %v7556_v20  ;;  %5269 = vmatprep.subr.bf16.mxu1 %v8187_v54 }
 0x6a9   : > { %3329 = vmatmul.mubr.bf16.vlgmr.msra.gmra.mrb[28].mxu0 %v3295_v57  ;;  %5266 = vmatmul.mubr.bf16.vlgmr.msra.gmra.mrb[28].mxu1 %v3295_v57 }
 0x6aa   : > { %3435 = vmatpush1.bf16.msra.mxu0 %v7561_v21  ;;  %5270 = vmatpush3.bf16.msra.mxu1 %v7565_v22 }
 0x6ab   : > { %3436 = vmatprep.subr.bf16.mxu0 %v7569_v23  ;;  %5271 = vmatprep.subr.bf16.mxu1 %v8187_v54 }
 0x6ac   : > { %3466 = vmatprep.mubr.bf16.mxu0 %v8188_v61  ;;  %5285 = vmatprep.mubr.msk.bf16.mxu1 %vm6394_vm0, %v8187_v54 }
 0x6ae   : > { %3437 = vmatpush1.bf16.msra.mxu0 %v7577_v24  ;;  %5272 = vmatpush3.bf16.msra.mxu1 %v7581_v25 }
 0x6af   : > { %3438 = vmatprep.subr.bf16.mxu0 %v7585_v26  ;;  %5273 = vmatprep.subr.bf16.mxu1 %v8187_v54 }
 0x6b2   : > { %3439 = vmatpush1.bf16.msra.mxu0 %v7590_v27  ;;  %5274 = vmatpush3.bf16.msra.mxu1 %v7594_v28 }
 0x6b3   : > { %3440 = vmatprep.subr.bf16.mxu0 %v7598_v29  ;;  %5275 = vmatprep.subr.bf16.mxu1 %v8187_v54 }
 0x6b6   : > { %3441 = vmatpush1.bf16.msra.mxu0 %v7603_v30  ;;  %5276 = vmatpush3.bf16.msra.mxu1 %v7607_v33 }
 0x6b7   : > { %3442 = vmatprep.subr.bf16.mxu0 %v7611_v60  ;;  %5277 = vmatprep.subr.bf16.mxu1 %v8187_v54 }
 0x6ba   : > { %3443 = vmatpush1.bf16.msra.mxu0 %v7616_v9  ;;  %5278 = vmatpush3.bf16.msra.mxu1 %v7620_v34 }
 0x6bb   : > { %3444 = vmatprep.subr.bf16.mxu0 %v7624_v37  ;;  %5279 = vmatprep.subr.bf16.mxu1 %v8187_v54 }
 0x6be   : > { %3445 = vmatpush1.bf16.msra.mxu0 %v7629_v48  ;;  %5280 = vmatpush3.bf16.msra.mxu1 %v7633_v35 }
 0x6bf   : > { %3446 = vmatprep.subr.bf16.mxu0 %v7637_v8  ;;  %5281 = vmatprep.subr.bf16.mxu1 %v8187_v54 }
 0x6c2   : > { %3447 = vmatpush1.bf16.msra.mxu0 %v7642_v31  ;;  %5282 = vmatpush3.bf16.msra.mxu1 %v7646_v13 }
 0x6c3   : > { %3448 = vmatprep.subr.bf16.mxu0 %v7650_v46  ;;  %5283 = vmatprep.subr.bf16.mxu1 %v8187_v54 }
 0x6c6   : > { %3449 = vmatpush1.bf16.msra.mxu0 %v7655_v32  ;;  %5284 = vmatpush3.bf16.msra.mxu1 %v7659_v6 }
 0x6c7   : > { %3516 = vmatprep.subr.bf16.mxu0 %v7663_v44  ;;  %5289 = vmatprep.subr.bf16.mxu1 %v8187_v54 }
 0x75c   : > { %v3248_v42 = vpop.f32.mrb[24].mxu0  ;;  %v3289_v45 = vpop.f32.mrb[24].mxu1 }
 0x75d   : > { %v3381_v51 = vadd.f32 %v3378_v41, %v3248_v42  ;;  %v3250_v52 = vpop.f32.mrb[25].mxu0  ;;  %v5247_v55 = vpop.f32.mrb[25].mxu1  ;;  %v3395_v43 = vadd.f32 %v8205_v39, %v3289_v45 }
 0x75e   : > { %v3252_v56 = vpop.f32.mrb[26].mxu0  ;;  %v3292_v49 = vpop.f32.mrb[26].mxu1  ;;  %v3388_v1 = vadd.f32 %v3379_v53, %v3250_v52 }
 0x75f   : > { %v4920_v58 = vmul.f32 -1.442695, %v3381_v51  ;;  %v3253_v59 = vpop.f32.mrb[27].mxu0  ;;  %v5248_v0 = vpop.f32.mrb[27].mxu1 }
 0x760   : > { %v4921_v4 = vmul.f32 -1.442695, %v3388_v1  ;;  %v7675_v1 = vld [vmem:[%s6689_s2 + $0xc0] ss:$12 sps:$4 sm:$0xff]  }
 0x761   : > { %5974 = vpow2.f32 %v4920_v58 }
 0x762   : > { %5976 = vpow2.f32 %v4921_v4  ;;  %v7683_v4 = vld [vmem:[%s6689_s2 + $0xdc] ss:$12 sps:$4 sm:$0xff]  }
 0x76b   : > { %v5975_v7 = vpop.eup %5974 }
 0x76c   : > { %v3385_v36 = vadd.f32 1.0, %v5975_v7  ;;  %v5977_v3 = vpop.eup %5976 }
 0x76d   : > { %v3392_v2 = vadd.f32 1.0, %v5977_v3  ;;  %v7695_v3 = vld [vmem:[%s6689_s2 + $0xe0] ss:$12 sps:$4 sm:$0xff]  }
 0x76e   : > { %5978 = vrcp.f32 %v3385_v36  ;;  %v7691_v36 = vld [vmem:[%s6689_s2 + $0xd8] ss:$12 sps:$4 sm:$0xff]  }
 0x76f   : > { %5980 = vrcp.f32 %v3392_v2  ;;  %v7699_v2 = vld [vmem:[%s6689_s2 + $0xf4] ss:$12 sps:$4 sm:$0xff]  }
 0x778   : > { %v5979_v50 = vpop.eup %5978 }
 0x779   : > { %v3396_v10 = vmul.f32 %v5979_v50, %v3395_v43  ;;  %v5981_v39 = vpop.eup %5980 }
 0x77a   : > { %v3399_v52 = vsub.f32 1.0, %v5981_v39  ;;  %v3401_v56 = vmul.f32 %v5981_v39, %v7510_v5  ;;  %v7679_v5 = vld [vmem:[%s6689_s2 + $0xc8] ss:$12 sps:$4 sm:$0xff]  }
 0x77b   : > { %v3397_v11 = vadd.f32 %v3396_v10, %v3380_v47  ;;  %v7705_v47 = vld [vmem:[%s6689_s2 + $0xf0] ss:$12 sps:$4 sm:$0xff]   ;;  %v7709_v10 = vld [vmem:[%s6689_s2 + $0xf8] ss:$12 sps:$4 sm:$0xff]  }
 0x77c   : > { %v3330_v38 = vpop.f32.mrb[28].mxu0  ;;  %v3371_v12 = vpop.f32.mrb[28].mxu1 }
 0x77d   : > { %5982 = vtanh.f32 %v3397_v11  ;;  %v3407_v17 = vadd.f32 %v3404_v62, %v3330_v38  ;;  %v3332_v14 = vpop.f32.mrb[29].mxu0  ;;  %v5267_v63 = vpop.f32.mrb[29].mxu1  ;;  %v3421_v50 = vadd.f32 %v7353_v40, %v3371_v12  ;;  %v3406_v11 = vld [vmem:[#allocation4 + $0xe8] sm:$0xff] }
 0x77e   : > { %v3334_v16 = vpop.f32.mrb[30].mxu0  ;;  %v3374_v18 = vpop.f32.mrb[30].mxu1  ;;  %v3414_v51 = vadd.f32 %v3405_v15, %v3332_v14  ;;  %v7713_v38 = vld [vmem:[%s6689_s2 + $0x10c] ss:$12 sps:$4 sm:$0xff]   ;;  %v7722_v14 = vld [vmem:[%s6689_s2 + $0x110] ss:$12 sps:$4 sm:$0xff]  }
 0x77f   : > { %v4922_v57 = vmul.f32 -1.442695, %v3407_v17  ;;  %v3335_v41 = vpop.f32.mrb[31].mxu0  ;;  %v5268_v42 = vpop.f32.mrb[31].mxu1  ;;  %v7718_v17 = vld [vmem:[%s6689_s2 + $0x108] ss:$12 sps:$4 sm:$0xff]  }
 0x780   : > { %v4923_v45 = vmul.f32 -1.442695, %v3414_v51  ;;  %v7726_v15 = vld [vmem:[%s6689_s2 + $0x124] ss:$12 sps:$4 sm:$0xff]   ;;  %v7731_v63 = vld [vmem:[%s6689_s2 + $0x120] ss:$12 sps:$4 sm:$0xff]  }
 0x781   : > { %5984 = vpow2.f32 %v4922_v57  ;;  %v7735_v16 = vld [vmem:[%s6689_s2 + $0x128] ss:$12 sps:$4 sm:$0xff]   ;;  %v7744_v41 = vld [vmem:[%s6689_s2 + $0x138] ss:$12 sps:$4 sm:$0xff]   ;;  %v7748_v42 = vld [vmem:[%s6689_s2 + $0x140] ss:$12 sps:$4 sm:$0xff]  }
 0x782   : > { %5986 = vpow2.f32 %v4923_v45  ;;  %v7739_v18 = vld [vmem:[%s6689_s2 + $0x13c] ss:$12 sps:$4 sm:$0xff]   ;;  %v7752_v51 = vld [vmem:[%s6689_s2 + $0x154] ss:$12 sps:$4 sm:$0xff]  }
 0x787   : > { %v5983_v53 = vpop.eup %5982 }
 0x788   : > { %v3400_v55 = vmul.f32 %v5983_v53, %v3399_v52  ;;  %v7757_v52 = vld [vmem:[%s6689_s2 + $0x150] ss:$12 sps:$4 sm:$0xff]   ;;  %v7761_v53 = vld [vmem:[%s6689_s2 + $0x158] ss:$12 sps:$4 sm:$0xff]  }
 0x78a   : > { %v7669_v49 = vadd.f32 %v3401_v56, %v3400_v55  ;;  %v7765_v55 = vld [vmem:[%s6689_s2 + $0x16c] ss:$12 sps:$4 sm:$0xff]  }
 0x78b   : > { %v5985_v58 = vpop.eup %5984 }
 0x78c   : > { %v3411_v59 = vadd.f32 1.0, %v5985_v58  ;;  %3430 = vst [vmem:[#allocation2 + $0x18] sm:$0xff] %v7669_v49  ;;  %v3433_v0 = vpack.c.bf16 %v7669_v49, %v7669_v49  ;;  %v5987_v7 = vpop.eup %5986 }
 0x78d   : > { %v3418_v43 = vadd.f32 1.0, %v5987_v7  ;;  %v7777_v7 = vld [vmem:[%s6689_s2 + $0x170] ss:$12 sps:$4 sm:$0xff]  }
 0x78e   : > { %5988 = vrcp.f32 %v3411_v59  ;;  %3467 = vmatmul.mubr.bf16.vlgmr.msra.gmra.mrb[32].mxu0 %v3433_v0  ;;  %5286 = vmatmul.mubr.bf16.vlgmr.msra.gmra.mrb[32].mxu1 %v3433_v0  ;;  %v7773_v0 = vld [vmem:[%s6689_s2 + $0x168] ss:$12 sps:$4 sm:$0xff]  }
 0x78f   : > { %3517 = vmatpush1.bf16.msra.mxu0 %v7675_v1  ;;  %5290 = vmatpush3.bf16.msra.mxu1 %v7679_v5  ;;  %5990 = vrcp.f32 %v3418_v43 }
 0x790   : > { %3518 = vmatprep.subr.bf16.mxu0 %v7683_v4  ;;  %5291 = vmatprep.subr.bf16.mxu1 %v8187_v54 }
 0x791   : > { %3548 = vmatprep.mubr.bf16.mxu0 %v8188_v61  ;;  %5305 = vmatprep.mubr.msk.bf16.mxu1 %vm6394_vm0, %v8187_v54 }
 0x793   : > { %3519 = vmatpush1.bf16.msra.mxu0 %v7691_v36  ;;  %5292 = vmatpush3.bf16.msra.mxu1 %v7695_v3 }
 0x794   : > { %3520 = vmatprep.subr.bf16.mxu0 %v7699_v2  ;;  %5293 = vmatprep.subr.bf16.mxu1 %v8187_v54 }
 0x797   : > { %3521 = vmatpush1.bf16.msra.mxu0 %v7705_v47  ;;  %5294 = vmatpush3.bf16.msra.mxu1 %v7709_v10 }
 0x798   : > { %v5989_v62 = vpop.eup %5988  ;;  %3522 = vmatprep.subr.bf16.mxu0 %v7713_v38  ;;  %5295 = vmatprep.subr.bf16.mxu1 %v8187_v54 }
 0x799   : > { %v3422_v40 = vmul.f32 %v5989_v62, %v3421_v50  ;;  %v5991_v57 = vpop.eup %5990 }
 0x79a   : > { %v3425_v39 = vsub.f32 1.0, %v5991_v57  ;;  %v3427_v58 = vmul.f32 %v5991_v57, %v7548_v19  ;;  %v3597_v19 = vld [vmem:[#allocation4 + $0xc0] sm:$0xff] }
 0x79b   : > { %v3423_v12 = vadd.f32 %v3422_v40, %v3406_v11  ;;  %3523 = vmatpush1.bf16.msra.mxu0 %v7718_v17  ;;  %5296 = vmatpush3.bf16.msra.mxu1 %v7722_v14 }
 0x79c   : > { %3524 = vmatprep.subr.bf16.mxu0 %v7726_v15  ;;  %5297 = vmatprep.subr.bf16.mxu1 %v8187_v54 }
 0x79d   : > { %5992 = vtanh.f32 %v3423_v12  ;;  %v3598_v12 = vld [vmem:[#allocation4 + $0xc8] sm:$0xff] }
 0x79f   : > { %3525 = vmatpush1.bf16.msra.mxu0 %v7731_v63  ;;  %5298 = vmatpush3.bf16.msra.mxu1 %v7735_v16 }
 0x7a0   : > { %3526 = vmatprep.subr.bf16.mxu0 %v7739_v18  ;;  %5299 = vmatprep.subr.bf16.mxu1 %v8187_v54 }
 0x7a3   : > { %3527 = vmatpush1.bf16.msra.mxu0 %v7744_v41  ;;  %5300 = vmatpush3.bf16.msra.mxu1 %v7748_v42 }
 0x7a4   : > { %3528 = vmatprep.subr.bf16.mxu0 %v7752_v51  ;;  %5301 = vmatprep.subr.bf16.mxu1 %v8187_v54 }
 0x7a7   : > { %v5993_v45 = vpop.eup %5992  ;;  %3529 = vmatpush1.bf16.msra.mxu0 %v7757_v52  ;;  %5302 = vmatpush3.bf16.msra.mxu1 %v7761_v53 }
 0x7a8   : > { %3530 = vmatprep.subr.bf16.mxu0 %v7765_v55  ;;  %5303 = vmatprep.subr.bf16.mxu1 %v8187_v54  ;;  %v3426_v56 = vmul.f32 %v5993_v45, %v3425_v39 }
 0x7aa   : > { %v7770_v59 = vadd.f32 %v3427_v58, %v3426_v56 }
 0x7ab   : > { %3531 = vmatpush1.bf16.msra.mxu0 %v7773_v0  ;;  %5304 = vmatpush3.bf16.msra.mxu1 %v7777_v7 }
 0x7ac   : > { %3432 = vst [vmem:[#allocation3 + $0x20] sm:$0xff] %v7770_v59  ;;  %v3515_v43 = vpack.c.bf16 %v7770_v59, %v7770_v59  ;;  %3652 = vmatprep.subr.bf16.mxu0 %v7556_v20  ;;  %5309 = vmatprep.subr.bf16.mxu1 %v8187_v54 }
 0x7ae   : > { %3549 = vmatmul.mubr.bf16.vlgmr.msra.gmra.mrb[36].mxu0 %v3515_v43  ;;  %5306 = vmatmul.mubr.bf16.vlgmr.msra.gmra.mrb[36].mxu1 %v3515_v43 }
 0x7af   : > { %3653 = vmatpush1.bf16.msra.mxu0 %v7561_v21  ;;  %5310 = vmatpush3.bf16.msra.mxu1 %v7565_v22 }
 0x7b0   : > { %3654 = vmatprep.subr.bf16.mxu0 %v7569_v23  ;;  %5311 = vmatprep.subr.bf16.mxu1 %v8187_v54 }
 0x7b1   : > { %3684 = vmatprep.mubr.bf16.mxu0 %v8188_v61  ;;  %5325 = vmatprep.mubr.msk.bf16.mxu1 %vm6394_vm0, %v8187_v54 }
 0x7b3   : > { %3655 = vmatpush1.bf16.msra.mxu0 %v7577_v24  ;;  %5312 = vmatpush3.bf16.msra.mxu1 %v7581_v25 }
 0x7b4   : > { %3656 = vmatprep.subr.bf16.mxu0 %v7585_v26  ;;  %5313 = vmatprep.subr.bf16.mxu1 %v8187_v54 }
 0x7b7   : > { %3657 = vmatpush1.bf16.msra.mxu0 %v7590_v27  ;;  %5314 = vmatpush3.bf16.msra.mxu1 %v7594_v28 }
 0x7b8   : > { %3658 = vmatprep.subr.bf16.mxu0 %v7598_v29  ;;  %5315 = vmatprep.subr.bf16.mxu1 %v8187_v54 }
 0x7bb   : > { %3659 = vmatpush1.bf16.msra.mxu0 %v7603_v30  ;;  %5316 = vmatpush3.bf16.msra.mxu1 %v7607_v33 }
 0x7bc   : > { %3660 = vmatprep.subr.bf16.mxu0 %v7611_v60  ;;  %5317 = vmatprep.subr.bf16.mxu1 %v8187_v54 }
 0x7bf   : > { %3661 = vmatpush1.bf16.msra.mxu0 %v7616_v9  ;;  %5318 = vmatpush3.bf16.msra.mxu1 %v7620_v34 }
 0x7c0   : > { %3662 = vmatprep.subr.bf16.mxu0 %v7624_v37  ;;  %5319 = vmatprep.subr.bf16.mxu1 %v8187_v54 }
 0x7c3   : > { %3663 = vmatpush1.bf16.msra.mxu0 %v7629_v48  ;;  %5320 = vmatpush3.bf16.msra.mxu1 %v7633_v35 }
 0x7c4   : > { %3664 = vmatprep.subr.bf16.mxu0 %v7637_v8  ;;  %5321 = vmatprep.subr.bf16.mxu1 %v8187_v54  ;;  %v7821_v8 = vld [vmem:[%s6697_s26] ss:$0 sm:$0xff] }
 0x7c5   : > { %8216 = vst [vmem:[#allocation32_spill] sm:$0xff] %v7821_v8 }
 0x7c7   : > { %3665 = vmatpush1.bf16.msra.mxu0 %v7642_v31  ;;  %5322 = vmatpush3.bf16.msra.mxu1 %v7646_v13 }
 0x7c8   : > { %3666 = vmatprep.subr.bf16.mxu0 %v7650_v46  ;;  %5323 = vmatprep.subr.bf16.mxu1 %v8187_v54 }
 0x7cb   : > { %3667 = vmatpush1.bf16.msra.mxu0 %v7655_v32  ;;  %5324 = vmatpush3.bf16.msra.mxu1 %v7659_v6 }
 0x7cc   : > { %3734 = vmatprep.subr.bf16.mxu0 %v7663_v44  ;;  %5329 = vmatprep.subr.bf16.mxu1 %v8187_v54 }
 0x861   : > { %v3468_v50 = vpop.f32.mrb[32].mxu0  ;;  %v3509_v62 = vpop.f32.mrb[32].mxu1 }
 0x862   : > { %v3600_v11 = vadd.f32 %v3597_v19, %v3468_v50  ;;  %v3470_v40 = vpop.f32.mrb[33].mxu0  ;;  %v5287_v57 = vpop.f32.mrb[33].mxu1  ;;  %v3614_v19 = vadd.f32 %v7821_v8, %v3509_v62 }
 0x863   : > { %v3472_v39 = vpop.f32.mrb[34].mxu0  ;;  %v3512_v45 = vpop.f32.mrb[34].mxu1  ;;  %v3607_v32 = vadd.f32 %v3598_v12, %v3470_v40  ;;  %v3599_v57 = vld [vmem:[#allocation4 + $0xd0] sm:$0xff] }
 0x864   : > { %v4924_v56 = vmul.f32 -1.442695, %v3600_v11  ;;  %v3473_v58 = vpop.f32.mrb[35].mxu0  ;;  %v5288_v43 = vpop.f32.mrb[35].mxu1  ;;  %v3622_v11 = vld [vmem:[#allocation4 + $0xa8] sm:$0xff]  ;;  %v3623_v12 = vld [vmem:[#allocation4 + $0xb0] sm:$0xff] }
 0x865   : > { %v4925_v6 = vmul.f32 -1.442695, %v3607_v32 }
 0x866   : > { %5994 = vpow2.f32 %v4924_v56 }
 0x867   : > { %5996 = vpow2.f32 %v4925_v6 }
 0x870   : > { %v5995_v44 = vpop.eup %5994 }
 0x871   : > { %v3604_v46 = vadd.f32 1.0, %v5995_v44  ;;  %v5997_v13 = vpop.eup %5996 }
 0x872   : > { %v3611_v31 = vadd.f32 1.0, %v5997_v13 }
 0x873   : > { %5998 = vrcp.f32 %v3604_v46 }
 0x874   : > { %6000 = vrcp.f32 %v3611_v31 }
 0x87d   : > { %v5999_v50 = vpop.eup %5998 }
 0x87e   : > { %v3615_v39 = vmul.f32 %v5999_v50, %v3614_v19  ;;  %v6001_v62 = vpop.eup %6000 }
 0x87f   : > { %v3618_v19 = vsub.f32 1.0, %v6001_v62 }
 0x880   : > { %v3616_v45 = vadd.f32 %v3615_v39, %v3599_v57  ;;  %v3620_v57 = vmul.f32 %v6001_v62, %v7669_v49 }
 0x881   : > { %v3550_v58 = vpop.f32.mrb[36].mxu0  ;;  %v3591_v40 = vpop.f32.mrb[36].mxu1 }
 0x882   : > { %6002 = vtanh.f32 %v3616_v45  ;;  %v3625_v32 = vadd.f32 %v3622_v11, %v3550_v58  ;;  %v3552_v6 = vpop.f32.mrb[37].mxu0  ;;  %v5307_v44 = vpop.f32.mrb[37].mxu1 }
 0x883   : > { %v3554_v46 = vpop.f32.mrb[38].mxu0  ;;  %v3594_v56 = vpop.f32.mrb[38].mxu1  ;;  %v3632_v48 = vadd.f32 %v3623_v12, %v3552_v6  ;;  %v3624_v6 = vld [vmem:[#allocation4 + $0xb8] sm:$0xff] }
 0x884   : > { %v4926_v13 = vmul.f32 -1.442695, %v3625_v32  ;;  %v3555_v43 = vpop.f32.mrb[39].mxu0  ;;  %v5308_v35 = vpop.f32.mrb[39].mxu1 }
 0x885   : > { %v4927_v8 = vmul.f32 -1.442695, %v3632_v48 }
 0x886   : > { %6004 = vpow2.f32 %v4926_v13 }
 0x887   : > { %6006 = vpow2.f32 %v4927_v8  ;;  %v7842_v8 = vld [vmem:[%s6697_s26 + $0x1] ss:$0 sm:$0xff] }
 0x888   : > { %v3639_v49 = vadd.f32 %v7842_v8, %v3591_v40 }
 0x88c   : > { %v6003_v31 = vpop.eup %6002 }
 0x88d   : > { %v3619_v50 = vmul.f32 %v6003_v31, %v3618_v19  ;;  %v8218_v31 = vld [vmem:[#allocation28_spill] sm:$0xff] }
 0x88f   : > { %v7825_v39 = vadd.f32 %v3620_v57, %v3619_v50  ;;  %v8219_v50 = vld [vmem:[#allocation24_spill] sm:$0xff]  ;;  %v8220_v57 = vld [vmem:[#allocation25_spill] sm:$0xff] }
 0x890   : > { %v6005_v11 = vpop.eup %6004 }
 0x891   : > { %v3629_v45 = vadd.f32 1.0, %v6005_v11  ;;  %3648 = vst [vmem:[#allocation2 + $0x20] sm:$0xff] %v7825_v39  ;;  %v3651_v58 = vpack.c.bf16 %v7825_v39, %v7825_v39  ;;  %v6007_v48 = vpop.eup %6006  ;;  %v8221_v11 = vld [vmem:[#allocation30_spill] sm:$0xff] }
 0x892   : > { %v3636_v35 = vadd.f32 1.0, %v6007_v48  ;;  %v8224_v48 = vld [vmem:[#allocation31_spill] sm:$0xff] }
 0x893   : > { %6008 = vrcp.f32 %v3629_v45  ;;  %3685 = vmatmul.mubr.bf16.vlgmr.msra.gmra.mrb[40].mxu0 %v3651_v58  ;;  %5326 = vmatmul.mubr.bf16.vlgmr.msra.gmra.mrb[40].mxu1 %v3651_v58  ;;  %v8222_v45 = vld [vmem:[#allocation26_spill] sm:$0xff]  ;;  %v8223_v58 = vld [vmem:[#allocation27_spill] sm:$0xff] }
 0x894   : > { %3735 = vmatpush1.bf16.msra.mxu0 %v7675_v1  ;;  %5330 = vmatpush3.bf16.msra.mxu1 %v7679_v5  ;;  %6010 = vrcp.f32 %v3636_v35  ;;  %v8225_v35 = vld [vmem:[#allocation29_spill] sm:$0xff] }
 0x895   : > { %3736 = vmatprep.subr.bf16.mxu0 %v7683_v4  ;;  %5331 = vmatprep.subr.bf16.mxu1 %v8187_v54 }
 0x896   : > { %3766 = vmatprep.mubr.bf16.mxu0 %v8188_v61  ;;  %5345 = vmatprep.mubr.msk.bf16.mxu1 %vm6394_vm0, %v8187_v54 }
 0x898   : > { %3737 = vmatpush1.bf16.msra.mxu0 %v7691_v36  ;;  %5332 = vmatpush3.bf16.msra.mxu1 %v7695_v3 }
 0x899   : > { %3738 = vmatprep.subr.bf16.mxu0 %v7699_v2  ;;  %5333 = vmatprep.subr.bf16.mxu1 %v8187_v54 }
 0x89c   : > { %3739 = vmatpush1.bf16.msra.mxu0 %v7705_v47  ;;  %5334 = vmatpush3.bf16.msra.mxu1 %v7709_v10 }
 0x89d   : > { %v6009_v32 = vpop.eup %6008  ;;  %3740 = vmatprep.subr.bf16.mxu0 %v7713_v38  ;;  %5335 = vmatprep.subr.bf16.mxu1 %v8187_v54 }
 0x89e   : > { %v3640_v12 = vmul.f32 %v6009_v32, %v3639_v49  ;;  %v6011_v40 = vpop.eup %6010  ;;  %v3815_v49 = vld [vmem:[#allocation4 + $0xf0] sm:$0xff] }
 0x89f   : > { %v3643_v46 = vsub.f32 1.0, %v6011_v40  ;;  %v3645_v43 = vmul.f32 %v6011_v40, %v7770_v59  ;;  %v8217_v59 = vld [vmem:[#allocation23_spill] sm:$0xff] }
 0x8a0   : > { %v3641_v44 = vadd.f32 %v3640_v12, %v3624_v6  ;;  %3741 = vmatpush1.bf16.msra.mxu0 %v7718_v17  ;;  %5336 = vmatpush3.bf16.msra.mxu1 %v7722_v14  ;;  %v3816_v40 = vld [vmem:[#allocation4 + $0xf8] sm:$0xff] }
 0x8a1   : > { %3742 = vmatprep.subr.bf16.mxu0 %v7726_v15  ;;  %5337 = vmatprep.subr.bf16.mxu1 %v8187_v54 }
 0x8a2   : > { %6012 = vtanh.f32 %v3641_v44 }
 0x8a4   : > { %3743 = vmatpush1.bf16.msra.mxu0 %v7731_v63  ;;  %5338 = vmatpush3.bf16.msra.mxu1 %v7735_v16 }
 0x8a5   : > { %3744 = vmatprep.subr.bf16.mxu0 %v7739_v18  ;;  %5339 = vmatprep.subr.bf16.mxu1 %v8187_v54 }
 0x8a8   : > { %3745 = vmatpush1.bf16.msra.mxu0 %v7744_v41  ;;  %5340 = vmatpush3.bf16.msra.mxu1 %v7748_v42 }
 0x8a9   : > { %3746 = vmatprep.subr.bf16.mxu0 %v7752_v51  ;;  %5341 = vmatprep.subr.bf16.mxu1 %v8187_v54 }
 0x8ac   : > { %v6013_v56 = vpop.eup %6012  ;;  %3747 = vmatpush1.bf16.msra.mxu0 %v7757_v52  ;;  %5342 = vmatpush3.bf16.msra.mxu1 %v7761_v53 }
 0x8ad   : > { %3748 = vmatprep.subr.bf16.mxu0 %v7765_v55  ;;  %5343 = vmatprep.subr.bf16.mxu1 %v8187_v54  ;;  %v3644_v13 = vmul.f32 %v6013_v56, %v3643_v46 }
 0x8af   : > { %v7866_v62 = vadd.f32 %v3645_v43, %v3644_v13 }
 0x8b0   : > { %3749 = vmatpush1.bf16.msra.mxu0 %v7773_v0  ;;  %5344 = vmatpush3.bf16.msra.mxu1 %v7777_v7 }
 0x8b1   : > { %3650 = vst [vmem:[#allocation3 + $0x18] sm:$0xff] %v7866_v62  ;;  %v3733_v19 = vpack.c.bf16 %v7866_v62, %v7866_v62  ;;  %3870 = vmatprep.subr.bf16.mxu0 %v7556_v20  ;;  %5349 = vmatprep.subr.bf16.mxu1 %v8187_v54 }
 0x8b3   : > { %3767 = vmatmul.mubr.bf16.vlgmr.msra.gmra.mrb[44].mxu0 %v3733_v19  ;;  %5346 = vmatmul.mubr.bf16.vlgmr.msra.gmra.mrb[44].mxu1 %v3733_v19 }
 0x8b4   : > { %3871 = vmatpush1.bf16.msra.mxu0 %v7561_v21  ;;  %5350 = vmatpush3.bf16.msra.mxu1 %v7565_v22 }
 0x8b5   : > { %3872 = vmatprep.subr.bf16.mxu0 %v7569_v23  ;;  %5351 = vmatprep.subr.bf16.mxu1 %v8187_v54 }
 0x8b6   : > { %3902 = vmatprep.mubr.bf16.mxu0 %v8188_v61  ;;  %5365 = vmatprep.mubr.msk.bf16.mxu1 %vm6394_vm0, %v8187_v54 }
 0x8b8   : > { %3873 = vmatpush1.bf16.msra.mxu0 %v7577_v24  ;;  %5352 = vmatpush3.bf16.msra.mxu1 %v7581_v25 }
 0x8b9   : > { %3874 = vmatprep.subr.bf16.mxu0 %v7585_v26  ;;  %5353 = vmatprep.subr.bf16.mxu1 %v8187_v54 }
 0x8bc   : > { %3875 = vmatpush1.bf16.msra.mxu0 %v7590_v27  ;;  %5354 = vmatpush3.bf16.msra.mxu1 %v7594_v28 }
 0x8bd   : > { %3876 = vmatprep.subr.bf16.mxu0 %v7598_v29  ;;  %5355 = vmatprep.subr.bf16.mxu1 %v8187_v54 }
 0x8c0   : > { %3877 = vmatpush1.bf16.msra.mxu0 %v7603_v30  ;;  %5356 = vmatpush3.bf16.msra.mxu1 %v7607_v33 }
 0x8c1   : > { %3878 = vmatprep.subr.bf16.mxu0 %v7611_v60  ;;  %5357 = vmatprep.subr.bf16.mxu1 %v8187_v54 }
 0x8c4   : > { %3879 = vmatpush1.bf16.msra.mxu0 %v7616_v9  ;;  %5358 = vmatpush3.bf16.msra.mxu1 %v7620_v34 }
 0x8c5   : > { %3880 = vmatprep.subr.bf16.mxu0 %v7624_v37  ;;  %5359 = vmatprep.subr.bf16.mxu1 %v8187_v54 }
 0x8c8   : > { %3881 = vmatpush1.bf16.msra.mxu0 %v8217_v59  ;;  %5360 = vmatpush3.bf16.msra.mxu1 %v8218_v31  ;;  %v8226_v31 = vld [vmem:[#allocation32_spill] sm:$0xff] }
 0x8c9   : > { %3882 = vmatprep.subr.bf16.mxu0 %v8219_v50  ;;  %5361 = vmatprep.subr.bf16.mxu1 %v8187_v54 }
 0x8cc   : > { %3883 = vmatpush1.bf16.msra.mxu0 %v8220_v57  ;;  %5362 = vmatpush3.bf16.msra.mxu1 %v8221_v11 }
 0x8cd   : > { %3884 = vmatprep.subr.bf16.mxu0 %v8222_v45  ;;  %5363 = vmatprep.subr.bf16.mxu1 %v8187_v54 }
 0x8d0   : > { %3885 = vmatpush1.bf16.msra.mxu0 %v8223_v58  ;;  %5364 = vmatpush3.bf16.msra.mxu1 %v8224_v48 }
 0x8d1   : > { %3952 = vmatprep.subr.bf16.mxu0 %v8225_v35  ;;  %5369 = vmatprep.subr.bf16.mxu1 %v8187_v54 }
 0x966   : > { %v3686_v32 = vpop.f32.mrb[40].mxu0  ;;  %v3727_v6 = vpop.f32.mrb[40].mxu1 }
 0x967   : > { %v3818_v12 = vadd.f32 %v3815_v49, %v3686_v32  ;;  %v3688_v44 = vpop.f32.mrb[41].mxu0  ;;  %v5327_v46 = vpop.f32.mrb[41].mxu1  ;;  %v3832_v59 = vadd.f32 %v8226_v31, %v3727_v6  ;;  %v3817_v32 = vld [vmem:[#allocation4 + $0x100] sm:$0xff] }
 0x968   : > { %v3690_v56 = vpop.f32.mrb[42].mxu0  ;;  %v3730_v13 = vpop.f32.mrb[42].mxu1  ;;  %v3825_v11 = vadd.f32 %v3816_v40, %v3688_v44  ;;  %v3840_v46 = vld [vmem:[#allocation4 + $0x78] sm:$0xff] }
 0x969   : > { %v4928_v43 = vmul.f32 -1.442695, %v3818_v12  ;;  %v3691_v19 = vpop.f32.mrb[43].mxu0  ;;  %v5328_v45 = vpop.f32.mrb[43].mxu1 }
 0x96a   : > { %v4929_v58 = vmul.f32 -1.442695, %v3825_v11  ;;  %v3841_v11 = vld [vmem:[#allocation4 + $0x80] sm:$0xff] }
 0x96b   : > { %6014 = vpow2.f32 %v4928_v43 }
 0x96c   : > { %6016 = vpow2.f32 %v4929_v58 }
 0x975   : > { %v6015_v48 = vpop.eup %6014 }
 0x976   : > { %v3822_v35 = vadd.f32 1.0, %v6015_v48  ;;  %v6017_v57 = vpop.eup %6016 }
 0x977   : > { %v3829_v50 = vadd.f32 1.0, %v6017_v57 }
 0x978   : > { %6018 = vrcp.f32 %v3822_v35 }
 0x979   : > { %6020 = vrcp.f32 %v3829_v50 }
 0x982   : > { %v6019_v49 = vpop.eup %6018 }
 0x983   : > { %v3833_v37 = vmul.f32 %v6019_v49, %v3832_v59  ;;  %v6021_v6 = vpop.eup %6020 }
 0x984   : > { %v3836_v59 = vsub.f32 1.0, %v6021_v6  ;;  %v3838_v49 = vmul.f32 %v6021_v6, %v7825_v39 }
 0x985   : > { %v3834_v56 = vadd.f32 %v3833_v37, %v3817_v32 }
 0x986   : > { %v3768_v12 = vpop.f32.mrb[44].mxu0  ;;  %v3809_v13 = vpop.f32.mrb[44].mxu1 }
 0x987   : > { %6022 = vtanh.f32 %v3834_v56  ;;  %v3843_v45 = vadd.f32 %v3840_v46, %v3768_v12  ;;  %v3770_v44 = vpop.f32.mrb[45].mxu0  ;;  %v5347_v58 = vpop.f32.mrb[45].mxu1 }
 0x988   : > { %v3772_v40 = vpop.f32.mrb[46].mxu0  ;;  %v3812_v48 = vpop.f32.mrb[46].mxu1  ;;  %v3850_v19 = vadd.f32 %v3841_v11, %v3770_v44  ;;  %v3842_v11 = vld [vmem:[#allocation4 + $0x88] sm:$0xff] }
 0x989   : > { %v4930_v35 = vmul.f32 -1.442695, %v3843_v45  ;;  %v3773_v43 = vpop.f32.mrb[47].mxu0  ;;  %v5348_v57 = vpop.f32.mrb[47].mxu1  ;;  %v3857_v45 = vadd.f32 %v7842_v8, %v3809_v13 }
 0x98a   : > { %v4931_v31 = vmul.f32 -1.442695, %v3850_v19 }
 0x98b   : > { %6024 = vpow2.f32 %v4930_v35 }
 0x98c   : > { %6026 = vpow2.f32 %v4931_v31 }
 0x991   : > { %v6023_v50 = vpop.eup %6022 }
 0x992   : > { %v3837_v37 = vmul.f32 %v6023_v50, %v3836_v59 }
 0x994   : > { %v7912_v32 = vadd.f32 %v3838_v49, %v3837_v37 }
 0x995   : > { %v6025_v46 = vpop.eup %6024 }
 0x996   : > { %v3847_v56 = vadd.f32 1.0, %v6025_v46  ;;  %3866 = vst [vmem:[#allocation2 + $0x28] sm:$0xff] %v7912_v32  ;;  %v3869_v12 = vpack.c.bf16 %v7912_v32, %v7912_v32  ;;  %v6027_v39 = vpop.eup %6026 }
 0x997   : > { %v3854_v31 = vadd.f32 1.0, %v6027_v39 }
 0x998   : > { %6028 = vrcp.f32 %v3847_v56  ;;  %3903 = vmatmul.mubr.bf16.vlgmr.msra.gmra.mrb[48].mxu0 %v3869_v12  ;;  %5366 = vmatmul.mubr.bf16.vlgmr.msra.gmra.mrb[48].mxu1 %v3869_v12 }
 0x999   : > { %3953 = vmatpush1.bf16.msra.mxu0 %v7675_v1  ;;  %5370 = vmatpush3.bf16.msra.mxu1 %v7679_v5  ;;  %6030 = vrcp.f32 %v3854_v31 }
 0x99a   : > { %3954 = vmatprep.subr.bf16.mxu0 %v7683_v4  ;;  %5371 = vmatprep.subr.bf16.mxu1 %v8187_v54 }
 0x99b   : > { %3984 = vmatprep.mubr.bf16.mxu0 %v8188_v61  ;;  %5385 = vmatprep.mubr.msk.bf16.mxu1 %vm6394_vm0, %v8187_v54 }
 0x99d   : > { %3955 = vmatpush1.bf16.msra.mxu0 %v7691_v36  ;;  %5372 = vmatpush3.bf16.msra.mxu1 %v7695_v3 }
 0x99e   : > { %3956 = vmatprep.subr.bf16.mxu0 %v7699_v2  ;;  %5373 = vmatprep.subr.bf16.mxu1 %v8187_v54 }
 0x9a1   : > { %3957 = vmatpush1.bf16.msra.mxu0 %v7705_v47  ;;  %5374 = vmatpush3.bf16.msra.mxu1 %v7709_v10 }
 0x9a2   : > { %v6029_v44 = vpop.eup %6028  ;;  %3958 = vmatprep.subr.bf16.mxu0 %v7713_v38  ;;  %5375 = vmatprep.subr.bf16.mxu1 %v8187_v54 }
 0x9a3   : > { %v3858_v58 = vmul.f32 %v6029_v44, %v3857_v45  ;;  %v6031_v13 = vpop.eup %6030 }
 0x9a4   : > { %v3861_v48 = vsub.f32 1.0, %v6031_v13  ;;  %v3863_v57 = vmul.f32 %v6031_v13, %v7866_v62  ;;  %v4034_v62 = vld [vmem:[#allocation4 + $0x128] sm:$0xff] }
 0x9a5   : > { %v3859_v40 = vadd.f32 %v3858_v58, %v3842_v11  ;;  %3959 = vmatpush1.bf16.msra.mxu0 %v7718_v17  ;;  %5376 = vmatpush3.bf16.msra.mxu1 %v7722_v14  ;;  %v8237_v58 = vld [vmem:[#allocation32_spill] sm:$0xff] }
 0x9a6   : > { %3960 = vmatprep.subr.bf16.mxu0 %v7726_v15  ;;  %5377 = vmatprep.subr.bf16.mxu1 %v8187_v54 }
 0x9a7   : > { %6032 = vtanh.f32 %v3859_v40 }
 0x9a9   : > { %3961 = vmatpush1.bf16.msra.mxu0 %v7731_v63  ;;  %5378 = vmatpush3.bf16.msra.mxu1 %v7735_v16 }
 0x9aa   : > { %3962 = vmatprep.subr.bf16.mxu0 %v7739_v18  ;;  %5379 = vmatprep.subr.bf16.mxu1 %v8187_v54 }
 0x9ad   : > { %3963 = vmatpush1.bf16.msra.mxu0 %v7744_v41  ;;  %5380 = vmatpush3.bf16.msra.mxu1 %v7748_v42 }
 0x9ae   : > { %3964 = vmatprep.subr.bf16.mxu0 %v7752_v51  ;;  %5381 = vmatprep.subr.bf16.mxu1 %v8187_v54 }
 0x9b1   : > { %v6033_v35 = vpop.eup %6032  ;;  %3965 = vmatpush1.bf16.msra.mxu0 %v7757_v52  ;;  %5382 = vmatpush3.bf16.msra.mxu1 %v7761_v53 }
 0x9b2   : > { %3966 = vmatprep.subr.bf16.mxu0 %v7765_v55  ;;  %5383 = vmatprep.subr.bf16.mxu1 %v8187_v54  ;;  %v3862_v43 = vmul.f32 %v6033_v35, %v3861_v48  ;;  %v4035_v48 = vld [vmem:[#allocation4 + $0x130] sm:$0xff] }
 0x9b4   : > { %v7950_v19 = vadd.f32 %v3863_v57, %v3862_v43  ;;  %v4058_v43 = vld [vmem:[#allocation4 + $0x48] sm:$0xff] }
 0x9b5   : > { %3967 = vmatpush1.bf16.msra.mxu0 %v7773_v0  ;;  %5384 = vmatpush3.bf16.msra.mxu1 %v7777_v7 }
 0x9b6   : > { %3868 = vst [vmem:[#allocation3 + $0x10] sm:$0xff] %v7950_v19  ;;  %v3951_v6 = vpack.c.bf16 %v7950_v19, %v7950_v19  ;;  %4088 = vmatprep.subr.bf16.mxu0 %v7556_v20  ;;  %5389 = vmatprep.subr.bf16.mxu1 %v8187_v54  ;;  %v8227_v20 = vld [vmem:[#allocation22_spill] sm:$0xff] }
 0x9b8   : > { %3985 = vmatmul.mubr.bf16.vlgmr.msra.gmra.mrb[52].mxu0 %v3951_v6  ;;  %5386 = vmatmul.mubr.bf16.vlgmr.msra.gmra.mrb[52].mxu1 %v3951_v6 }
 0x9b9   : > { %4089 = vmatpush1.bf16.msra.mxu0 %v7561_v21  ;;  %5390 = vmatpush3.bf16.msra.mxu1 %v7565_v22  ;;  %v8228_v21 = vld [vmem:[#allocation23_spill] sm:$0xff]  ;;  %v8229_v22 = vld [vmem:[#allocation28_spill] sm:$0xff] }
 0x9ba   : > { %4090 = vmatprep.subr.bf16.mxu0 %v7569_v23  ;;  %5391 = vmatprep.subr.bf16.mxu1 %v8187_v54  ;;  %v8230_v23 = vld [vmem:[#allocation24_spill] sm:$0xff] }
 0x9bb   : > { %4120 = vmatprep.mubr.bf16.mxu0 %v8188_v61  ;;  %5405 = vmatprep.mubr.msk.bf16.mxu1 %vm6394_vm0, %v8187_v54 }
 0x9bd   : > { %4091 = vmatpush1.bf16.msra.mxu0 %v7577_v24  ;;  %5392 = vmatpush3.bf16.msra.mxu1 %v7581_v25  ;;  %v8231_v24 = vld [vmem:[#allocation25_spill] sm:$0xff]  ;;  %v8232_v25 = vld [vmem:[#allocation30_spill] sm:$0xff] }
 0x9be   : > { %4092 = vmatprep.subr.bf16.mxu0 %v7585_v26  ;;  %5393 = vmatprep.subr.bf16.mxu1 %v8187_v54  ;;  %v8233_v26 = vld [vmem:[#allocation26_spill] sm:$0xff] }
 0x9c1   : > { %4093 = vmatpush1.bf16.msra.mxu0 %v7590_v27  ;;  %5394 = vmatpush3.bf16.msra.mxu1 %v7594_v28  ;;  %v8234_v27 = vld [vmem:[#allocation27_spill] sm:$0xff] }
 0x9c2   : > { %4094 = vmatprep.subr.bf16.mxu0 %v7598_v29  ;;  %5395 = vmatprep.subr.bf16.mxu1 %v8187_v54  ;;  %v8235_v28 = vld [vmem:[#allocation31_spill] sm:$0xff]  ;;  %v8236_v29 = vld [vmem:[#allocation29_spill] sm:$0xff] }
 0x9c5   : > { %4095 = vmatpush1.bf16.msra.mxu0 %v7603_v30  ;;  %5396 = vmatpush3.bf16.msra.mxu1 %v7607_v33  ;;  %v4033_v30 = vld [vmem:[#allocation4 + $0x120] sm:$0xff] }
 0x9c6   : > { %4096 = vmatprep.subr.bf16.mxu0 %v7611_v60  ;;  %5397 = vmatprep.subr.bf16.mxu1 %v8187_v54 }
 0x9c9   : > { %4097 = vmatpush1.bf16.msra.mxu0 %v7616_v9  ;;  %5398 = vmatpush3.bf16.msra.mxu1 %v7620_v34 }
 0x9ca   : > { %4098 = vmatprep.subr.bf16.mxu0 %v8227_v20  ;;  %5399 = vmatprep.subr.bf16.mxu1 %v8187_v54 }
 0x9cd   : > { %4099 = vmatpush1.bf16.msra.mxu0 %v8228_v21  ;;  %5400 = vmatpush3.bf16.msra.mxu1 %v8229_v22 }
 0x9ce   : > { %4100 = vmatprep.subr.bf16.mxu0 %v8230_v23  ;;  %5401 = vmatprep.subr.bf16.mxu1 %v8187_v54  ;;  %v4059_v23 = vld [vmem:[#allocation4 + $0x50] sm:$0xff] }
 0x9d1   : > { %4101 = vmatpush1.bf16.msra.mxu0 %v8231_v24  ;;  %5402 = vmatpush3.bf16.msra.mxu1 %v8232_v25 }
 0x9d2   : > { %4102 = vmatprep.subr.bf16.mxu0 %v8233_v26  ;;  %5403 = vmatprep.subr.bf16.mxu1 %v8187_v54 }
 0x9d5   : > { %4103 = vmatpush1.bf16.msra.mxu0 %v8234_v27  ;;  %5404 = vmatpush3.bf16.msra.mxu1 %v8235_v28 }
 0x9d6   : > { %4170 = vmatprep.subr.bf16.mxu0 %v8236_v29  ;;  %5409 = vmatprep.subr.bf16.mxu1 %v8187_v54 }
 0xa6b   : > { %v3904_v33 = vpop.f32.mrb[48].mxu0  ;;  %v3945_v60 = vpop.f32.mrb[48].mxu1 }
 0xa6c   : > { %v4036_v9 = vadd.f32 %v4033_v30, %v3904_v33  ;;  %v3906_v34 = vpop.f32.mrb[49].mxu0  ;;  %v5367_v59 = vpop.f32.mrb[49].mxu1  ;;  %v4050_v40 = vadd.f32 %v8237_v58, %v3945_v60 }
 0xa6d   : > { %v3908_v50 = vpop.f32.mrb[50].mxu0  ;;  %v3948_v37 = vpop.f32.mrb[50].mxu1  ;;  %v4043_v12 = vadd.f32 %v4034_v62, %v3906_v34 }
 0xa6e   : > { %v4932_v49 = vmul.f32 -1.442695, %v4036_v9  ;;  %v3909_v46 = vpop.f32.mrb[51].mxu0  ;;  %v5368_v56 = vpop.f32.mrb[51].mxu1 }
 0xa6f   : > { %v4933_v39 = vmul.f32 -1.442695, %v4043_v12 }
 0xa70   : > { %6034 = vpow2.f32 %v4932_v49 }
 0xa71   : > { %6036 = vpow2.f32 %v4933_v39 }
 0xa7a   : > { %v6035_v31 = vpop.eup %6034 }
 0xa7b   : > { %v4040_v45 = vadd.f32 1.0, %v6035_v31  ;;  %v6037_v44 = vpop.eup %6036 }
 0xa7c   : > { %v4047_v11 = vadd.f32 1.0, %v6037_v44 }
 0xa7d   : > { %6038 = vrcp.f32 %v4040_v45 }
 0xa7e   : > { %6040 = vrcp.f32 %v4047_v11 }
 0xa87   : > { %v6039_v13 = vpop.eup %6038 }
 0xa88   : > { %v4051_v35 = vmul.f32 %v6039_v13, %v4050_v40  ;;  %v6041_v33 = vpop.eup %6040  ;;  %v4253_v40 = vld [vmem:[#allocation4 + $0x160] sm:$0xff] }
 0xa89   : > { %v4054_v9 = vsub.f32 1.0, %v6041_v33  ;;  %v4056_v59 = vmul.f32 %v6041_v33, %v7912_v32 }
 0xa8a   : > { %v4052_v57 = vadd.f32 %v4051_v35, %v4035_v48  ;;  %v4276_v48 = vld [vmem:[#allocation4 + $0x18] sm:$0xff] }
 0xa8b   : > { %v3986_v6 = vpop.f32.mrb[52].mxu0  ;;  %v4027_v20 = vpop.f32.mrb[52].mxu1 }
 0xa8c   : > { %6042 = vtanh.f32 %v4052_v57  ;;  %v4061_v21 = vadd.f32 %v4058_v43, %v3986_v6  ;;  %v3988_v22 = vpop.f32.mrb[53].mxu0  ;;  %v5387_v24 = vpop.f32.mrb[53].mxu1 }
 0xa8d   : > { %v3990_v25 = vpop.f32.mrb[54].mxu0  ;;  %v4030_v26 = vpop.f32.mrb[54].mxu1  ;;  %v4068_v30 = vadd.f32 %v4059_v23, %v3988_v22 }
 0xa8e   : > { %v4934_v27 = vmul.f32 -1.442695, %v4061_v21  ;;  %v3991_v28 = vpop.f32.mrb[55].mxu0  ;;  %v5388_v29 = vpop.f32.mrb[55].mxu1  ;;  %v4277_v21 = vld [vmem:[#allocation4 + $0x20] sm:$0xff] }
 0xa8f   : > { %v4935_v60 = vmul.f32 -1.442695, %v4068_v30 }
 0xa90   : > { %6044 = vpow2.f32 %v4934_v27 }
 0xa91   : > { %6046 = vpow2.f32 %v4935_v60 }
 0xa96   : > { %v6043_v34 = vpop.eup %6042 }
 0xa97   : > { %v4055_v62 = vmul.f32 %v6043_v34, %v4054_v9 }
 0xa99   : > { %v7996_v50 = vadd.f32 %v4056_v59, %v4055_v62 }
 0xa9a   : > { %v6045_v37 = vpop.eup %6044 }
 0xa9b   : > { %v4065_v49 = vadd.f32 1.0, %v6045_v37  ;;  %4084 = vst [vmem:[#allocation2 + $0x30] sm:$0xff] %v7996_v50  ;;  %v4087_v46 = vpack.c.bf16 %v7996_v50, %v7996_v50  ;;  %v6047_v32 = vpop.eup %6046 }
 0xa9d   : > { %6048 = vrcp.f32 %v4065_v49  ;;  %4121 = vmatmul.mubr.bf16.vlgmr.msra.gmra.mrb[56].mxu0 %v4087_v46  ;;  %5406 = vmatmul.mubr.bf16.vlgmr.msra.gmra.mrb[56].mxu1 %v4087_v46 }
 0xa9e   : > { %4171 = vmatpush1.bf16.msra.mxu0 %v7675_v1  ;;  %5410 = vmatpush3.bf16.msra.mxu1 %v7679_v5  ;;  %v4072_v1 = vadd.f32 1.0, %v6047_v32  ;;  %v4075_v5 = vadd.f32 %v7842_v8, %v4027_v20 }
 0xa9f   : > { %4172 = vmatprep.subr.bf16.mxu0 %v7683_v4  ;;  %5411 = vmatprep.subr.bf16.mxu1 %v8187_v54  ;;  %v4060_v4 = vld [vmem:[#allocation4 + $0x58] sm:$0xff] }
 0xaa0   : > { %4202 = vmatprep.mubr.bf16.mxu0 %v8188_v61  ;;  %5425 = vmatprep.mubr.msk.bf16.mxu1 %vm6394_vm0, %v8187_v54  ;;  %6050 = vrcp.f32 %v4072_v1  ;;  %v4278_v1 = vld [vmem:[#allocation4 + $0x28] sm:$0xff] }
 0xaa2   : > { %4173 = vmatpush1.bf16.msra.mxu0 %v7691_v36  ;;  %5412 = vmatpush3.bf16.msra.mxu1 %v7695_v3 }
 0xaa3   : > { %4174 = vmatprep.subr.bf16.mxu0 %v7699_v2  ;;  %5413 = vmatprep.subr.bf16.mxu1 %v8187_v54 }
 0xaa6   : > { %4175 = vmatpush1.bf16.msra.mxu0 %v7705_v47  ;;  %5414 = vmatpush3.bf16.msra.mxu1 %v7709_v10 }
 0xaa7   : > { %v6049_v61 = vpop.eup %6048  ;;  %4176 = vmatprep.subr.bf16.mxu0 %v7713_v38  ;;  %5415 = vmatprep.subr.bf16.mxu1 %v8187_v54 }
 0xaa8   : > { %v4076_v36 = vmul.f32 %v6049_v61, %v4075_v5 }
 0xaaa   : > { %v4077_v3 = vadd.f32 %v4076_v36, %v4060_v4  ;;  %4177 = vmatpush1.bf16.msra.mxu0 %v7718_v17  ;;  %5416 = vmatpush3.bf16.msra.mxu1 %v7722_v14  ;;  %v6051_v2 = vpop.eup %6050 }
 0xaab   : > { %4178 = vmatprep.subr.bf16.mxu0 %v7726_v15  ;;  %5417 = vmatprep.subr.bf16.mxu1 %v8187_v54  ;;  %v4079_v47 = vsub.f32 1.0, %v6051_v2  ;;  %v4081_v17 = vmul.f32 %v6051_v2, %v7950_v19 }
 0xaac   : > { %6052 = vtanh.f32 %v4077_v3 }
 0xaae   : > { %4179 = vmatpush1.bf16.msra.mxu0 %v7731_v63  ;;  %5418 = vmatpush3.bf16.msra.mxu1 %v7735_v16  ;;  %v4251_v63 = vld [vmem:[#allocation4 + $0x150] sm:$0xff] }
 0xaaf   : > { %4180 = vmatprep.subr.bf16.mxu0 %v7739_v18  ;;  %5419 = vmatprep.subr.bf16.mxu1 %v8187_v54 }
 0xab2   : > { %4181 = vmatpush1.bf16.msra.mxu0 %v7744_v41  ;;  %5420 = vmatpush3.bf16.msra.mxu1 %v7748_v42  ;;  %v4252_v42 = vld [vmem:[#allocation4 + $0x158] sm:$0xff] }
 0xab3   : > { %4182 = vmatprep.subr.bf16.mxu0 %v7752_v51  ;;  %5421 = vmatprep.subr.bf16.mxu1 %v8187_v54 }
 0xab6   : > { %v6053_v10 = vpop.eup %6052  ;;  %4183 = vmatpush1.bf16.msra.mxu0 %v7757_v52  ;;  %5422 = vmatpush3.bf16.msra.mxu1 %v7761_v53 }
 0xab7   : > { %4184 = vmatprep.subr.bf16.mxu0 %v7765_v55  ;;  %5423 = vmatprep.subr.bf16.mxu1 %v8187_v54  ;;  %v4080_v38 = vmul.f32 %v6053_v10, %v4079_v47  ;;  %v6124_v10 = vld [vmem:[#allocation12] sm:$0xff] (!%p4940_p7)  }
 0xab9   : > { %v8034_v14 = vadd.f32 %v4081_v17, %v4080_v38  ;;  %v6125_v38 = vld [vmem:[#allocation12 + $0x8] sm:$0xff] (!%p4940_p7)   ;;  %v6127_v17 = vld [vmem:[#allocation12 + $0x18] sm:$0xff] (!%p4940_p7)  }
 0xaba   : > { %4185 = vmatpush1.bf16.msra.mxu0 %v7773_v0  ;;  %5424 = vmatpush3.bf16.msra.mxu1 %v7777_v7 }
 0xabb   : > { %4086 = vst [vmem:[#allocation3 + $0x8] sm:$0xff] %v8034_v14  ;;  %v4169_v15 = vpack.c.bf16 %v8034_v14, %v8034_v14  ;;  %5429 = vmatprep.subr.bf16.mxu0 (!%p4940_p7), %v6124_v10  ;;  %5517 = vmatprep.subr.bf16.mxu1 (!%p4940_p7), %v6124_v10 }
 0xabd   : > { %4203 = vmatmul.mubr.bf16.vlgmr.msra.gmra.mrb[60].mxu0 %v4169_v15  ;;  %5426 = vmatmul.mubr.bf16.vlgmr.msra.gmra.mrb[60].mxu1 %v4169_v15  ;;  %v4309_v15 = vld [vmem:[#allocation2 + $0x8] sm:$0xff] (!%p4940_p7) }
 0xabe   : > { %5430 = vmatpush3.bf16.msra.mxu0 (!%p4940_p7), %v6124_v10  ;;  %5525 = vmatpush3.bf16.msra.mxu1 (!%p4940_p7), %v6124_v10 }
 0xabf   : > { %5431 = vmatprep.subr.bf16.mxu0 (!%p4940_p7), %v6125_v38  ;;  %5518 = vmatprep.subr.bf16.mxu1 (!%p4940_p7), %v6125_v38 }
 0xac2   : > { %5432 = vmatpush3.bf16.msra.mxu0 (!%p4940_p7), %v6125_v38  ;;  %5526 = vmatpush3.bf16.msra.mxu1 (!%p4940_p7), %v6125_v38 }
 0xb70   : > { %v4122_v16 = vpop.f32.mrb[56].mxu0  ;;  %v4163_v18 = vpop.f32.mrb[56].mxu1 }
 0xb71   : > { %v4254_v54 = vadd.f32 %v4251_v63, %v4122_v16  ;;  %v4124_v41 = vpop.f32.mrb[57].mxu0  ;;  %v5407_v51 = vpop.f32.mrb[57].mxu1  ;;  %v4268_v44 = vadd.f32 %v8237_v58, %v4163_v18  ;;  %v4317_v16 = vld [vmem:[#allocation3 + $0x8] sm:$0xff] (!%p4940_p7) }
 0xb72   : > { %v4126_v52 = vpop.f32.mrb[58].mxu0  ;;  %v4166_v53 = vpop.f32.mrb[58].mxu1  ;;  %v4261_v7 = vadd.f32 %v4252_v42, %v4124_v41  ;;  %v4313_v41 = vld [vmem:[#allocation2 + $0x28] sm:$0xff] (!%p4940_p7)  ;;  %v4325_v42 = vadd.f32 (!%p4940_p7), %v4317_v16, %v4309_v15  ;;  %v4320_v51 = vld [vmem:[#allocation3 + $0x20] sm:$0xff] (!%p4940_p7) }
 0xb73   : > { %v4936_v55 = vmul.f32 -1.442695, %v4254_v54  ;;  %v4127_v0 = vpop.f32.mrb[59].mxu0  ;;  %v5408_v19 = vpop.f32.mrb[59].mxu1  ;;  %v4312_v54 = vld [vmem:[#allocation2 + $0x20] sm:$0xff] (!%p4940_p7)  ;;  %v4321_v52 = vld [vmem:[#allocation3 + $0x28] sm:$0xff] (!%p4940_p7) }
 0xb74   : > { %v4937_v56 = vmul.f32 -1.442695, %v4261_v7  ;;  %v4328_v53 = vadd.f32 (!%p4940_p7), %v4320_v51, %v4312_v54  ;;  %v6128_v0 = vld [vmem:[#allocation12 + $0x20] sm:$0xff] (!%p4940_p7)  }
 0xb75   : > { %6054 = vpow2.f32 %v4936_v55  ;;  %v4329_v55 = vadd.f32 (!%p4940_p7), %v4321_v52, %v4313_v41 }
 0xb76   : > { %6056 = vpow2.f32 %v4937_v56  ;;  %v6129_v56 = vld [vmem:[#allocation12 + $0x28] sm:$0xff] (!%p4940_p7)  }
 0xb77   : > { %v4334_v7 = vpack.c.bf16 (!%p4940_p7), %v4329_v55, %v4328_v53 }
 0xb79   : > { %5449 = vmatprep.mubr.bf16.mxu1 (!%p4940_p7), %v4334_v7 }
 0xb7f   : > { %v6055_v12 = vpop.eup %6054 }
 0xb80   : > { %v4258_v39 = vadd.f32 1.0, %v6055_v12  ;;  %v6057_v31 = vpop.eup %6056  ;;  %v6130_v12 = vld [vmem:[#allocation12 + $0x30] sm:$0xff] (!%p4940_p7)  }
 0xb81   : > { %v4265_v45 = vadd.f32 1.0, %v6057_v31  ;;  %v4311_v31 = vld [vmem:[#allocation2 + $0x18] sm:$0xff] (!%p4940_p7) }
 0xb82   : > { %6058 = vrcp.f32 %v4258_v39  ;;  %v4310_v39 = vld [vmem:[#allocation2 + $0x10] sm:$0xff] (!%p4940_p7) }
 0xb83   : > { %6060 = vrcp.f32 %v4265_v45  ;;  %v4318_v45 = vld [vmem:[#allocation3 + $0x10] sm:$0xff] (!%p4940_p7) }
 0xb8c   : > { %v6059_v11 = vpop.eup %6058 }
 0xb8d   : > { %v4269_v13 = vmul.f32 %v6059_v11, %v4268_v44  ;;  %v6061_v58 = vpop.eup %6060  ;;  %v4319_v44 = vld [vmem:[#allocation3 + $0x18] sm:$0xff] (!%p4940_p7)  ;;  %v4314_v11 = vld [vmem:[#allocation2 + $0x30] sm:$0xff] (!%p4940_p7) }
 0xb8e   : > { %v4272_v30 = vsub.f32 1.0, %v6061_v58  ;;  %v4274_v9 = vmul.f32 %v6061_v58, %v7996_v50 }
 0xb8f   : > { %v4270_v35 = vadd.f32 %v4269_v13, %v4253_v40  ;;  %v4322_v13 = vld [vmem:[#allocation3 + $0x30] sm:$0xff] (!%p4940_p7) }
 0xb90   : > { %v4204_v43 = vpop.f32.mrb[60].mxu0  ;;  %v4245_v57 = vpop.f32.mrb[60].mxu1 }
 0xb91   : > { %6062 = vtanh.f32 %v4270_v35  ;;  %v4279_v6 = vadd.f32 %v4276_v48, %v4204_v43  ;;  %v4206_v20 = vpop.f32.mrb[61].mxu0  ;;  %v5427_v22 = vpop.f32.mrb[61].mxu1  ;;  %v4293_v46 = vadd.f32 %v7842_v8, %v4245_v57  ;;  %v6126_v8 = vld [vmem:[#allocation12 + $0x10] sm:$0xff] (!%p4940_p7)   ;;  %v4323_v48 = vld [vmem:[#allocation3 + $0x38] sm:$0xff] (!%p4940_p7)  ;;  %v6131_v35 = vld [vmem:[#allocation12 + $0x38] sm:$0xff] (!%p4940_p7)   ;;  %v4326_v43 = vadd.f32 (!%p4940_p7), %v4318_v45, %v4310_v39 }
 0xb92   : > { %v4208_v23 = vpop.f32.mrb[62].mxu0  ;;  %v4248_v24 = vpop.f32.mrb[62].mxu1  ;;  %v4286_v28 = vadd.f32 %v4277_v21, %v4206_v20  ;;  %5433 = vmatprep.subr.bf16.mxu0 (!%p4940_p7), %v6126_v8  ;;  %5519 = vmatprep.subr.bf16.mxu1 (!%p4940_p7), %v6126_v8  ;;  %v4327_v57 = vadd.f32 (!%p4940_p7), %v4319_v44, %v4311_v31 }
 0xb93   : > { %v4938_v25 = vmul.f32 -1.442695, %v4279_v6  ;;  %v4209_v26 = vpop.f32.mrb[63].mxu0  ;;  %v5428_v27 = vpop.f32.mrb[63].mxu1  ;;  %5434 = vmatpush3.bf16.msra.mxu0 (!%p4940_p7), %v6126_v8  ;;  %5527 = vmatpush3.bf16.msra.mxu1 (!%p4940_p7), %v6126_v8  ;;  %v4330_v6 = vadd.f32 (!%p4940_p7), %v4322_v13, %v4314_v11  ;;  %v4941_v23 = vld [vmem:[#allocation13] ss:$0 sm:$0xff] (!%p4940_p7) }
 0xb94   : > { %v4939_v29 = vmul.f32 -1.442695, %v4286_v28  ;;  %5435 = vmatprep.subr.bf16.mxu0 (!%p4940_p7), %v6127_v17  ;;  %5520 = vmatprep.subr.bf16.mxu1 (!%p4940_p7), %v6127_v17  ;;  %v4333_v21 = vpack.c.bf16 (!%p4940_p7), %v4327_v57, %v4326_v43 }
 0xb95   : > { %6064 = vpow2.f32 %v4938_v25 }
 0xb96   : > { %6066 = vpow2.f32 %v4939_v29 }
 0xb97   : > { %5436 = vmatpush3.bf16.msra.mxu0 (!%p4940_p7), %v6127_v17  ;;  %5528 = vmatpush3.bf16.msra.mxu1 (!%p4940_p7), %v6127_v17 }
 0xb98   : > { %5437 = vmatprep.subr.bf16.mxu0 (!%p4940_p7), %v6128_v0  ;;  %5521 = vmatprep.subr.bf16.mxu1 (!%p4940_p7), %v6128_v0 }
 0xb9b   : > { %v6063_v33 = vpop.eup %6062  ;;  %5438 = vmatpush3.bf16.msra.mxu0 (!%p4940_p7), %v6128_v0  ;;  %5529 = vmatpush3.bf16.msra.mxu1 (!%p4940_p7), %v6128_v0 }
 0xb9c   : > { %v4273_v60 = vmul.f32 %v6063_v33, %v4272_v30  ;;  %5439 = vmatprep.subr.bf16.mxu0 (!%p4940_p7), %v6129_v56  ;;  %5522 = vmatprep.subr.bf16.mxu1 (!%p4940_p7), %v6129_v56 }
 0xb9e   : > { %v4275_v34 = vadd.f32 %v4274_v9, %v4273_v60 }
 0xb9f   : > { %v6065_v62 = vpop.eup %6064  ;;  %5440 = vmatpush3.bf16.msra.mxu0 (!%p4940_p7), %v6129_v56  ;;  %5530 = vmatpush3.bf16.msra.mxu1 (!%p4940_p7), %v6129_v56 }
 0xba0   : > { %4302 = vst [vmem:[#allocation2 + $0x38] sm:$0xff] %v4275_v34  ;;  %v4283_v59 = vadd.f32 1.0, %v6065_v62  ;;  %v6067_v37 = vpop.eup %6066  ;;  %5441 = vmatprep.subr.bf16.mxu0 (!%p4940_p7), %v6130_v12  ;;  %5523 = vmatprep.subr.bf16.mxu1 (!%p4940_p7), %v6130_v12 }
 0xba1   : > { %v4290_v49 = vadd.f32 1.0, %v6067_v37 }
 0xba2   : > { %6068 = vrcp.f32 %v4283_v59 }
 0xba3   : > { %6070 = vrcp.f32 %v4290_v49  ;;  %5442 = vmatpush3.bf16.msra.mxu0 (!%p4940_p7), %v6130_v12  ;;  %5531 = vmatpush3.bf16.msra.mxu1 (!%p4940_p7), %v6130_v12 }
 0xba4   : > { %5443 = vmatprep.subr.bf16.mxu0 (!%p4940_p7), %v6131_v35  ;;  %5524 = vmatprep.subr.bf16.mxu1 (!%p4940_p7), %v6131_v35 }
 0xba7   : > { %v4315_v40 = vld [vmem:[#allocation2 + $0x38] sm:$0xff] (!%p4940_p7)  ;;  %5444 = vmatpush3.bf16.msra.mxu0 (!%p4940_p7), %v6131_v35  ;;  %5532 = vmatpush3.bf16.msra.mxu1 (!%p4940_p7), %v6131_v35 }
 0xba8   : > { %v4331_v20 = vadd.f32 (!%p4940_p7), %v4323_v48, %v4315_v40 }
 0xbaa   : > { %v4335_v22 = vpack.c.bf16 (!%p4940_p7), %v4331_v20, %v4330_v6 }
 0xbac   : > { %v6069_v32 = vpop.eup %6068  ;;  %5450 = vmatmul.mubr.bf16.vlgmr.msra.gmra.mrb[0].mxu1 (!%p4940_p7), %v4335_v22 }
 0xbad   : > { %v4294_v5 = vmul.f32 %v6069_v32, %v4293_v46  ;;  %v6071_v4 = vpop.eup %6070 }
 0xbae   : > { %v4297_v36 = vsub.f32 1.0, %v6071_v4  ;;  %v4299_v2 = vmul.f32 %v6071_v4, %v8034_v14  ;;  %v4308_v14 = vld [vmem:[#allocation2] sm:$0xff] (!%p4940_p7) }
 0xbaf   : > { %v4295_v61 = vadd.f32 %v4294_v5, %v4278_v1 }
 0xbb1   : > { %6072 = vtanh.f32 %v4295_v61 }
 0xbba   : > { %4307 = sbr.rel (%p4940_p7) target bundleno = 3254 (0xcb6), region = 84 }
 0xbbb   : > { %v6073_v3 = vpop.eup %6072 }
 0xbbc   : > { %v4298_v50 = vmul.f32 %v6073_v3, %v4297_v36 }
 0xbbe   : > { %v4300_v47 = vadd.f32 %v4299_v2, %v4298_v50 }
 0xbc0   : > { %4303 = vst [vmem:[#allocation3] sm:$0xff] %v4300_v47 }
 0xbc7   : > { %v4316_v63 = vld [vmem:[#allocation3] sm:$0xff] }
 0xbc8   : > { %v4324_v18 = vadd.f32 %v4316_v63, %v4308_v14 }
 0xbca   : > { %v4332_v19 = vpack.c.bf16 %v4325_v42, %v4324_v18 }
 0xbcc   : > { %5445 = vmatprep.mubr.bf16.mxu0 %v4332_v19 }
 0xbcd   : > { %5446 = vmatmul.mubr.bf16.vlgmr.msra.gmra.mrb[0].mxu0 %v4333_v21 }
 0xc7f   : > { %v5451_v25 = vpop.f32.mrb[0].mxu1 }
 0xc80   : > { %v4466_v27 = vadd.f32 %v5451_v25, %v4941_v23  ;;  %v4457_v58 = vpop.f32.mrb[1].mxu1 }
 0xc81   : > { %v4458_v30 = vadd.f32 %v4941_v23, %v4457_v58  ;;  %v5452_v60 = vpop.f32.mrb[2].mxu1 }
 0xc82   : > { %v4460_v62 = vpop.f32.mrb[3].mxu1  ;;  %v4469_v59 = vadd.f32 %v5452_v60, %v4941_v23 }
 0xc83   : > { %v4461_v49 = vadd.f32 %v4941_v23, %v4460_v62 }
 0xca0   : > { %v5447_v24 = vpop.f32.mrb[0].mxu0 }
 0xca1   : > { %v4450_v26 = vadd.f32 %v5447_v24, %v4941_v23  ;;  %v4441_v28 = vpop.f32.mrb[1].mxu0 }
 0xca2   : > { %v4442_v29 = vadd.f32 %v4941_v23, %v4441_v28  ;;  %v5448_v33 = vpop.f32.mrb[2].mxu0 }
 0xca3   : > { %6132 = vtanh.f32 %v4450_v26  ;;  %v4453_v9 = vadd.f32 %v5448_v33, %v4941_v23  ;;  %v4444_v34 = vpop.f32.mrb[3].mxu0 }
 0xca4   : > { %6134 = vtanh.f32 %v4466_v27  ;;  %v4445_v37 = vadd.f32 %v4941_v23, %v4444_v34 }
 0xca5   : > { %6136 = vtanh.f32 %v4442_v29 }
 0xca6   : > { %6138 = vtanh.f32 %v4458_v30 }
 0xca7   : > { %6140 = vtanh.f32 %v4453_v9 }
 0xca8   : > { %6142 = vtanh.f32 %v4469_v59 }
 0xca9   : > { %6144 = vtanh.f32 %v4445_v37 }
 0xcaa   : > { %6146 = vtanh.f32 %v4461_v49 }
 0xcad   : > { %v6133_v46 = vpop.eup %6132 }
 0xcae   : > { %v6135_v32 = vpop.eup %6134  ;;  %4482 = vst [vmem:[%s8090_s7 + $0x10] sm:$0xff] %v6133_v46 }
 0xcaf   : > { %v6137_v1 = vpop.eup %6136  ;;  %4486 = vst [vmem:[%s8090_s7 + $0x30] sm:$0xff] %v6135_v32 }
 0xcb0   : > { %v6139_v5 = vpop.eup %6138  ;;  %4480 = vst [vmem:[%s8090_s7] sm:$0xff] %v6137_v1 }
 0xcb1   : > { %v6141_v61 = vpop.eup %6140  ;;  %4484 = vst [vmem:[%s8090_s7 + $0x20] sm:$0xff] %v6139_v5 }
 0xcb2   : > { %v6143_v4 = vpop.eup %6142  ;;  %4483 = vst [vmem:[%s8090_s7 + $0x18] sm:$0xff] %v6141_v61 }
 0xcb3   : > { %v6145_v36 = vpop.eup %6144  ;;  %4487 = vst [vmem:[%s8090_s7 + $0x38] sm:$0xff] %v6143_v4 }
 0xcb4   : > { %v6147_v3 = vpop.eup %6146  ;;  %4481 = vst [vmem:[%s8090_s7 + $0x8] sm:$0xff] %v6145_v36 }
 0xcb5   : > { %4485 = vst [vmem:[%s8090_s7 + $0x28] sm:$0xff] %v6147_v3 }
 0xcb6 PF: > { %s8238_s26 = sld [smem:[#allocation20_spill]]  ;;  %s8239_s11 = sld [smem:[#allocation21_spill]] }
 0xcb7   : > { %p24_p5 = scmp.ge.s32.totalorder %s6457_s29, 6   ;;  %s8240_s24 = smov %s6366_s25 }
 0xcb8   : > { %s8243_s27 = smov %s6457_s29 }
 0xcb9   :  { %26 = sbr.rel (!%p24_p5) target bundleno = 13 (0xd), region = 165 }
 0xcbc   : > { %s8241_s25 = smov %s8238_s26  ;;  %s8242_s26 = smov %s8239_s11 }
 0xcc0   :  { %4499 = vsyncpa [#allocation6], 1 }
 0xcc1   :  { %4501 = vsyncpa [#allocation6 + $0x1], 1 }
 0xcc2   :  { %4502 = vsyncpa [#allocation8], 1 }
 0xcc3   :  { %4504 = vsyncpa [#allocation8 + $0x1], 1 }
 0xcc4   :  { %4505 = vsyncpa [#allocation11], 1 }
 0xcc5   :  { %4507 = vsyncpa [#allocation11 + $0x1], 1 }
 0xcc6   :  { %4508 = vsyncpa [#allocation14], 1 }

</bundles_post_ra>
